<compile_context>
chip_gen: v7x
topology: tpu7x:2x2x1
jax: 0.10.0
libtpu: 0.0.40
codegen_flags: <defaults>
</compile_context>

<pallas_src>
import functools
import math

import jax
import jax.numpy as jnp
from jax.experimental import pallas as pl
from jax.experimental.pallas import tpu as pltpu


# ----------------------------------------------------------------------------
# In-kernel math helpers
# ----------------------------------------------------------------------------
def _erf_f32(x):
    # Abramowitz & Stegun 7.1.26 polynomial erf (|err| < 1.5e-7); matches
    # torch's exact-erf nn.GELU() to f32 precision and lowers cleanly in Mosaic.
    p = 0.3275911
    a1, a2, a3, a4, a5 = (0.254829592, -0.284496736, 1.421413741,
                          -1.453152027, 1.061405429)
    sgn = jnp.where(x >= 0.0, 1.0, -1.0)
    ax = jnp.abs(x)
    t = 1.0 / (1.0 + p * ax)
    poly = ((((a5 * t + a4) * t + a3) * t + a2) * t + a1) * t
    return sgn * (1.0 - poly * jnp.exp(-ax * ax))


def _gelu_exact(x):
    return 0.5 * x * (1.0 + _erf_f32(x * 0.7071067811865476))


def _layernorm(x, g, b, eps):
    mu = jnp.mean(x, axis=-1, keepdims=True)
    xc = x - mu
    var = jnp.mean(xc * xc, axis=-1, keepdims=True)
    return xc * jax.lax.rsqrt(var + eps) * g + b


# ----------------------------------------------------------------------------
# Kernel 1: self.proj (Linear -> GELU -> Linear) + self.norm (per-token LN)
# Output layout: (num_tokens, B, cad); host transposes the tiny result.
# ----------------------------------------------------------------------------
def _proj_kernel(id_ref, w1_ref, b1_ref, w2_ref, b2_ref, g_ref, bt_ref, o_ref,
                 *, num_tokens, cad, eps):
    h = jnp.dot(id_ref[...], w1_ref[...],
                preferred_element_type=jnp.float32) + b1_ref[...]
    h = _gelu_exact(h)
    y = jnp.dot(h, w2_ref[...],
                preferred_element_type=jnp.float32) + b2_ref[...]       # (B, nt*cad)
    g = g_ref[...]
    bt = bt_ref[...]
    for t in range(num_tokens):
        chunk = y[:, t * cad:(t + 1) * cad]                             # (B, cad)
        o_ref[t] = _layernorm(chunk, g, bt, eps).astype(o_ref.dtype)


def proj_tokens(id_embeds, params, *, num_tokens):
    B, id_dim = id_embeds.shape
    cad = params["norm_g"].shape[-1]
    hid = params["proj_w1"].shape[1]
    ncad = params["proj_w2"].shape[1]
    out = pl.pallas_call(
        functools.partial(_proj_kernel, num_tokens=num_tokens, cad=cad, eps=1e-5),
        out_shape=jax.ShapeDtypeStruct((num_tokens, B, cad), jnp.float32),
        grid=(1,),
        in_specs=[
            pl.BlockSpec((B, id_dim), lambda i: (0, 0)),
            pl.BlockSpec((id_dim, hid), lambda i: (0, 0)),
            pl.BlockSpec((1, hid), lambda i: (0, 0)),
            pl.BlockSpec((hid, ncad), lambda i: (0, 0)),
            pl.BlockSpec((1, ncad), lambda i: (0, 0)),
            pl.BlockSpec((1, cad), lambda i: (0, 0)),
            pl.BlockSpec((1, cad), lambda i: (0, 0)),
        ],
        out_specs=pl.BlockSpec((num_tokens, B, cad), lambda i: (0, 0, 0)),
        compiler_params=pltpu.CompilerParams(dimension_semantics=("arbitrary",)),
    )(id_embeds, params["proj_w1"], params["proj_b1"],
      params["proj_w2"], params["proj_b2"], params["norm_g"], params["norm_b"])
    return jnp.transpose(out, (1, 0, 2))            # (B, num_tokens, cad), tiny


# ----------------------------------------------------------------------------
# Kernel 2: the full FacePerceiverResampler, grid over depth, latents in VMEM
# ----------------------------------------------------------------------------
def _resampler_kernel(clip_ref, lat0_ref, win_ref, bin_ref,
                      l1g_ref, l1b_ref, l2g_ref, l2b_ref,
                      wq_ref, wkv_ref, wo_ref,
                      ffg_ref, ffb_ref, w1_ref, w2_ref,
                      wout_ref, bout_ref, nog_ref, nob_ref,
                      out_ref,
                      xp_vmem, lat_vmem,
                      *, heads, dim_head, shortcut, scale, eps):
    d = pl.program_id(0)
    B = clip_ref.shape[0]
    n2 = lat0_ref.shape[1]
    cad = lat0_ref.shape[2]
    inner = heads * dim_head
    attn_scale = 1.0 / math.sqrt(math.sqrt(dim_head))

    # ---- step 0: proj_in(clip) and latent init, both kept resident in VMEM ----
    @pl.when(d == 0)
    def _init():
        lat_vmem[...] = lat0_ref[...].astype(jnp.float32)
        w_in = win_ref[...]
        b_in = bin_ref[...]
        for b in range(B):
            xp_vmem[b] = jnp.dot(clip_ref[b], w_in,
                                 preferred_element_type=jnp.float32) + b_in

    # ---- per-layer parameters for this grid step (auto-pipelined DMA) ----
    l1g, l1b = l1g_ref[0], l1b_ref[0]
    l2g, l2b = l2g_ref[0], l2b_ref[0]
    ffg, ffb = ffg_ref[0], ffb_ref[0]
    wq, wkv, wo = wq_ref[0], wkv_ref[0], wo_ref[0]
    w1, w2 = w1_ref[0], w2_ref[0]

    for b in range(B):
        x_b = xp_vmem[b]                                   # (n1, cad)
        lat_b = lat_vmem[b]                                # (n2, cad)

        # ---- PerceiverAttention ----
        xn = _layernorm(x_b, l1g, l1b, eps)
        ltn = _layernorm(lat_b, l2g, l2b, eps)

        q = jnp.dot(ltn, wq, preferred_element_type=jnp.float32)      # (n2, inner)
        kv_x = jnp.dot(xn, wkv, preferred_element_type=jnp.float32)   # (n1, 2*inner)
        kv_l = jnp.dot(ltn, wkv, preferred_element_type=jnp.float32)  # (n2, 2*inner)

        attn_acc = jnp.zeros((n2, cad), jnp.float32)
        for h in range(heads):
            qs, qe = h * dim_head, (h + 1) * dim_head
            vs, ve = inner + h * dim_head, inner + (h + 1) * dim_head
            qh = q[:, qs:qe] * attn_scale
            kxh = kv_x[:, qs:qe] * attn_scale
            klh = kv_l[:, qs:qe] * attn_scale
            vxh = kv_x[:, vs:ve]
            vlh = kv_l[:, vs:ve]
            # scores against image tokens and latent tokens (joint softmax over both)
            sx = jax.lax.dot_general(qh, kxh, (((1,), (1,)), ((), ())),
                                     preferred_element_type=jnp.float32)  # (n2, n1)
            sl = jax.lax.dot_general(qh, klh, (((1,), (1,)), ((), ())),
                                     preferred_element_type=jnp.float32)  # (n2, n2)
            m = jnp.maximum(jnp.max(sx, axis=-1, keepdims=True),
                            jnp.max(sl, axis=-1, keepdims=True))
            ex = jnp.exp(sx - m)
            el = jnp.exp(sl - m)
            denom = (jnp.sum(ex, axis=-1, keepdims=True) +
                     jnp.sum(el, axis=-1, keepdims=True))
            inv = pl.reciprocal(denom, approx=True)
            oh = (jnp.dot(ex, vxh, preferred_element_type=jnp.float32) +
                  jnp.dot(el, vlh, preferred_element_type=jnp.float32)) * inv
            # to_out applied per head block:  concat_h(o_h) @ Wo == sum_h o_h @ Wo[h]
            attn_acc = attn_acc + jnp.dot(oh, wo[qs:qe, :],
                                          preferred_element_type=jnp.float32)
        lat_attn = lat_b + attn_acc                        # residual 1

        # ---- FeedForward ----
        hf = _layernorm(lat_attn, ffg, ffb, eps)
        hf = _gelu_exact(jnp.dot(hf, w1, preferred_element_type=jnp.float32))
        lat_new = lat_attn + jnp.dot(hf, w2, preferred_element_type=jnp.float32)
        lat_vmem[b] = lat_new

    # ---- last step: proj_out + norm_out (+ optional shortcut) ----
    @pl.when(d == pl.num_programs(0) - 1)
    def _finalize():
        wout = wout_ref[...]
        bout = bout_ref[...]
        nog = nog_ref[...]
        nob = nob_ref[...]
        for b in range(B):
            y = jnp.dot(lat_vmem[b], wout,
                        preferred_element_type=jnp.float32) + bout
            y = _layernorm(y, nog, nob, eps)
            if shortcut:
                y = lat0_ref[b].astype(jnp.float32) + scale * y
            out_ref[b] = y.astype(out_ref.dtype)


def face_perceiver_resampler(p, latents, clip_x, *, heads, dim_head,
                             shortcut, scale):
    B, n1, clip_dim = clip_x.shape
    _, n2, cad = latents.shape
    depth = p["to_q_w"].shape[0]
    inner = heads * dim_head
    ffd = p["ff_w1"].shape[2]

    c2 = lambda d: (0, 0)
    c3 = lambda d: (0, 0, 0)
    l3 = lambda d: (d, 0, 0)

    return pl.pallas_call(
        functools.partial(_resampler_kernel, heads=heads, dim_head=dim_head,
                          shortcut=shortcut, scale=scale, eps=1e-5),
        out_shape=jax.ShapeDtypeStruct((B, n2, cad), jnp.float32),
        grid=(depth,),
        in_specs=[
            pl.BlockSpec((B, n1, clip_dim), c3),      # clip features
            pl.BlockSpec((B, n2, cad), c3),           # initial latents (x)
            pl.BlockSpec((clip_dim, cad), c2),        # proj_in_w
            pl.BlockSpec((1, cad), c2),               # proj_in_b
            pl.BlockSpec((1, 1, cad), l3),            # ln1_g
            pl.BlockSpec((1, 1, cad), l3),            # ln1_b
            pl.BlockSpec((1, 1, cad), l3),            # ln2_g
            pl.BlockSpec((1, 1, cad), l3),            # ln2_b
            pl.BlockSpec((1, cad, inner), l3),        # to_q_w
            pl.BlockSpec((1, cad, 2 * inner), l3),    # to_kv_w
            pl.BlockSpec((1, inner, cad), l3),        # to_out_w
            pl.BlockSpec((1, 1, cad), l3),            # ff ln g
            pl.BlockSpec((1, 1, cad), l3),            # ff ln b
            pl.BlockSpec((1, cad, ffd), l3),          # ff w1
            pl.BlockSpec((1, ffd, cad), l3),          # ff w2
            pl.BlockSpec((cad, cad), c2),             # proj_out_w
            pl.BlockSpec((1, cad), c2),               # proj_out_b
            pl.BlockSpec((1, cad), c2),               # norm_out_g
            pl.BlockSpec((1, cad), c2),               # norm_out_b
        ],
        out_specs=pl.BlockSpec((B, n2, cad), c3),
        scratch_shapes=[pltpu.VMEM((B, n1, cad), jnp.float32),   # projected clip
                        pltpu.VMEM((B, n2, cad), jnp.float32)],  # resident latents
        compiler_params=pltpu.CompilerParams(
            dimension_semantics=("arbitrary",)),       # carried latents across depth
    )(clip_x, latents,
      p["proj_in_w"], p["proj_in_b"],
      p["ln1_g"], p["ln1_b"], p["ln2_g"], p["ln2_b"],
      p["to_q_w"], p["to_kv_w"], p["to_out_w"],
      p["ff_ln_g"], p["ff_ln_b"], p["ff_w1"], p["ff_w2"],
      p["proj_out_w"], p["proj_out_b"], p["norm_out_g"], p["norm_out_b"])


# ----------------------------------------------------------------------------
# Model forward
# ----------------------------------------------------------------------------
def proj_plus_forward(params, id_embeds, clip_embeds, *, num_tokens, dim_head,
                      shortcut=False, scale=1.0):
    cad = params["norm_g"].shape[-1]
    heads = cad // dim_head
    x = proj_tokens(id_embeds, params, num_tokens=num_tokens)   # (B, nt, cad)
    out = face_perceiver_resampler(params["res"], x, clip_embeds,
                                   heads=heads, dim_head=dim_head,
                                   shortcut=bool(shortcut), scale=float(scale))
    return out


# ----------------------------------------------------------------------------
# Deterministic synthetic parameters (per-layer weights stacked along depth)
# ----------------------------------------------------------------------------
def init_params(key, *, cad, id_dim, clip_dim, num_tokens, depth, dim_head,
                ff_mult=4):
    heads = cad // dim_head
    inner = heads * dim_head
    ffd = cad * ff_mult
    keys = iter(jax.random.split(key, 32))
    nk = lambda: next(keys)
    dense = lambda k, shape: 0.02 * jax.random.normal(k, shape, dtype=jnp.float32)

    params = {
        "proj_w1": dense(nk(), (id_dim, id_dim * 2)),
        "proj_b1": dense(nk(), (1, id_dim * 2)),
        "proj_w2": dense(nk(), (id_dim * 2, cad * num_tokens)),
        "proj_b2": dense(nk(), (1, cad * num_tokens)),
        "norm_g": jnp.ones((1, cad), jnp.float32),
        "norm_b": jnp.zeros((1, cad), jnp.float32),
        "res": {
            "proj_in_w": dense(nk(), (clip_dim, cad)),
            "proj_in_b": dense(nk(), (1, cad)),
            "ln1_g": jnp.ones((depth, 1, cad), jnp.float32),
            "ln1_b": jnp.zeros((depth, 1, cad), jnp.float32),
            "ln2_g": jnp.ones((depth, 1, cad), jnp.float32),
            "ln2_b": jnp.zeros((depth, 1, cad), jnp.float32),
            "to_q_w": dense(nk(), (depth, cad, inner)),
            "to_kv_w": dense(nk(), (depth, cad, 2 * inner)),
            "to_out_w": dense(nk(), (depth, inner, cad)),
            "ff_ln_g": jnp.ones((depth, 1, cad), jnp.float32),
            "ff_ln_b": jnp.zeros((depth, 1, cad), jnp.float32),
            "ff_w1": dense(nk(), (depth, cad, ffd)),
            "ff_w2": dense(nk(), (depth, ffd, cad)),
            "proj_out_w": dense(nk(), (cad, cad)),
            "proj_out_b": dense(nk(), (1, cad)),
            "norm_out_g": jnp.ones((1, cad), jnp.float32),
            "norm_out_b": jnp.zeros((1, cad), jnp.float32),
        },
    }
    return params


if __name__ == "__main__":
    # Small configuration consistent with the torch module (prod dims 768/512/1280
    # shrunk; heads = cross_attention_dim // dim_head).
    CAD = 128          # cross_attention_dim
    ID_DIM = 128       # id_embeddings_dim
    CLIP_DIM = 128     # clip_embeddings_dim
    NUM_TOKENS = 4
    DEPTH = 4
    DIM_HEAD = 64
    B = 2
    N_CLIP = 8         # number of clip tokens

    key = jax.random.PRNGKey(0)
    kp, k1, k2 = jax.random.split(key, 3)
    params = init_params(kp, cad=CAD, id_dim=ID_DIM, clip_dim=CLIP_DIM,
                         num_tokens=NUM_TOKENS, depth=DEPTH, dim_head=DIM_HEAD)
    id_embeds = jax.random.normal(k1, (B, ID_DIM), dtype=jnp.float32)
    clip_embeds = jax.random.normal(k2, (B, N_CLIP, CLIP_DIM), dtype=jnp.float32)

    fwd = jax.jit(proj_plus_forward,
                  static_argnames=("num_tokens", "dim_head", "shortcut", "scale"))

    out = fwd(params, id_embeds, clip_embeds,
              num_tokens=NUM_TOKENS, dim_head=DIM_HEAD, shortcut=False)
    out = jax.block_until_ready(out)
    out_sc = fwd(params, id_embeds, clip_embeds,
                 num_tokens=NUM_TOKENS, dim_head=DIM_HEAD, shortcut=True, scale=1.0)
    out_sc = jax.block_until_ready(out_sc)

    assert out.shape == (B, NUM_TOKENS, CAD)
    assert out_sc.shape == (B, NUM_TOKENS, CAD)
    assert bool(jnp.all(jnp.isfinite(out)))
    assert bool(jnp.all(jnp.isfinite(out_sc)))
    print("KERNEL_OK")
</pallas_src>

<mosaic_0001>
module attributes {stable_mosaic.version = 11 : i64} {
  func.func @_proj_kernel(%arg0: i32, %arg1: memref<2x128xf32, #tpu.memory_space<vmem>>, %arg2: memref<128x256xf32, #tpu.memory_space<vmem>>, %arg3: memref<1x256xf32, #tpu.memory_space<vmem>>, %arg4: memref<256x512xf32, #tpu.memory_space<vmem>>, %arg5: memref<1x512xf32, #tpu.memory_space<vmem>>, %arg6: memref<1x128xf32, #tpu.memory_space<vmem>>, %arg7: memref<1x128xf32, #tpu.memory_space<vmem>>, %arg8: memref<4x2x128xf32, #tpu.memory_space<vmem>>) attributes {dimension_semantics = [#tpu.dimension_semantics<arbitrary>], iteration_bounds = array<i64: 1>, scalar_prefetch = 0 : i64, scratch_operands = 0 : i64, tpu.core_type = #tpu.core_type<tc>, window_params = [{pipeline_mode = #tpu.pipeline_mode<synchronous>, transform_indices = @transform_0, window_bounds = array<i64: 2, 128>}, {pipeline_mode = #tpu.pipeline_mode<synchronous>, transform_indices = @transform_1, window_bounds = array<i64: 128, 256>}, {pipeline_mode = #tpu.pipeline_mode<synchronous>, transform_indices = @transform_2, window_bounds = array<i64: 1, 256>}, {pipeline_mode = #tpu.pipeline_mode<synchronous>, transform_indices = @transform_3, window_bounds = array<i64: 256, 512>}, {pipeline_mode = #tpu.pipeline_mode<synchronous>, transform_indices = @transform_4, window_bounds = array<i64: 1, 512>}, {pipeline_mode = #tpu.pipeline_mode<synchronous>, transform_indices = @transform_5, window_bounds = array<i64: 1, 128>}, {pipeline_mode = #tpu.pipeline_mode<synchronous>, transform_indices = @transform_6, window_bounds = array<i64: 1, 128>}, {pipeline_mode = #tpu.pipeline_mode<synchronous>, transform_indices = @transform_7, window_bounds = array<i64: 4, 2, 128>}]} {
    %c0 = arith.constant 0 : index
    %c0_0 = arith.constant 0 : index
    %0 = vector.load %arg1[%c0, %c0_0] : memref<2x128xf32, #tpu.memory_space<vmem>>, vector<2x128xf32>
    %c0_1 = arith.constant 0 : index
    %c0_2 = arith.constant 0 : index
    %1 = vector.load %arg2[%c0_1, %c0_2] : memref<128x256xf32, #tpu.memory_space<vmem>>, vector<128x256xf32>
    %cst = arith.constant dense<0.000000e+00> : vector<2x256xf32>
    %2 = tpu.matmul %0, %1, %cst {dimension_numbers = #tpu.dot_dimension_numbers<[1], [0], [0], [1], [0, 0, 1, 1], [], []>} : vector<2x128xf32>, vector<128x256xf32>, vector<2x256xf32> -> vector<2x256xf32>
    %c0_3 = arith.constant 0 : index
    %c0_4 = arith.constant 0 : index
    %3 = vector.load %arg3[%c0_3, %c0_4] : memref<1x256xf32, #tpu.memory_space<vmem>>, vector<1x256xf32>
    %4 = vector.broadcast %3 : vector<1x256xf32> to vector<2x256xf32>
    %5 = arith.addf %2, %4 : vector<2x256xf32>
    %cst_5 = arith.constant 5.000000e-01 : f32
    %6 = vector.broadcast %cst_5 : f32 to vector<2x256xf32>
    %7 = arith.mulf %6, %5 : vector<2x256xf32>
    %cst_6 = arith.constant 0.707106769 : f32
    %8 = vector.broadcast %cst_6 : f32 to vector<2x256xf32>
    %9 = arith.mulf %5, %8 : vector<2x256xf32>
    %cst_7 = arith.constant 0.000000e+00 : f32
    %10 = vector.broadcast %cst_7 : f32 to vector<2x256xf32>
    %11 = arith.cmpf oge, %9, %10 : vector<2x256xf32>
    %cst_8 = arith.constant 1.000000e+00 : f32
    %cst_9 = arith.constant -1.000000e+00 : f32
    %12 = vector.broadcast %cst_8 : f32 to vector<2x256xf32>
    %13 = vector.broadcast %cst_9 : f32 to vector<2x256xf32>
    %14 = arith.select %11, %12, %13 : vector<2x256xi1>, vector<2x256xf32>
    %15 = math.absf %9 : vector<2x256xf32>
    %cst_10 = arith.constant 0.327591091 : f32
    %16 = vector.broadcast %cst_10 : f32 to vector<2x256xf32>
    %17 = arith.mulf %16, %15 : vector<2x256xf32>
    %cst_11 = arith.constant 1.000000e+00 : f32
    %18 = vector.broadcast %cst_11 : f32 to vector<2x256xf32>
    %19 = arith.addf %18, %17 : vector<2x256xf32>
    %cst_12 = arith.constant 1.000000e+00 : f32
    %20 = vector.broadcast %cst_12 : f32 to vector<2x256xf32>
    %21 = arith.divf %20, %19 : vector<2x256xf32>
    %cst_13 = arith.constant 1.06140542 : f32
    %22 = vector.broadcast %cst_13 : f32 to vector<2x256xf32>
    %23 = arith.mulf %22, %21 : vector<2x256xf32>
    %cst_14 = arith.constant -1.45315206 : f32
    %24 = vector.broadcast %cst_14 : f32 to vector<2x256xf32>
    %25 = arith.addf %23, %24 : vector<2x256xf32>
    %26 = arith.mulf %25, %21 : vector<2x256xf32>
    %cst_15 = arith.constant 1.42141378 : f32
    %27 = vector.broadcast %cst_15 : f32 to vector<2x256xf32>
    %28 = arith.addf %26, %27 : vector<2x256xf32>
    %29 = arith.mulf %28, %21 : vector<2x256xf32>
    %cst_16 = arith.constant -0.284496725 : f32
    %30 = vector.broadcast %cst_16 : f32 to vector<2x256xf32>
    %31 = arith.addf %29, %30 : vector<2x256xf32>
    %32 = arith.mulf %31, %21 : vector<2x256xf32>
    %cst_17 = arith.constant 0.254829586 : f32
    %33 = vector.broadcast %cst_17 : f32 to vector<2x256xf32>
    %34 = arith.addf %32, %33 : vector<2x256xf32>
    %35 = arith.mulf %34, %21 : vector<2x256xf32>
    %cst_18 = arith.constant 0.000000e+00 : f32
    %36 = vector.broadcast %cst_18 : f32 to vector<2x256xf32>
    %37 = arith.subf %36, %15 : vector<2x256xf32>
    %38 = arith.mulf %37, %15 : vector<2x256xf32>
    %39 = math.exp %38 : vector<2x256xf32>
    %40 = arith.mulf %35, %39 : vector<2x256xf32>
    %cst_19 = arith.constant 1.000000e+00 : f32
    %41 = vector.broadcast %cst_19 : f32 to vector<2x256xf32>
    %42 = arith.subf %41, %40 : vector<2x256xf32>
    %43 = arith.mulf %14, %42 : vector<2x256xf32>
    %cst_20 = arith.constant 1.000000e+00 : f32
    %44 = vector.broadcast %cst_20 : f32 to vector<2x256xf32>
    %45 = arith.addf %44, %43 : vector<2x256xf32>
    %46 = arith.mulf %7, %45 : vector<2x256xf32>
    %c0_21 = arith.constant 0 : index
    %c0_22 = arith.constant 0 : index
    %47 = vector.load %arg4[%c0_21, %c0_22] : memref<256x512xf32, #tpu.memory_space<vmem>>, vector<256x512xf32>
    %cst_23 = arith.constant dense<0.000000e+00> : vector<2x512xf32>
    %48 = tpu.matmul %46, %47, %cst_23 {dimension_numbers = #tpu.dot_dimension_numbers<[1], [0], [0], [1], [0, 0, 1, 1], [], []>} : vector<2x256xf32>, vector<256x512xf32>, vector<2x512xf32> -> vector<2x512xf32>
    %c0_24 = arith.constant 0 : index
    %c0_25 = arith.constant 0 : index
    %49 = vector.load %arg5[%c0_24, %c0_25] : memref<1x512xf32, #tpu.memory_space<vmem>>, vector<1x512xf32>
    %50 = vector.broadcast %49 : vector<1x512xf32> to vector<2x512xf32>
    %51 = arith.addf %48, %50 : vector<2x512xf32>
    %c0_26 = arith.constant 0 : index
    %c0_27 = arith.constant 0 : index
    %52 = vector.load %arg6[%c0_26, %c0_27] : memref<1x128xf32, #tpu.memory_space<vmem>>, vector<1x128xf32>
    %c0_28 = arith.constant 0 : index
    %c0_29 = arith.constant 0 : index
    %53 = vector.load %arg7[%c0_28, %c0_29] : memref<1x128xf32, #tpu.memory_space<vmem>>, vector<1x128xf32>
    %54 = vector.extract_strided_slice %51 {offsets = [0, 0], sizes = [2, 128], strides = [1, 1]} : vector<2x512xf32> to vector<2x128xf32>
    %cst_30 = arith.constant dense<0.000000e+00> : vector<2xf32>
    %55 = vector.multi_reduction <add>, %54, %cst_30 [1] : vector<2x128xf32> to vector<2xf32>
    %56 = vector.shape_cast %55 : vector<2xf32> to vector<2x1xf32>
    %cst_31 = arith.constant 1.280000e+02 : f32
    %57 = vector.broadcast %cst_31 : f32 to vector<2x1xf32>
    %58 = arith.divf %56, %57 : vector<2x1xf32>
    %59 = vector.broadcast %58 : vector<2x1xf32> to vector<2x128xf32>
    %60 = arith.subf %54, %59 : vector<2x128xf32>
    %61 = arith.mulf %60, %60 : vector<2x128xf32>
    %cst_32 = arith.constant dense<0.000000e+00> : vector<2xf32>
    %62 = vector.multi_reduction <add>, %61, %cst_32 [1] : vector<2x128xf32> to vector<2xf32>
    %63 = vector.shape_cast %62 : vector<2xf32> to vector<2x1xf32>
    %cst_33 = arith.constant 1.280000e+02 : f32
    %64 = vector.broadcast %cst_33 : f32 to vector<2x1xf32>
    %65 = arith.divf %63, %64 : vector<2x1xf32>
    %cst_34 = arith.constant 9.99999974E-6 : f32
    %66 = vector.broadcast %cst_34 : f32 to vector<2x1xf32>
    %67 = arith.addf %65, %66 : vector<2x1xf32>
    %68 = math.rsqrt %67 : vector<2x1xf32>
    %69 = vector.broadcast %68 : vector<2x1xf32> to vector<2x128xf32>
    %70 = arith.mulf %60, %69 : vector<2x128xf32>
    %71 = vector.broadcast %52 : vector<1x128xf32> to vector<2x128xf32>
    %72 = arith.mulf %70, %71 : vector<2x128xf32>
    %73 = vector.broadcast %53 : vector<1x128xf32> to vector<2x128xf32>
    %74 = arith.addf %72, %73 : vector<2x128xf32>
    %c0_35 = arith.constant 0 : index
    %c0_36 = arith.constant 0 : index
    %c0_37 = arith.constant 0 : index
    %75 = vector.load %arg8[%c0_35, %c0_36, %c0_37] : memref<4x2x128xf32, #tpu.memory_space<vmem>>, vector<1x2x128xf32>
    %76 = vector.shape_cast %75 : vector<1x2x128xf32> to vector<2x128xf32>
    %77 = vector.shape_cast %74 : vector<2x128xf32> to vector<1x2x128xf32>
    tpu.vector_store %arg8[%c0_35, %c0_36, %c0_37], %77 {strides = array<i32>} : memref<4x2x128xf32, #tpu.memory_space<vmem>>, vector<1x2x128xf32>,
    %78 = vector.extract_strided_slice %51 {offsets = [0, 128], sizes = [2, 128], strides = [1, 1]} : vector<2x512xf32> to vector<2x128xf32>
    %cst_38 = arith.constant dense<0.000000e+00> : vector<2xf32>
    %79 = vector.multi_reduction <add>, %78, %cst_38 [1] : vector<2x128xf32> to vector<2xf32>
    %80 = vector.shape_cast %79 : vector<2xf32> to vector<2x1xf32>
    %cst_39 = arith.constant 1.280000e+02 : f32
    %81 = vector.broadcast %cst_39 : f32 to vector<2x1xf32>
    %82 = arith.divf %80, %81 : vector<2x1xf32>
    %83 = vector.broadcast %82 : vector<2x1xf32> to vector<2x128xf32>
    %84 = arith.subf %78, %83 : vector<2x128xf32>
    %85 = arith.mulf %84, %84 : vector<2x128xf32>
    %cst_40 = arith.constant dense<0.000000e+00> : vector<2xf32>
    %86 = vector.multi_reduction <add>, %85, %cst_40 [1] : vector<2x128xf32> to vector<2xf32>
    %87 = vector.shape_cast %86 : vector<2xf32> to vector<2x1xf32>
    %cst_41 = arith.constant 1.280000e+02 : f32
    %88 = vector.broadcast %cst_41 : f32 to vector<2x1xf32>
    %89 = arith.divf %87, %88 : vector<2x1xf32>
    %cst_42 = arith.constant 9.99999974E-6 : f32
    %90 = vector.broadcast %cst_42 : f32 to vector<2x1xf32>
    %91 = arith.addf %89, %90 : vector<2x1xf32>
    %92 = math.rsqrt %91 : vector<2x1xf32>
    %93 = vector.broadcast %92 : vector<2x1xf32> to vector<2x128xf32>
    %94 = arith.mulf %84, %93 : vector<2x128xf32>
    %95 = vector.broadcast %52 : vector<1x128xf32> to vector<2x128xf32>
    %96 = arith.mulf %94, %95 : vector<2x128xf32>
    %97 = vector.broadcast %53 : vector<1x128xf32> to vector<2x128xf32>
    %98 = arith.addf %96, %97 : vector<2x128xf32>
    %c1 = arith.constant 1 : index
    %c0_43 = arith.constant 0 : index
    %c0_44 = arith.constant 0 : index
    %99 = vector.load %arg8[%c1, %c0_43, %c0_44] : memref<4x2x128xf32, #tpu.memory_space<vmem>>, vector<1x2x128xf32>
    %100 = vector.shape_cast %99 : vector<1x2x128xf32> to vector<2x128xf32>
    %101 = vector.shape_cast %98 : vector<2x128xf32> to vector<1x2x128xf32>
    tpu.vector_store %arg8[%c1, %c0_43, %c0_44], %101 {strides = array<i32>} : memref<4x2x128xf32, #tpu.memory_space<vmem>>, vector<1x2x128xf32>,
    %102 = vector.extract_strided_slice %51 {offsets = [0, 256], sizes = [2, 128], strides = [1, 1]} : vector<2x512xf32> to vector<2x128xf32>
    %cst_45 = arith.constant dense<0.000000e+00> : vector<2xf32>
    %103 = vector.multi_reduction <add>, %102, %cst_45 [1] : vector<2x128xf32> to vector<2xf32>
    %104 = vector.shape_cast %103 : vector<2xf32> to vector<2x1xf32>
    %cst_46 = arith.constant 1.280000e+02 : f32
    %105 = vector.broadcast %cst_46 : f32 to vector<2x1xf32>
    %106 = arith.divf %104, %105 : vector<2x1xf32>
    %107 = vector.broadcast %106 : vector<2x1xf32> to vector<2x128xf32>
    %108 = arith.subf %102, %107 : vector<2x128xf32>
    %109 = arith.mulf %108, %108 : vector<2x128xf32>
    %cst_47 = arith.constant dense<0.000000e+00> : vector<2xf32>
    %110 = vector.multi_reduction <add>, %109, %cst_47 [1] : vector<2x128xf32> to vector<2xf32>
    %111 = vector.shape_cast %110 : vector<2xf32> to vector<2x1xf32>
    %cst_48 = arith.constant 1.280000e+02 : f32
    %112 = vector.broadcast %cst_48 : f32 to vector<2x1xf32>
    %113 = arith.divf %111, %112 : vector<2x1xf32>
    %cst_49 = arith.constant 9.99999974E-6 : f32
    %114 = vector.broadcast %cst_49 : f32 to vector<2x1xf32>
    %115 = arith.addf %113, %114 : vector<2x1xf32>
    %116 = math.rsqrt %115 : vector<2x1xf32>
    %117 = vector.broadcast %116 : vector<2x1xf32> to vector<2x128xf32>
    %118 = arith.mulf %108, %117 : vector<2x128xf32>
    %119 = vector.broadcast %52 : vector<1x128xf32> to vector<2x128xf32>
    %120 = arith.mulf %118, %119 : vector<2x128xf32>
    %121 = vector.broadcast %53 : vector<1x128xf32> to vector<2x128xf32>
    %122 = arith.addf %120, %121 : vector<2x128xf32>
    %c2 = arith.constant 2 : index
    %c0_50 = arith.constant 0 : index
    %c0_51 = arith.constant 0 : index
    %123 = vector.load %arg8[%c2, %c0_50, %c0_51] : memref<4x2x128xf32, #tpu.memory_space<vmem>>, vector<1x2x128xf32>
    %124 = vector.shape_cast %123 : vector<1x2x128xf32> to vector<2x128xf32>
    %125 = vector.shape_cast %122 : vector<2x128xf32> to vector<1x2x128xf32>
    tpu.vector_store %arg8[%c2, %c0_50, %c0_51], %125 {strides = array<i32>} : memref<4x2x128xf32, #tpu.memory_space<vmem>>, vector<1x2x128xf32>,
    %126 = vector.extract_strided_slice %51 {offsets = [0, 384], sizes = [2, 128], strides = [1, 1]} : vector<2x512xf32> to vector<2x128xf32>
    %cst_52 = arith.constant dense<0.000000e+00> : vector<2xf32>
    %127 = vector.multi_reduction <add>, %126, %cst_52 [1] : vector<2x128xf32> to vector<2xf32>
    %128 = vector.shape_cast %127 : vector<2xf32> to vector<2x1xf32>
    %cst_53 = arith.constant 1.280000e+02 : f32
    %129 = vector.broadcast %cst_53 : f32 to vector<2x1xf32>
    %130 = arith.divf %128, %129 : vector<2x1xf32>
    %131 = vector.broadcast %130 : vector<2x1xf32> to vector<2x128xf32>
    %132 = arith.subf %126, %131 : vector<2x128xf32>
    %133 = arith.mulf %132, %132 : vector<2x128xf32>
    %cst_54 = arith.constant dense<0.000000e+00> : vector<2xf32>
    %134 = vector.multi_reduction <add>, %133, %cst_54 [1] : vector<2x128xf32> to vector<2xf32>
    %135 = vector.shape_cast %134 : vector<2xf32> to vector<2x1xf32>
    %cst_55 = arith.constant 1.280000e+02 : f32
    %136 = vector.broadcast %cst_55 : f32 to vector<2x1xf32>
    %137 = arith.divf %135, %136 : vector<2x1xf32>
    %cst_56 = arith.constant 9.99999974E-6 : f32
    %138 = vector.broadcast %cst_56 : f32 to vector<2x1xf32>
    %139 = arith.addf %137, %138 : vector<2x1xf32>
    %140 = math.rsqrt %139 : vector<2x1xf32>
    %141 = vector.broadcast %140 : vector<2x1xf32> to vector<2x128xf32>
    %142 = arith.mulf %132, %141 : vector<2x128xf32>
    %143 = vector.broadcast %52 : vector<1x128xf32> to vector<2x128xf32>
    %144 = arith.mulf %142, %143 : vector<2x128xf32>
    %145 = vector.broadcast %53 : vector<1x128xf32> to vector<2x128xf32>
    %146 = arith.addf %144, %145 : vector<2x128xf32>
    %c3 = arith.constant 3 : index
    %c0_57 = arith.constant 0 : index
    %c0_58 = arith.constant 0 : index
    %147 = vector.load %arg8[%c3, %c0_57, %c0_58] : memref<4x2x128xf32, #tpu.memory_space<vmem>>, vector<1x2x128xf32>
    %148 = vector.shape_cast %147 : vector<1x2x128xf32> to vector<2x128xf32>
    %149 = vector.shape_cast %146 : vector<2x128xf32> to vector<1x2x128xf32>
    tpu.vector_store %arg8[%c3, %c0_57, %c0_58], %149 {strides = array<i32>} : memref<4x2x128xf32, #tpu.memory_space<vmem>>, vector<1x2x128xf32>,
    return
  }
  func.func @transform_0(%arg0: i32) -> (i32, i32) {
    %c0_i32 = arith.constant 0 : i32
    %c0_i32_0 = arith.constant 0 : i32
    %c0_i32_1 = arith.constant 0 : i32
    return %c0_i32, %c0_i32_0 : i32, i32
  }
  func.func @transform_1(%arg0: i32) -> (i32, i32) {
    %c0_i32 = arith.constant 0 : i32
    %c0_i32_0 = arith.constant 0 : i32
    %c0_i32_1 = arith.constant 0 : i32
    return %c0_i32, %c0_i32_0 : i32, i32
  }
  func.func @transform_2(%arg0: i32) -> (i32, i32) {
    %c0_i32 = arith.constant 0 : i32
    %c0_i32_0 = arith.constant 0 : i32
    %c0_i32_1 = arith.constant 0 : i32
    return %c0_i32, %c0_i32_0 : i32, i32
  }
  func.func @transform_3(%arg0: i32) -> (i32, i32) {
    %c0_i32 = arith.constant 0 : i32
    %c0_i32_0 = arith.constant 0 : i32
    %c0_i32_1 = arith.constant 0 : i32
    return %c0_i32, %c0_i32_0 : i32, i32
  }
  func.func @transform_4(%arg0: i32) -> (i32, i32) {
    %c0_i32 = arith.constant 0 : i32
    %c0_i32_0 = arith.constant 0 : i32
    %c0_i32_1 = arith.constant 0 : i32
    return %c0_i32, %c0_i32_0 : i32, i32
  }
  func.func @transform_5(%arg0: i32) -> (i32, i32) {
    %c0_i32 = arith.constant 0 : i32
    %c0_i32_0 = arith.constant 0 : i32
    %c0_i32_1 = arith.constant 0 : i32
    return %c0_i32, %c0_i32_0 : i32, i32
  }
  func.func @transform_6(%arg0: i32) -> (i32, i32) {
    %c0_i32 = arith.constant 0 : i32
    %c0_i32_0 = arith.constant 0 : i32
    %c0_i32_1 = arith.constant 0 : i32
    return %c0_i32, %c0_i32_0 : i32, i32
  }
  func.func @transform_7(%arg0: i32) -> (i32, i32, i32) {
    %c0_i32 = arith.constant 0 : i32
    %c0_i32_0 = arith.constant 0 : i32
    %c0_i32_1 = arith.constant 0 : i32
    %c0_i32_2 = arith.constant 0 : i32
    return %c0_i32, %c0_i32_0, %c0_i32_1 : i32, i32, i32
  }
}

module attributes {stable_mosaic.version = 11 : i64} {
  func.func @_resampler_kernel(%arg0: i32, %arg1: memref<2x8x128xf32, #tpu.memory_space<vmem>>, %arg2: memref<2x4x128xf32, #tpu.memory_space<vmem>>, %arg3: memref<128x128xf32, #tpu.memory_space<vmem>>, %arg4: memref<1x128xf32, #tpu.memory_space<vmem>>, %arg5: memref<1x1x128xf32, #tpu.memory_space<vmem>>, %arg6: memref<1x1x128xf32, #tpu.memory_space<vmem>>, %arg7: memref<1x1x128xf32, #tpu.memory_space<vmem>>, %arg8: memref<1x1x128xf32, #tpu.memory_space<vmem>>, %arg9: memref<1x128x128xf32, #tpu.memory_space<vmem>>, %arg10: memref<1x128x256xf32, #tpu.memory_space<vmem>>, %arg11: memref<1x128x128xf32, #tpu.memory_space<vmem>>, %arg12: memref<1x1x128xf32, #tpu.memory_space<vmem>>, %arg13: memref<1x1x128xf32, #tpu.memory_space<vmem>>, %arg14: memref<1x128x512xf32, #tpu.memory_space<vmem>>, %arg15: memref<1x512x128xf32, #tpu.memory_space<vmem>>, %arg16: memref<128x128xf32, #tpu.memory_space<vmem>>, %arg17: memref<1x128xf32, #tpu.memory_space<vmem>>, %arg18: memref<1x128xf32, #tpu.memory_space<vmem>>, %arg19: memref<1x128xf32, #tpu.memory_space<vmem>>, %arg20: memref<2x4x128xf32, #tpu.memory_space<vmem>>, %arg21: memref<2x8x128xf32, #tpu.memory_space<vmem>>, %arg22: memref<2x4x128xf32, #tpu.memory_space<vmem>>) attributes {dimension_semantics = [#tpu.dimension_semantics<arbitrary>], iteration_bounds = array<i64: 4>, scalar_prefetch = 0 : i64, scratch_operands = 2 : i64, tpu.core_type = #tpu.core_type<tc>, window_params = [{pipeline_mode = #tpu.pipeline_mode<synchronous>, transform_indices = @transform_0, window_bounds = array<i64: 2, 8, 128>}, {pipeline_mode = #tpu.pipeline_mode<synchronous>, transform_indices = @transform_1, window_bounds = array<i64: 2, 4, 128>}, {pipeline_mode = #tpu.pipeline_mode<synchronous>, transform_indices = @transform_2, window_bounds = array<i64: 128, 128>}, {pipeline_mode = #tpu.pipeline_mode<synchronous>, transform_indices = @transform_3, window_bounds = array<i64: 1, 128>}, {transform_indices = @transform_4, window_bounds = array<i64: 1, 1, 128>}, {transform_indices = @transform_5, window_bounds = array<i64: 1, 1, 128>}, {transform_indices = @transform_6, window_bounds = array<i64: 1, 1, 128>}, {transform_indices = @transform_7, window_bounds = array<i64: 1, 1, 128>}, {transform_indices = @transform_8, window_bounds = array<i64: 1, 128, 128>}, {transform_indices = @transform_9, window_bounds = array<i64: 1, 128, 256>}, {transform_indices = @transform_10, window_bounds = array<i64: 1, 128, 128>}, {transform_indices = @transform_11, window_bounds = array<i64: 1, 1, 128>}, {transform_indices = @transform_12, window_bounds = array<i64: 1, 1, 128>}, {transform_indices = @transform_13, window_bounds = array<i64: 1, 128, 512>}, {transform_indices = @transform_14, window_bounds = array<i64: 1, 512, 128>}, {pipeline_mode = #tpu.pipeline_mode<synchronous>, transform_indices = @transform_15, window_bounds = array<i64: 128, 128>}, {pipeline_mode = #tpu.pipeline_mode<synchronous>, transform_indices = @transform_16, window_bounds = array<i64: 1, 128>}, {pipeline_mode = #tpu.pipeline_mode<synchronous>, transform_indices = @transform_17, window_bounds = array<i64: 1, 128>}, {pipeline_mode = #tpu.pipeline_mode<synchronous>, transform_indices = @transform_18, window_bounds = array<i64: 1, 128>}, {pipeline_mode = #tpu.pipeline_mode<synchronous>, transform_indices = @transform_19, window_bounds = array<i64: 2, 4, 128>}]} {
    %c0_i32 = arith.constant 0 : i32
    %0 = arith.cmpi eq, %arg0, %c0_i32 : i32
    %1 = arith.extui %0 : i1 to i32
    %c0_i32_0 = arith.constant 0 : i32
    %2 = arith.cmpi ne, %1, %c0_i32_0 : i32
    scf.if %2 {
      %c0_172 = arith.constant 0 : index
      %c0_173 = arith.constant 0 : index
      %c0_174 = arith.constant 0 : index
      %412 = vector.load %arg2[%c0_172, %c0_173, %c0_174] : memref<2x4x128xf32, #tpu.memory_space<vmem>>, vector<2x4x128xf32>
      %c0_175 = arith.constant 0 : index
      %c0_176 = arith.constant 0 : index
      %c0_177 = arith.constant 0 : index
      %413 = vector.load %arg22[%c0_175, %c0_176, %c0_177] : memref<2x4x128xf32, #tpu.memory_space<vmem>>, vector<2x4x128xf32>
      tpu.vector_store %arg22[%c0_175, %c0_176, %c0_177], %412 {strides = array<i32>} : memref<2x4x128xf32, #tpu.memory_space<vmem>>, vector<2x4x128xf32>,
      %c0_178 = arith.constant 0 : index
      %c0_179 = arith.constant 0 : index
      %414 = vector.load %arg3[%c0_178, %c0_179] : memref<128x128xf32, #tpu.memory_space<vmem>>, vector<128x128xf32>
      %c0_180 = arith.constant 0 : index
      %c0_181 = arith.constant 0 : index
      %415 = vector.load %arg4[%c0_180, %c0_181] : memref<1x128xf32, #tpu.memory_space<vmem>>, vector<1x128xf32>
      %c0_182 = arith.constant 0 : index
      %c0_183 = arith.constant 0 : index
      %c0_184 = arith.constant 0 : index
      %416 = vector.load %arg1[%c0_182, %c0_183, %c0_184] : memref<2x8x128xf32, #tpu.memory_space<vmem>>, vector<1x8x128xf32>
      %417 = vector.shape_cast %416 : vector<1x8x128xf32> to vector<8x128xf32>
      %cst_185 = arith.constant dense<0.000000e+00> : vector<8x128xf32>
      %418 = tpu.matmul %417, %414, %cst_185 {dimension_numbers = #tpu.dot_dimension_numbers<[1], [0], [0], [1], [0, 0, 1, 1], [], []>} : vector<8x128xf32>, vector<128x128xf32>, vector<8x128xf32> -> vector<8x128xf32>
      %419 = vector.broadcast %415 : vector<1x128xf32> to vector<8x128xf32>
      %420 = arith.addf %418, %419 : vector<8x128xf32>
      %c0_186 = arith.constant 0 : index
      %c0_187 = arith.constant 0 : index
      %c0_188 = arith.constant 0 : index
      %421 = vector.load %arg21[%c0_186, %c0_187, %c0_188] : memref<2x8x128xf32, #tpu.memory_space<vmem>>, vector<1x8x128xf32>
      %422 = vector.shape_cast %421 : vector<1x8x128xf32> to vector<8x128xf32>
      %423 = vector.shape_cast %420 : vector<8x128xf32> to vector<1x8x128xf32>
      tpu.vector_store %arg21[%c0_186, %c0_187, %c0_188], %423 {strides = array<i32>} : memref<2x8x128xf32, #tpu.memory_space<vmem>>, vector<1x8x128xf32>,
      %c1_189 = arith.constant 1 : index
      %c0_190 = arith.constant 0 : index
      %c0_191 = arith.constant 0 : index
      %424 = vector.load %arg1[%c1_189, %c0_190, %c0_191] : memref<2x8x128xf32, #tpu.memory_space<vmem>>, vector<1x8x128xf32>
      %425 = vector.shape_cast %424 : vector<1x8x128xf32> to vector<8x128xf32>
      %cst_192 = arith.constant dense<0.000000e+00> : vector<8x128xf32>
      %426 = tpu.matmul %425, %414, %cst_192 {dimension_numbers = #tpu.dot_dimension_numbers<[1], [0], [0], [1], [0, 0, 1, 1], [], []>} : vector<8x128xf32>, vector<128x128xf32>, vector<8x128xf32> -> vector<8x128xf32>
      %427 = vector.broadcast %415 : vector<1x128xf32> to vector<8x128xf32>
      %428 = arith.addf %426, %427 : vector<8x128xf32>
      %c1_193 = arith.constant 1 : index
      %c0_194 = arith.constant 0 : index
      %c0_195 = arith.constant 0 : index
      %429 = vector.load %arg21[%c1_193, %c0_194, %c0_195] : memref<2x8x128xf32, #tpu.memory_space<vmem>>, vector<1x8x128xf32>
      %430 = vector.shape_cast %429 : vector<1x8x128xf32> to vector<8x128xf32>
      %431 = vector.shape_cast %428 : vector<8x128xf32> to vector<1x8x128xf32>
      tpu.vector_store %arg21[%c1_193, %c0_194, %c0_195], %431 {strides = array<i32>} : memref<2x8x128xf32, #tpu.memory_space<vmem>>, vector<1x8x128xf32>,
    } else {
    }
    %c0 = arith.constant 0 : index
    %c0_1 = arith.constant 0 : index
    %c0_2 = arith.constant 0 : index
    %3 = vector.load %arg5[%c0, %c0_1, %c0_2] : memref<1x1x128xf32, #tpu.memory_space<vmem>>, vector<1x1x128xf32>
    %4 = vector.shape_cast %3 : vector<1x1x128xf32> to vector<1x128xf32>
    %c0_3 = arith.constant 0 : index
    %c0_4 = arith.constant 0 : index
    %c0_5 = arith.constant 0 : index
    %5 = vector.load %arg6[%c0_3, %c0_4, %c0_5] : memref<1x1x128xf32, #tpu.memory_space<vmem>>, vector<1x1x128xf32>
    %6 = vector.shape_cast %5 : vector<1x1x128xf32> to vector<1x128xf32>
    %c0_6 = arith.constant 0 : index
    %c0_7 = arith.constant 0 : index
    %c0_8 = arith.constant 0 : index
    %7 = vector.load %arg7[%c0_6, %c0_7, %c0_8] : memref<1x1x128xf32, #tpu.memory_space<vmem>>, vector<1x1x128xf32>
    %8 = vector.shape_cast %7 : vector<1x1x128xf32> to vector<1x128xf32>
    %c0_9 = arith.constant 0 : index
    %c0_10 = arith.constant 0 : index
    %c0_11 = arith.constant 0 : index
    %9 = vector.load %arg8[%c0_9, %c0_10, %c0_11] : memref<1x1x128xf32, #tpu.memory_space<vmem>>, vector<1x1x128xf32>
    %10 = vector.shape_cast %9 : vector<1x1x128xf32> to vector<1x128xf32>
    %c0_12 = arith.constant 0 : index
    %c0_13 = arith.constant 0 : index
    %c0_14 = arith.constant 0 : index
    %11 = vector.load %arg12[%c0_12, %c0_13, %c0_14] : memref<1x1x128xf32, #tpu.memory_space<vmem>>, vector<1x1x128xf32>
    %12 = vector.shape_cast %11 : vector<1x1x128xf32> to vector<1x128xf32>
    %c0_15 = arith.constant 0 : index
    %c0_16 = arith.constant 0 : index
    %c0_17 = arith.constant 0 : index
    %13 = vector.load %arg13[%c0_15, %c0_16, %c0_17] : memref<1x1x128xf32, #tpu.memory_space<vmem>>, vector<1x1x128xf32>
    %14 = vector.shape_cast %13 : vector<1x1x128xf32> to vector<1x128xf32>
    %c0_18 = arith.constant 0 : index
    %c0_19 = arith.constant 0 : index
    %c0_20 = arith.constant 0 : index
    %15 = vector.load %arg9[%c0_18, %c0_19, %c0_20] : memref<1x128x128xf32, #tpu.memory_space<vmem>>, vector<1x128x128xf32>
    %16 = vector.shape_cast %15 : vector<1x128x128xf32> to vector<128x128xf32>
    %c0_21 = arith.constant 0 : index
    %c0_22 = arith.constant 0 : index
    %c0_23 = arith.constant 0 : index
    %17 = vector.load %arg10[%c0_21, %c0_22, %c0_23] : memref<1x128x256xf32, #tpu.memory_space<vmem>>, vector<1x128x256xf32>
    %18 = vector.shape_cast %17 : vector<1x128x256xf32> to vector<128x256xf32>
    %c0_24 = arith.constant 0 : index
    %c0_25 = arith.constant 0 : index
    %c0_26 = arith.constant 0 : index
    %19 = vector.load %arg11[%c0_24, %c0_25, %c0_26] : memref<1x128x128xf32, #tpu.memory_space<vmem>>, vector<1x128x128xf32>
    %20 = vector.shape_cast %19 : vector<1x128x128xf32> to vector<128x128xf32>
    %c0_27 = arith.constant 0 : index
    %c0_28 = arith.constant 0 : index
    %c0_29 = arith.constant 0 : index
    %21 = vector.load %arg14[%c0_27, %c0_28, %c0_29] : memref<1x128x512xf32, #tpu.memory_space<vmem>>, vector<1x128x512xf32>
    %22 = vector.shape_cast %21 : vector<1x128x512xf32> to vector<128x512xf32>
    %c0_30 = arith.constant 0 : index
    %c0_31 = arith.constant 0 : index
    %c0_32 = arith.constant 0 : index
    %23 = vector.load %arg15[%c0_30, %c0_31, %c0_32] : memref<1x512x128xf32, #tpu.memory_space<vmem>>, vector<1x512x128xf32>
    %24 = vector.shape_cast %23 : vector<1x512x128xf32> to vector<512x128xf32>
    %c0_33 = arith.constant 0 : index
    %c0_34 = arith.constant 0 : index
    %c0_35 = arith.constant 0 : index
    %25 = vector.load %arg21[%c0_33, %c0_34, %c0_35] : memref<2x8x128xf32, #tpu.memory_space<vmem>>, vector<1x8x128xf32>
    %26 = vector.shape_cast %25 : vector<1x8x128xf32> to vector<8x128xf32>
    %c0_36 = arith.constant 0 : index
    %c0_37 = arith.constant 0 : index
    %c0_38 = arith.constant 0 : index
    %27 = vector.load %arg22[%c0_36, %c0_37, %c0_38] : memref<2x4x128xf32, #tpu.memory_space<vmem>>, vector<1x4x128xf32>
    %28 = vector.shape_cast %27 : vector<1x4x128xf32> to vector<4x128xf32>
    %cst = arith.constant dense<0.000000e+00> : vector<8xf32>
    %29 = vector.multi_reduction <add>, %26, %cst [1] : vector<8x128xf32> to vector<8xf32>
    %30 = vector.shape_cast %29 : vector<8xf32> to vector<8x1xf32>
    %cst_39 = arith.constant 1.280000e+02 : f32
    %31 = vector.broadcast %cst_39 : f32 to vector<8x1xf32>
    %32 = arith.divf %30, %31 : vector<8x1xf32>
    %33 = vector.broadcast %32 : vector<8x1xf32> to vector<8x128xf32>
    %34 = arith.subf %26, %33 : vector<8x128xf32>
    %35 = arith.mulf %34, %34 : vector<8x128xf32>
    %cst_40 = arith.constant dense<0.000000e+00> : vector<8xf32>
    %36 = vector.multi_reduction <add>, %35, %cst_40 [1] : vector<8x128xf32> to vector<8xf32>
    %37 = vector.shape_cast %36 : vector<8xf32> to vector<8x1xf32>
    %cst_41 = arith.constant 1.280000e+02 : f32
    %38 = vector.broadcast %cst_41 : f32 to vector<8x1xf32>
    %39 = arith.divf %37, %38 : vector<8x1xf32>
    %cst_42 = arith.constant 9.99999974E-6 : f32
    %40 = vector.broadcast %cst_42 : f32 to vector<8x1xf32>
    %41 = arith.addf %39, %40 : vector<8x1xf32>
    %42 = math.rsqrt %41 : vector<8x1xf32>
    %43 = vector.broadcast %42 : vector<8x1xf32> to vector<8x128xf32>
    %44 = arith.mulf %34, %43 : vector<8x128xf32>
    %45 = vector.broadcast %4 : vector<1x128xf32> to vector<8x128xf32>
    %46 = arith.mulf %44, %45 : vector<8x128xf32>
    %47 = vector.broadcast %6 : vector<1x128xf32> to vector<8x128xf32>
    %48 = arith.addf %46, %47 : vector<8x128xf32>
    %cst_43 = arith.constant dense<0.000000e+00> : vector<4xf32>
    %49 = vector.multi_reduction <add>, %28, %cst_43 [1] : vector<4x128xf32> to vector<4xf32>
    %50 = vector.shape_cast %49 : vector<4xf32> to vector<4x1xf32>
    %cst_44 = arith.constant 1.280000e+02 : f32
    %51 = vector.broadcast %cst_44 : f32 to vector<4x1xf32>
    %52 = arith.divf %50, %51 : vector<4x1xf32>
    %53 = vector.broadcast %52 : vector<4x1xf32> to vector<4x128xf32>
    %54 = arith.subf %28, %53 : vector<4x128xf32>
    %55 = arith.mulf %54, %54 : vector<4x128xf32>
    %cst_45 = arith.constant dense<0.000000e+00> : vector<4xf32>
    %56 = vector.multi_reduction <add>, %55, %cst_45 [1] : vector<4x128xf32> to vector<4xf32>
    %57 = vector.shape_cast %56 : vector<4xf32> to vector<4x1xf32>
    %cst_46 = arith.constant 1.280000e+02 : f32
    %58 = vector.broadcast %cst_46 : f32 to vector<4x1xf32>
    %59 = arith.divf %57, %58 : vector<4x1xf32>
    %cst_47 = arith.constant 9.99999974E-6 : f32
    %60 = vector.broadcast %cst_47 : f32 to vector<4x1xf32>
    %61 = arith.addf %59, %60 : vector<4x1xf32>
    %62 = math.rsqrt %61 : vector<4x1xf32>
    %63 = vector.broadcast %62 : vector<4x1xf32> to vector<4x128xf32>
    %64 = arith.mulf %54, %63 : vector<4x128xf32>
    %65 = vector.broadcast %8 : vector<1x128xf32> to vector<4x128xf32>
    %66 = arith.mulf %64, %65 : vector<4x128xf32>
    %67 = vector.broadcast %10 : vector<1x128xf32> to vector<4x128xf32>
    %68 = arith.addf %66, %67 : vector<4x128xf32>
    %cst_48 = arith.constant dense<0.000000e+00> : vector<4x128xf32>
    %69 = tpu.matmul %68, %16, %cst_48 {dimension_numbers = #tpu.dot_dimension_numbers<[1], [0], [0], [1], [0, 0, 1, 1], [], []>} : vector<4x128xf32>, vector<128x128xf32>, vector<4x128xf32> -> vector<4x128xf32>
    %cst_49 = arith.constant dense<0.000000e+00> : vector<8x256xf32>
    %70 = tpu.matmul %48, %18, %cst_49 {dimension_numbers = #tpu.dot_dimension_numbers<[1], [0], [0], [1], [0, 0, 1, 1], [], []>} : vector<8x128xf32>, vector<128x256xf32>, vector<8x256xf32> -> vector<8x256xf32>
    %cst_50 = arith.constant dense<0.000000e+00> : vector<4x256xf32>
    %71 = tpu.matmul %68, %18, %cst_50 {dimension_numbers = #tpu.dot_dimension_numbers<[1], [0], [0], [1], [0, 0, 1, 1], [], []>} : vector<4x128xf32>, vector<128x256xf32>, vector<4x256xf32> -> vector<4x256xf32>
    %cst_51 = arith.constant 0.000000e+00 : f32
    %72 = vector.broadcast %cst_51 : f32 to vector<4x128xf32>
    %73 = vector.extract_strided_slice %69 {offsets = [0, 0], sizes = [4, 64], strides = [1, 1]} : vector<4x128xf32> to vector<4x64xf32>
    %cst_52 = arith.constant 0.353553385 : f32
    %74 = vector.broadcast %cst_52 : f32 to vector<4x64xf32>
    %75 = arith.mulf %73, %74 : vector<4x64xf32>
    %76 = vector.extract_strided_slice %70 {offsets = [0, 0], sizes = [8, 64], strides = [1, 1]} : vector<8x256xf32> to vector<8x64xf32>
    %cst_53 = arith.constant 0.353553385 : f32
    %77 = vector.broadcast %cst_53 : f32 to vector<8x64xf32>
    %78 = arith.mulf %76, %77 : vector<8x64xf32>
    %79 = vector.extract_strided_slice %71 {offsets = [0, 0], sizes = [4, 64], strides = [1, 1]} : vector<4x256xf32> to vector<4x64xf32>
    %cst_54 = arith.constant 0.353553385 : f32
    %80 = vector.broadcast %cst_54 : f32 to vector<4x64xf32>
    %81 = arith.mulf %79, %80 : vector<4x64xf32>
    %82 = vector.extract_strided_slice %70 {offsets = [0, 128], sizes = [8, 64], strides = [1, 1]} : vector<8x256xf32> to vector<8x64xf32>
    %83 = vector.extract_strided_slice %71 {offsets = [0, 128], sizes = [4, 64], strides = [1, 1]} : vector<4x256xf32> to vector<4x64xf32>
    %cst_55 = arith.constant dense<0.000000e+00> : vector<4x8xf32>
    %84 = tpu.matmul %75, %78, %cst_55 {dimension_numbers = #tpu.dot_dimension_numbers<[1], [1], [0], [0], [0, 0, 1, 0], [], []>} : vector<4x64xf32>, vector<8x64xf32>, vector<4x8xf32> -> vector<4x8xf32>
    %cst_56 = arith.constant dense<0.000000e+00> : vector<4x4xf32>
    %85 = tpu.matmul %75, %81, %cst_56 {dimension_numbers = #tpu.dot_dimension_numbers<[1], [1], [0], [0], [0, 0, 1, 0], [], []>} : vector<4x64xf32>, vector<4x64xf32>, vector<4x4xf32> -> vector<4x4xf32>
    %cst_57 = arith.constant dense<0xFF800000> : vector<4xf32>
    %86 = vector.multi_reduction <maximumf>, %84, %cst_57 [1] : vector<4x8xf32> to vector<4xf32>
    %87 = vector.shape_cast %86 : vector<4xf32> to vector<4x1xf32>
    %cst_58 = arith.constant dense<0xFF800000> : vector<4xf32>
    %88 = vector.multi_reduction <maximumf>, %85, %cst_58 [1] : vector<4x4xf32> to vector<4xf32>
    %89 = vector.shape_cast %88 : vector<4xf32> to vector<4x1xf32>
    %90 = arith.maximumf %87, %89 : vector<4x1xf32>
    %91 = vector.broadcast %90 : vector<4x1xf32> to vector<4x8xf32>
    %92 = arith.subf %84, %91 : vector<4x8xf32>
    %93 = math.exp %92 : vector<4x8xf32>
    %94 = vector.broadcast %90 : vector<4x1xf32> to vector<4x4xf32>
    %95 = arith.subf %85, %94 : vector<4x4xf32>
    %96 = math.exp %95 : vector<4x4xf32>
    %cst_59 = arith.constant dense<0.000000e+00> : vector<4xf32>
    %97 = vector.multi_reduction <add>, %93, %cst_59 [1] : vector<4x8xf32> to vector<4xf32>
    %98 = vector.shape_cast %97 : vector<4xf32> to vector<4x1xf32>
    %cst_60 = arith.constant dense<0.000000e+00> : vector<4xf32>
    %99 = vector.multi_reduction <add>, %96, %cst_60 [1] : vector<4x4xf32> to vector<4xf32>
    %100 = vector.shape_cast %99 : vector<4xf32> to vector<4x1xf32>
    %101 = arith.addf %98, %100 : vector<4x1xf32>
    %102 = tpu.reciprocal %101 {approx = true} : vector<4x1xf32> -> vector<4x1xf32>
    %cst_61 = arith.constant dense<0.000000e+00> : vector<4x64xf32>
    %103 = tpu.matmul %93, %82, %cst_61 {dimension_numbers = #tpu.dot_dimension_numbers<[1], [0], [0], [1], [0, 0, 1, 1], [], []>} : vector<4x8xf32>, vector<8x64xf32>, vector<4x64xf32> -> vector<4x64xf32>
    %cst_62 = arith.constant dense<0.000000e+00> : vector<4x64xf32>
    %104 = tpu.matmul %96, %83, %cst_62 {dimension_numbers = #tpu.dot_dimension_numbers<[1], [0], [0], [1], [0, 0, 1, 1], [], []>} : vector<4x4xf32>, vector<4x64xf32>, vector<4x64xf32> -> vector<4x64xf32>
    %105 = arith.addf %103, %104 : vector<4x64xf32>
    %106 = vector.broadcast %102 : vector<4x1xf32> to vector<4x64xf32>
    %107 = arith.mulf %105, %106 : vector<4x64xf32>
    %108 = vector.extract_strided_slice %20 {offsets = [0, 0], sizes = [64, 128], strides = [1, 1]} : vector<128x128xf32> to vector<64x128xf32>
    %cst_63 = arith.constant dense<0.000000e+00> : vector<4x128xf32>
    %109 = tpu.matmul %107, %108, %cst_63 {dimension_numbers = #tpu.dot_dimension_numbers<[1], [0], [0], [1], [0, 0, 1, 1], [], []>} : vector<4x64xf32>, vector<64x128xf32>, vector<4x128xf32> -> vector<4x128xf32>
    %110 = arith.addf %72, %109 : vector<4x128xf32>
    %111 = vector.extract_strided_slice %69 {offsets = [0, 64], sizes = [4, 64], strides = [1, 1]} : vector<4x128xf32> to vector<4x64xf32>
    %cst_64 = arith.constant 0.353553385 : f32
    %112 = vector.broadcast %cst_64 : f32 to vector<4x64xf32>
    %113 = arith.mulf %111, %112 : vector<4x64xf32>
    %114 = vector.extract_strided_slice %70 {offsets = [0, 64], sizes = [8, 64], strides = [1, 1]} : vector<8x256xf32> to vector<8x64xf32>
    %cst_65 = arith.constant 0.353553385 : f32
    %115 = vector.broadcast %cst_65 : f32 to vector<8x64xf32>
    %116 = arith.mulf %114, %115 : vector<8x64xf32>
    %117 = vector.extract_strided_slice %71 {offsets = [0, 64], sizes = [4, 64], strides = [1, 1]} : vector<4x256xf32> to vector<4x64xf32>
    %cst_66 = arith.constant 0.353553385 : f32
    %118 = vector.broadcast %cst_66 : f32 to vector<4x64xf32>
    %119 = arith.mulf %117, %118 : vector<4x64xf32>
    %120 = vector.extract_strided_slice %70 {offsets = [0, 192], sizes = [8, 64], strides = [1, 1]} : vector<8x256xf32> to vector<8x64xf32>
    %121 = vector.extract_strided_slice %71 {offsets = [0, 192], sizes = [4, 64], strides = [1, 1]} : vector<4x256xf32> to vector<4x64xf32>
    %cst_67 = arith.constant dense<0.000000e+00> : vector<4x8xf32>
    %122 = tpu.matmul %113, %116, %cst_67 {dimension_numbers = #tpu.dot_dimension_numbers<[1], [1], [0], [0], [0, 0, 1, 0], [], []>} : vector<4x64xf32>, vector<8x64xf32>, vector<4x8xf32> -> vector<4x8xf32>
    %cst_68 = arith.constant dense<0.000000e+00> : vector<4x4xf32>
    %123 = tpu.matmul %113, %119, %cst_68 {dimension_numbers = #tpu.dot_dimension_numbers<[1], [1], [0], [0], [0, 0, 1, 0], [], []>} : vector<4x64xf32>, vector<4x64xf32>, vector<4x4xf32> -> vector<4x4xf32>
    %cst_69 = arith.constant dense<0xFF800000> : vector<4xf32>
    %124 = vector.multi_reduction <maximumf>, %122, %cst_69 [1] : vector<4x8xf32> to vector<4xf32>
    %125 = vector.shape_cast %124 : vector<4xf32> to vector<4x1xf32>
    %cst_70 = arith.constant dense<0xFF800000> : vector<4xf32>
    %126 = vector.multi_reduction <maximumf>, %123, %cst_70 [1] : vector<4x4xf32> to vector<4xf32>
    %127 = vector.shape_cast %126 : vector<4xf32> to vector<4x1xf32>
    %128 = arith.maximumf %125, %127 : vector<4x1xf32>
    %129 = vector.broadcast %128 : vector<4x1xf32> to vector<4x8xf32>
    %130 = arith.subf %122, %129 : vector<4x8xf32>
    %131 = math.exp %130 : vector<4x8xf32>
    %132 = vector.broadcast %128 : vector<4x1xf32> to vector<4x4xf32>
    %133 = arith.subf %123, %132 : vector<4x4xf32>
    %134 = math.exp %133 : vector<4x4xf32>
    %cst_71 = arith.constant dense<0.000000e+00> : vector<4xf32>
    %135 = vector.multi_reduction <add>, %131, %cst_71 [1] : vector<4x8xf32> to vector<4xf32>
    %136 = vector.shape_cast %135 : vector<4xf32> to vector<4x1xf32>
    %cst_72 = arith.constant dense<0.000000e+00> : vector<4xf32>
    %137 = vector.multi_reduction <add>, %134, %cst_72 [1] : vector<4x4xf32> to vector<4xf32>
    %138 = vector.shape_cast %137 : vector<4xf32> to vector<4x1xf32>
    %139 = arith.addf %136, %138 : vector<4x1xf32>
    %140 = tpu.reciprocal %139 {approx = true} : vector<4x1xf32> -> vector<4x1xf32>
    %cst_73 = arith.constant dense<0.000000e+00> : vector<4x64xf32>
    %141 = tpu.matmul %131, %120, %cst_73 {dimension_numbers = #tpu.dot_dimension_numbers<[1], [0], [0], [1], [0, 0, 1, 1], [], []>} : vector<4x8xf32>, vector<8x64xf32>, vector<4x64xf32> -> vector<4x64xf32>
    %cst_74 = arith.constant dense<0.000000e+00> : vector<4x64xf32>
    %142 = tpu.matmul %134, %121, %cst_74 {dimension_numbers = #tpu.dot_dimension_numbers<[1], [0], [0], [1], [0, 0, 1, 1], [], []>} : vector<4x4xf32>, vector<4x64xf32>, vector<4x64xf32> -> vector<4x64xf32>
    %143 = arith.addf %141, %142 : vector<4x64xf32>
    %144 = vector.broadcast %140 : vector<4x1xf32> to vector<4x64xf32>
    %145 = arith.mulf %143, %144 : vector<4x64xf32>
    %146 = vector.extract_strided_slice %20 {offsets = [64, 0], sizes = [64, 128], strides = [1, 1]} : vector<128x128xf32> to vector<64x128xf32>
    %cst_75 = arith.constant dense<0.000000e+00> : vector<4x128xf32>
    %147 = tpu.matmul %145, %146, %cst_75 {dimension_numbers = #tpu.dot_dimension_numbers<[1], [0], [0], [1], [0, 0, 1, 1], [], []>} : vector<4x64xf32>, vector<64x128xf32>, vector<4x128xf32> -> vector<4x128xf32>
    %148 = arith.addf %110, %147 : vector<4x128xf32>
    %149 = arith.addf %28, %148 : vector<4x128xf32>
    %cst_76 = arith.constant dense<0.000000e+00> : vector<4xf32>
    %150 = vector.multi_reduction <add>, %149, %cst_76 [1] : vector<4x128xf32> to vector<4xf32>
    %151 = vector.shape_cast %150 : vector<4xf32> to vector<4x1xf32>
    %cst_77 = arith.constant 1.280000e+02 : f32
    %152 = vector.broadcast %cst_77 : f32 to vector<4x1xf32>
    %153 = arith.divf %151, %152 : vector<4x1xf32>
    %154 = vector.broadcast %153 : vector<4x1xf32> to vector<4x128xf32>
    %155 = arith.subf %149, %154 : vector<4x128xf32>
    %156 = arith.mulf %155, %155 : vector<4x128xf32>
    %cst_78 = arith.constant dense<0.000000e+00> : vector<4xf32>
    %157 = vector.multi_reduction <add>, %156, %cst_78 [1] : vector<4x128xf32> to vector<4xf32>
    %158 = vector.shape_cast %157 : vector<4xf32> to vector<4x1xf32>
    %cst_79 = arith.constant 1.280000e+02 : f32
    %159 = vector.broadcast %cst_79 : f32 to vector<4x1xf32>
    %160 = arith.divf %158, %159 : vector<4x1xf32>
    %cst_80 = arith.constant 9.99999974E-6 : f32
    %161 = vector.broadcast %cst_80 : f32 to vector<4x1xf32>
    %162 = arith.addf %160, %161 : vector<4x1xf32>
    %163 = math.rsqrt %162 : vector<4x1xf32>
    %164 = vector.broadcast %163 : vector<4x1xf32> to vector<4x128xf32>
    %165 = arith.mulf %155, %164 : vector<4x128xf32>
    %166 = vector.broadcast %12 : vector<1x128xf32> to vector<4x128xf32>
    %167 = arith.mulf %165, %166 : vector<4x128xf32>
    %168 = vector.broadcast %14 : vector<1x128xf32> to vector<4x128xf32>
    %169 = arith.addf %167, %168 : vector<4x128xf32>
    %cst_81 = arith.constant dense<0.000000e+00> : vector<4x512xf32>
    %170 = tpu.matmul %169, %22, %cst_81 {dimension_numbers = #tpu.dot_dimension_numbers<[1], [0], [0], [1], [0, 0, 1, 1], [], []>} : vector<4x128xf32>, vector<128x512xf32>, vector<4x512xf32> -> vector<4x512xf32>
    %cst_82 = arith.constant 5.000000e-01 : f32
    %171 = vector.broadcast %cst_82 : f32 to vector<4x512xf32>
    %172 = arith.mulf %171, %170 : vector<4x512xf32>
    %cst_83 = arith.constant 0.707106769 : f32
    %173 = vector.broadcast %cst_83 : f32 to vector<4x512xf32>
    %174 = arith.mulf %170, %173 : vector<4x512xf32>
    %cst_84 = arith.constant 0.000000e+00 : f32
    %175 = vector.broadcast %cst_84 : f32 to vector<4x512xf32>
    %176 = arith.cmpf oge, %174, %175 : vector<4x512xf32>
    %cst_85 = arith.constant 1.000000e+00 : f32
    %cst_86 = arith.constant -1.000000e+00 : f32
    %177 = vector.broadcast %cst_85 : f32 to vector<4x512xf32>
    %178 = vector.broadcast %cst_86 : f32 to vector<4x512xf32>
    %179 = arith.select %176, %177, %178 : vector<4x512xi1>, vector<4x512xf32>
    %180 = math.absf %174 : vector<4x512xf32>
    %cst_87 = arith.constant 0.327591091 : f32
    %181 = vector.broadcast %cst_87 : f32 to vector<4x512xf32>
    %182 = arith.mulf %181, %180 : vector<4x512xf32>
    %cst_88 = arith.constant 1.000000e+00 : f32
    %183 = vector.broadcast %cst_88 : f32 to vector<4x512xf32>
    %184 = arith.addf %183, %182 : vector<4x512xf32>
    %cst_89 = arith.constant 1.000000e+00 : f32
    %185 = vector.broadcast %cst_89 : f32 to vector<4x512xf32>
    %186 = arith.divf %185, %184 : vector<4x512xf32>
    %cst_90 = arith.constant 1.06140542 : f32
    %187 = vector.broadcast %cst_90 : f32 to vector<4x512xf32>
    %188 = arith.mulf %187, %186 : vector<4x512xf32>
    %cst_91 = arith.constant -1.45315206 : f32
    %189 = vector.broadcast %cst_91 : f32 to vector<4x512xf32>
    %190 = arith.addf %188, %189 : vector<4x512xf32>
    %191 = arith.mulf %190, %186 : vector<4x512xf32>
    %cst_92 = arith.constant 1.42141378 : f32
    %192 = vector.broadcast %cst_92 : f32 to vector<4x512xf32>
    %193 = arith.addf %191, %192 : vector<4x512xf32>
    %194 = arith.mulf %193, %186 : vector<4x512xf32>
    %cst_93 = arith.constant -0.284496725 : f32
    %195 = vector.broadcast %cst_93 : f32 to vector<4x512xf32>
    %196 = arith.addf %194, %195 : vector<4x512xf32>
    %197 = arith.mulf %196, %186 : vector<4x512xf32>
    %cst_94 = arith.constant 0.254829586 : f32
    %198 = vector.broadcast %cst_94 : f32 to vector<4x512xf32>
    %199 = arith.addf %197, %198 : vector<4x512xf32>
    %200 = arith.mulf %199, %186 : vector<4x512xf32>
    %cst_95 = arith.constant 0.000000e+00 : f32
    %201 = vector.broadcast %cst_95 : f32 to vector<4x512xf32>
    %202 = arith.subf %201, %180 : vector<4x512xf32>
    %203 = arith.mulf %202, %180 : vector<4x512xf32>
    %204 = math.exp %203 : vector<4x512xf32>
    %205 = arith.mulf %200, %204 : vector<4x512xf32>
    %cst_96 = arith.constant 1.000000e+00 : f32
    %206 = vector.broadcast %cst_96 : f32 to vector<4x512xf32>
    %207 = arith.subf %206, %205 : vector<4x512xf32>
    %208 = arith.mulf %179, %207 : vector<4x512xf32>
    %cst_97 = arith.constant 1.000000e+00 : f32
    %209 = vector.broadcast %cst_97 : f32 to vector<4x512xf32>
    %210 = arith.addf %209, %208 : vector<4x512xf32>
    %211 = arith.mulf %172, %210 : vector<4x512xf32>
    %cst_98 = arith.constant dense<0.000000e+00> : vector<4x128xf32>
    %212 = tpu.matmul %211, %24, %cst_98 {dimension_numbers = #tpu.dot_dimension_numbers<[1], [0], [0], [1], [0, 0, 1, 1], [], []>} : vector<4x512xf32>, vector<512x128xf32>, vector<4x128xf32> -> vector<4x128xf32>
    %213 = arith.addf %149, %212 : vector<4x128xf32>
    %c0_99 = arith.constant 0 : index
    %c0_100 = arith.constant 0 : index
    %c0_101 = arith.constant 0 : index
    %214 = vector.load %arg22[%c0_99, %c0_100, %c0_101] : memref<2x4x128xf32, #tpu.memory_space<vmem>>, vector<1x4x128xf32>
    %215 = vector.shape_cast %214 : vector<1x4x128xf32> to vector<4x128xf32>
    %216 = vector.shape_cast %213 : vector<4x128xf32> to vector<1x4x128xf32>
    tpu.vector_store %arg22[%c0_99, %c0_100, %c0_101], %216 {strides = array<i32>} : memref<2x4x128xf32, #tpu.memory_space<vmem>>, vector<1x4x128xf32>,
    %c1 = arith.constant 1 : index
    %c0_102 = arith.constant 0 : index
    %c0_103 = arith.constant 0 : index
    %217 = vector.load %arg21[%c1, %c0_102, %c0_103] : memref<2x8x128xf32, #tpu.memory_space<vmem>>, vector<1x8x128xf32>
    %218 = vector.shape_cast %217 : vector<1x8x128xf32> to vector<8x128xf32>
    %c1_104 = arith.constant 1 : index
    %c0_105 = arith.constant 0 : index
    %c0_106 = arith.constant 0 : index
    %219 = vector.load %arg22[%c1_104, %c0_105, %c0_106] : memref<2x4x128xf32, #tpu.memory_space<vmem>>, vector<1x4x128xf32>
    %220 = vector.shape_cast %219 : vector<1x4x128xf32> to vector<4x128xf32>
    %cst_107 = arith.constant dense<0.000000e+00> : vector<8xf32>
    %221 = vector.multi_reduction <add>, %218, %cst_107 [1] : vector<8x128xf32> to vector<8xf32>
    %222 = vector.shape_cast %221 : vector<8xf32> to vector<8x1xf32>
    %cst_108 = arith.constant 1.280000e+02 : f32
    %223 = vector.broadcast %cst_108 : f32 to vector<8x1xf32>
    %224 = arith.divf %222, %223 : vector<8x1xf32>
    %225 = vector.broadcast %224 : vector<8x1xf32> to vector<8x128xf32>
    %226 = arith.subf %218, %225 : vector<8x128xf32>
    %227 = arith.mulf %226, %226 : vector<8x128xf32>
    %cst_109 = arith.constant dense<0.000000e+00> : vector<8xf32>
    %228 = vector.multi_reduction <add>, %227, %cst_109 [1] : vector<8x128xf32> to vector<8xf32>
    %229 = vector.shape_cast %228 : vector<8xf32> to vector<8x1xf32>
    %cst_110 = arith.constant 1.280000e+02 : f32
    %230 = vector.broadcast %cst_110 : f32 to vector<8x1xf32>
    %231 = arith.divf %229, %230 : vector<8x1xf32>
    %cst_111 = arith.constant 9.99999974E-6 : f32
    %232 = vector.broadcast %cst_111 : f32 to vector<8x1xf32>
    %233 = arith.addf %231, %232 : vector<8x1xf32>
    %234 = math.rsqrt %233 : vector<8x1xf32>
    %235 = vector.broadcast %234 : vector<8x1xf32> to vector<8x128xf32>
    %236 = arith.mulf %226, %235 : vector<8x128xf32>
    %237 = vector.broadcast %4 : vector<1x128xf32> to vector<8x128xf32>
    %238 = arith.mulf %236, %237 : vector<8x128xf32>
    %239 = vector.broadcast %6 : vector<1x128xf32> to vector<8x128xf32>
    %240 = arith.addf %238, %239 : vector<8x128xf32>
    %cst_112 = arith.constant dense<0.000000e+00> : vector<4xf32>
    %241 = vector.multi_reduction <add>, %220, %cst_112 [1] : vector<4x128xf32> to vector<4xf32>
    %242 = vector.shape_cast %241 : vector<4xf32> to vector<4x1xf32>
    %cst_113 = arith.constant 1.280000e+02 : f32
    %243 = vector.broadcast %cst_113 : f32 to vector<4x1xf32>
    %244 = arith.divf %242, %243 : vector<4x1xf32>
    %245 = vector.broadcast %244 : vector<4x1xf32> to vector<4x128xf32>
    %246 = arith.subf %220, %245 : vector<4x128xf32>
    %247 = arith.mulf %246, %246 : vector<4x128xf32>
    %cst_114 = arith.constant dense<0.000000e+00> : vector<4xf32>
    %248 = vector.multi_reduction <add>, %247, %cst_114 [1] : vector<4x128xf32> to vector<4xf32>
    %249 = vector.shape_cast %248 : vector<4xf32> to vector<4x1xf32>
    %cst_115 = arith.constant 1.280000e+02 : f32
    %250 = vector.broadcast %cst_115 : f32 to vector<4x1xf32>
    %251 = arith.divf %249, %250 : vector<4x1xf32>
    %cst_116 = arith.constant 9.99999974E-6 : f32
    %252 = vector.broadcast %cst_116 : f32 to vector<4x1xf32>
    %253 = arith.addf %251, %252 : vector<4x1xf32>
    %254 = math.rsqrt %253 : vector<4x1xf32>
    %255 = vector.broadcast %254 : vector<4x1xf32> to vector<4x128xf32>
    %256 = arith.mulf %246, %255 : vector<4x128xf32>
    %257 = vector.broadcast %8 : vector<1x128xf32> to vector<4x128xf32>
    %258 = arith.mulf %256, %257 : vector<4x128xf32>
    %259 = vector.broadcast %10 : vector<1x128xf32> to vector<4x128xf32>
    %260 = arith.addf %258, %259 : vector<4x128xf32>
    %cst_117 = arith.constant dense<0.000000e+00> : vector<4x128xf32>
    %261 = tpu.matmul %260, %16, %cst_117 {dimension_numbers = #tpu.dot_dimension_numbers<[1], [0], [0], [1], [0, 0, 1, 1], [], []>} : vector<4x128xf32>, vector<128x128xf32>, vector<4x128xf32> -> vector<4x128xf32>
    %cst_118 = arith.constant dense<0.000000e+00> : vector<8x256xf32>
    %262 = tpu.matmul %240, %18, %cst_118 {dimension_numbers = #tpu.dot_dimension_numbers<[1], [0], [0], [1], [0, 0, 1, 1], [], []>} : vector<8x128xf32>, vector<128x256xf32>, vector<8x256xf32> -> vector<8x256xf32>
    %cst_119 = arith.constant dense<0.000000e+00> : vector<4x256xf32>
    %263 = tpu.matmul %260, %18, %cst_119 {dimension_numbers = #tpu.dot_dimension_numbers<[1], [0], [0], [1], [0, 0, 1, 1], [], []>} : vector<4x128xf32>, vector<128x256xf32>, vector<4x256xf32> -> vector<4x256xf32>
    %cst_120 = arith.constant 0.000000e+00 : f32
    %264 = vector.broadcast %cst_120 : f32 to vector<4x128xf32>
    %265 = vector.extract_strided_slice %261 {offsets = [0, 0], sizes = [4, 64], strides = [1, 1]} : vector<4x128xf32> to vector<4x64xf32>
    %cst_121 = arith.constant 0.353553385 : f32
    %266 = vector.broadcast %cst_121 : f32 to vector<4x64xf32>
    %267 = arith.mulf %265, %266 : vector<4x64xf32>
    %268 = vector.extract_strided_slice %262 {offsets = [0, 0], sizes = [8, 64], strides = [1, 1]} : vector<8x256xf32> to vector<8x64xf32>
    %cst_122 = arith.constant 0.353553385 : f32
    %269 = vector.broadcast %cst_122 : f32 to vector<8x64xf32>
    %270 = arith.mulf %268, %269 : vector<8x64xf32>
    %271 = vector.extract_strided_slice %263 {offsets = [0, 0], sizes = [4, 64], strides = [1, 1]} : vector<4x256xf32> to vector<4x64xf32>
    %cst_123 = arith.constant 0.353553385 : f32
    %272 = vector.broadcast %cst_123 : f32 to vector<4x64xf32>
    %273 = arith.mulf %271, %272 : vector<4x64xf32>
    %274 = vector.extract_strided_slice %262 {offsets = [0, 128], sizes = [8, 64], strides = [1, 1]} : vector<8x256xf32> to vector<8x64xf32>
    %275 = vector.extract_strided_slice %263 {offsets = [0, 128], sizes = [4, 64], strides = [1, 1]} : vector<4x256xf32> to vector<4x64xf32>
    %cst_124 = arith.constant dense<0.000000e+00> : vector<4x8xf32>
    %276 = tpu.matmul %267, %270, %cst_124 {dimension_numbers = #tpu.dot_dimension_numbers<[1], [1], [0], [0], [0, 0, 1, 0], [], []>} : vector<4x64xf32>, vector<8x64xf32>, vector<4x8xf32> -> vector<4x8xf32>
    %cst_125 = arith.constant dense<0.000000e+00> : vector<4x4xf32>
    %277 = tpu.matmul %267, %273, %cst_125 {dimension_numbers = #tpu.dot_dimension_numbers<[1], [1], [0], [0], [0, 0, 1, 0], [], []>} : vector<4x64xf32>, vector<4x64xf32>, vector<4x4xf32> -> vector<4x4xf32>
    %cst_126 = arith.constant dense<0xFF800000> : vector<4xf32>
    %278 = vector.multi_reduction <maximumf>, %276, %cst_126 [1] : vector<4x8xf32> to vector<4xf32>
    %279 = vector.shape_cast %278 : vector<4xf32> to vector<4x1xf32>
    %cst_127 = arith.constant dense<0xFF800000> : vector<4xf32>
    %280 = vector.multi_reduction <maximumf>, %277, %cst_127 [1] : vector<4x4xf32> to vector<4xf32>
    %281 = vector.shape_cast %280 : vector<4xf32> to vector<4x1xf32>
    %282 = arith.maximumf %279, %281 : vector<4x1xf32>
    %283 = vector.broadcast %282 : vector<4x1xf32> to vector<4x8xf32>
    %284 = arith.subf %276, %283 : vector<4x8xf32>
    %285 = math.exp %284 : vector<4x8xf32>
    %286 = vector.broadcast %282 : vector<4x1xf32> to vector<4x4xf32>
    %287 = arith.subf %277, %286 : vector<4x4xf32>
    %288 = math.exp %287 : vector<4x4xf32>
    %cst_128 = arith.constant dense<0.000000e+00> : vector<4xf32>
    %289 = vector.multi_reduction <add>, %285, %cst_128 [1] : vector<4x8xf32> to vector<4xf32>
    %290 = vector.shape_cast %289 : vector<4xf32> to vector<4x1xf32>
    %cst_129 = arith.constant dense<0.000000e+00> : vector<4xf32>
    %291 = vector.multi_reduction <add>, %288, %cst_129 [1] : vector<4x4xf32> to vector<4xf32>
    %292 = vector.shape_cast %291 : vector<4xf32> to vector<4x1xf32>
    %293 = arith.addf %290, %292 : vector<4x1xf32>
    %294 = tpu.reciprocal %293 {approx = true} : vector<4x1xf32> -> vector<4x1xf32>
    %cst_130 = arith.constant dense<0.000000e+00> : vector<4x64xf32>
    %295 = tpu.matmul %285, %274, %cst_130 {dimension_numbers = #tpu.dot_dimension_numbers<[1], [0], [0], [1], [0, 0, 1, 1], [], []>} : vector<4x8xf32>, vector<8x64xf32>, vector<4x64xf32> -> vector<4x64xf32>
    %cst_131 = arith.constant dense<0.000000e+00> : vector<4x64xf32>
    %296 = tpu.matmul %288, %275, %cst_131 {dimension_numbers = #tpu.dot_dimension_numbers<[1], [0], [0], [1], [0, 0, 1, 1], [], []>} : vector<4x4xf32>, vector<4x64xf32>, vector<4x64xf32> -> vector<4x64xf32>
    %297 = arith.addf %295, %296 : vector<4x64xf32>
    %298 = vector.broadcast %294 : vector<4x1xf32> to vector<4x64xf32>
    %299 = arith.mulf %297, %298 : vector<4x64xf32>
    %300 = vector.extract_strided_slice %20 {offsets = [0, 0], sizes = [64, 128], strides = [1, 1]} : vector<128x128xf32> to vector<64x128xf32>
    %cst_132 = arith.constant dense<0.000000e+00> : vector<4x128xf32>
    %301 = tpu.matmul %299, %300, %cst_132 {dimension_numbers = #tpu.dot_dimension_numbers<[1], [0], [0], [1], [0, 0, 1, 1], [], []>} : vector<4x64xf32>, vector<64x128xf32>, vector<4x128xf32> -> vector<4x128xf32>
    %302 = arith.addf %264, %301 : vector<4x128xf32>
    %303 = vector.extract_strided_slice %261 {offsets = [0, 64], sizes = [4, 64], strides = [1, 1]} : vector<4x128xf32> to vector<4x64xf32>
    %cst_133 = arith.constant 0.353553385 : f32
    %304 = vector.broadcast %cst_133 : f32 to vector<4x64xf32>
    %305 = arith.mulf %303, %304 : vector<4x64xf32>
    %306 = vector.extract_strided_slice %262 {offsets = [0, 64], sizes = [8, 64], strides = [1, 1]} : vector<8x256xf32> to vector<8x64xf32>
    %cst_134 = arith.constant 0.353553385 : f32
    %307 = vector.broadcast %cst_134 : f32 to vector<8x64xf32>
    %308 = arith.mulf %306, %307 : vector<8x64xf32>
    %309 = vector.extract_strided_slice %263 {offsets = [0, 64], sizes = [4, 64], strides = [1, 1]} : vector<4x256xf32> to vector<4x64xf32>
    %cst_135 = arith.constant 0.353553385 : f32
    %310 = vector.broadcast %cst_135 : f32 to vector<4x64xf32>
    %311 = arith.mulf %309, %310 : vector<4x64xf32>
    %312 = vector.extract_strided_slice %262 {offsets = [0, 192], sizes = [8, 64], strides = [1, 1]} : vector<8x256xf32> to vector<8x64xf32>
    %313 = vector.extract_strided_slice %263 {offsets = [0, 192], sizes = [4, 64], strides = [1, 1]} : vector<4x256xf32> to vector<4x64xf32>
    %cst_136 = arith.constant dense<0.000000e+00> : vector<4x8xf32>
    %314 = tpu.matmul %305, %308, %cst_136 {dimension_numbers = #tpu.dot_dimension_numbers<[1], [1], [0], [0], [0, 0, 1, 0], [], []>} : vector<4x64xf32>, vector<8x64xf32>, vector<4x8xf32> -> vector<4x8xf32>
    %cst_137 = arith.constant dense<0.000000e+00> : vector<4x4xf32>
    %315 = tpu.matmul %305, %311, %cst_137 {dimension_numbers = #tpu.dot_dimension_numbers<[1], [1], [0], [0], [0, 0, 1, 0], [], []>} : vector<4x64xf32>, vector<4x64xf32>, vector<4x4xf32> -> vector<4x4xf32>
    %cst_138 = arith.constant dense<0xFF800000> : vector<4xf32>
    %316 = vector.multi_reduction <maximumf>, %314, %cst_138 [1] : vector<4x8xf32> to vector<4xf32>
    %317 = vector.shape_cast %316 : vector<4xf32> to vector<4x1xf32>
    %cst_139 = arith.constant dense<0xFF800000> : vector<4xf32>
    %318 = vector.multi_reduction <maximumf>, %315, %cst_139 [1] : vector<4x4xf32> to vector<4xf32>
    %319 = vector.shape_cast %318 : vector<4xf32> to vector<4x1xf32>
    %320 = arith.maximumf %317, %319 : vector<4x1xf32>
    %321 = vector.broadcast %320 : vector<4x1xf32> to vector<4x8xf32>
    %322 = arith.subf %314, %321 : vector<4x8xf32>
    %323 = math.exp %322 : vector<4x8xf32>
    %324 = vector.broadcast %320 : vector<4x1xf32> to vector<4x4xf32>
    %325 = arith.subf %315, %324 : vector<4x4xf32>
    %326 = math.exp %325 : vector<4x4xf32>
    %cst_140 = arith.constant dense<0.000000e+00> : vector<4xf32>
    %327 = vector.multi_reduction <add>, %323, %cst_140 [1] : vector<4x8xf32> to vector<4xf32>
    %328 = vector.shape_cast %327 : vector<4xf32> to vector<4x1xf32>
    %cst_141 = arith.constant dense<0.000000e+00> : vector<4xf32>
    %329 = vector.multi_reduction <add>, %326, %cst_141 [1] : vector<4x4xf32> to vector<4xf32>
    %330 = vector.shape_cast %329 : vector<4xf32> to vector<4x1xf32>
    %331 = arith.addf %328, %330 : vector<4x1xf32>
    %332 = tpu.reciprocal %331 {approx = true} : vector<4x1xf32> -> vector<4x1xf32>
    %cst_142 = arith.constant dense<0.000000e+00> : vector<4x64xf32>
    %333 = tpu.matmul %323, %312, %cst_142 {dimension_numbers = #tpu.dot_dimension_numbers<[1], [0], [0], [1], [0, 0, 1, 1], [], []>} : vector<4x8xf32>, vector<8x64xf32>, vector<4x64xf32> -> vector<4x64xf32>
    %cst_143 = arith.constant dense<0.000000e+00> : vector<4x64xf32>
    %334 = tpu.matmul %326, %313, %cst_143 {dimension_numbers = #tpu.dot_dimension_numbers<[1], [0], [0], [1], [0, 0, 1, 1], [], []>} : vector<4x4xf32>, vector<4x64xf32>, vector<4x64xf32> -> vector<4x64xf32>
    %335 = arith.addf %333, %334 : vector<4x64xf32>
    %336 = vector.broadcast %332 : vector<4x1xf32> to vector<4x64xf32>
    %337 = arith.mulf %335, %336 : vector<4x64xf32>
    %338 = vector.extract_strided_slice %20 {offsets = [64, 0], sizes = [64, 128], strides = [1, 1]} : vector<128x128xf32> to vector<64x128xf32>
    %cst_144 = arith.constant dense<0.000000e+00> : vector<4x128xf32>
    %339 = tpu.matmul %337, %338, %cst_144 {dimension_numbers = #tpu.dot_dimension_numbers<[1], [0], [0], [1], [0, 0, 1, 1], [], []>} : vector<4x64xf32>, vector<64x128xf32>, vector<4x128xf32> -> vector<4x128xf32>
    %340 = arith.addf %302, %339 : vector<4x128xf32>
    %341 = arith.addf %220, %340 : vector<4x128xf32>
    %cst_145 = arith.constant dense<0.000000e+00> : vector<4xf32>
    %342 = vector.multi_reduction <add>, %341, %cst_145 [1] : vector<4x128xf32> to vector<4xf32>
    %343 = vector.shape_cast %342 : vector<4xf32> to vector<4x1xf32>
    %cst_146 = arith.constant 1.280000e+02 : f32
    %344 = vector.broadcast %cst_146 : f32 to vector<4x1xf32>
    %345 = arith.divf %343, %344 : vector<4x1xf32>
    %346 = vector.broadcast %345 : vector<4x1xf32> to vector<4x128xf32>
    %347 = arith.subf %341, %346 : vector<4x128xf32>
    %348 = arith.mulf %347, %347 : vector<4x128xf32>
    %cst_147 = arith.constant dense<0.000000e+00> : vector<4xf32>
    %349 = vector.multi_reduction <add>, %348, %cst_147 [1] : vector<4x128xf32> to vector<4xf32>
    %350 = vector.shape_cast %349 : vector<4xf32> to vector<4x1xf32>
    %cst_148 = arith.constant 1.280000e+02 : f32
    %351 = vector.broadcast %cst_148 : f32 to vector<4x1xf32>
    %352 = arith.divf %350, %351 : vector<4x1xf32>
    %cst_149 = arith.constant 9.99999974E-6 : f32
    %353 = vector.broadcast %cst_149 : f32 to vector<4x1xf32>
    %354 = arith.addf %352, %353 : vector<4x1xf32>
    %355 = math.rsqrt %354 : vector<4x1xf32>
    %356 = vector.broadcast %355 : vector<4x1xf32> to vector<4x128xf32>
    %357 = arith.mulf %347, %356 : vector<4x128xf32>
    %358 = vector.broadcast %12 : vector<1x128xf32> to vector<4x128xf32>
    %359 = arith.mulf %357, %358 : vector<4x128xf32>
    %360 = vector.broadcast %14 : vector<1x128xf32> to vector<4x128xf32>
    %361 = arith.addf %359, %360 : vector<4x128xf32>
    %cst_150 = arith.constant dense<0.000000e+00> : vector<4x512xf32>
    %362 = tpu.matmul %361, %22, %cst_150 {dimension_numbers = #tpu.dot_dimension_numbers<[1], [0], [0], [1], [0, 0, 1, 1], [], []>} : vector<4x128xf32>, vector<128x512xf32>, vector<4x512xf32> -> vector<4x512xf32>
    %cst_151 = arith.constant 5.000000e-01 : f32
    %363 = vector.broadcast %cst_151 : f32 to vector<4x512xf32>
    %364 = arith.mulf %363, %362 : vector<4x512xf32>
    %cst_152 = arith.constant 0.707106769 : f32
    %365 = vector.broadcast %cst_152 : f32 to vector<4x512xf32>
    %366 = arith.mulf %362, %365 : vector<4x512xf32>
    %cst_153 = arith.constant 0.000000e+00 : f32
    %367 = vector.broadcast %cst_153 : f32 to vector<4x512xf32>
    %368 = arith.cmpf oge, %366, %367 : vector<4x512xf32>
    %cst_154 = arith.constant 1.000000e+00 : f32
    %cst_155 = arith.constant -1.000000e+00 : f32
    %369 = vector.broadcast %cst_154 : f32 to vector<4x512xf32>
    %370 = vector.broadcast %cst_155 : f32 to vector<4x512xf32>
    %371 = arith.select %368, %369, %370 : vector<4x512xi1>, vector<4x512xf32>
    %372 = math.absf %366 : vector<4x512xf32>
    %cst_156 = arith.constant 0.327591091 : f32
    %373 = vector.broadcast %cst_156 : f32 to vector<4x512xf32>
    %374 = arith.mulf %373, %372 : vector<4x512xf32>
    %cst_157 = arith.constant 1.000000e+00 : f32
    %375 = vector.broadcast %cst_157 : f32 to vector<4x512xf32>
    %376 = arith.addf %375, %374 : vector<4x512xf32>
    %cst_158 = arith.constant 1.000000e+00 : f32
    %377 = vector.broadcast %cst_158 : f32 to vector<4x512xf32>
    %378 = arith.divf %377, %376 : vector<4x512xf32>
    %cst_159 = arith.constant 1.06140542 : f32
    %379 = vector.broadcast %cst_159 : f32 to vector<4x512xf32>
    %380 = arith.mulf %379, %378 : vector<4x512xf32>
    %cst_160 = arith.constant -1.45315206 : f32
    %381 = vector.broadcast %cst_160 : f32 to vector<4x512xf32>
    %382 = arith.addf %380, %381 : vector<4x512xf32>
    %383 = arith.mulf %382, %378 : vector<4x512xf32>
    %cst_161 = arith.constant 1.42141378 : f32
    %384 = vector.broadcast %cst_161 : f32 to vector<4x512xf32>
    %385 = arith.addf %383, %384 : vector<4x512xf32>
    %386 = arith.mulf %385, %378 : vector<4x512xf32>
    %cst_162 = arith.constant -0.284496725 : f32
    %387 = vector.broadcast %cst_162 : f32 to vector<4x512xf32>
    %388 = arith.addf %386, %387 : vector<4x512xf32>
    %389 = arith.mulf %388, %378 : vector<4x512xf32>
    %cst_163 = arith.constant 0.254829586 : f32
    %390 = vector.broadcast %cst_163 : f32 to vector<4x512xf32>
    %391 = arith.addf %389, %390 : vector<4x512xf32>
    %392 = arith.mulf %391, %378 : vector<4x512xf32>
    %cst_164 = arith.constant 0.000000e+00 : f32
    %393 = vector.broadcast %cst_164 : f32 to vector<4x512xf32>
    %394 = arith.subf %393, %372 : vector<4x512xf32>
    %395 = arith.mulf %394, %372 : vector<4x512xf32>
    %396 = math.exp %395 : vector<4x512xf32>
    %397 = arith.mulf %392, %396 : vector<4x512xf32>
    %cst_165 = arith.constant 1.000000e+00 : f32
    %398 = vector.broadcast %cst_165 : f32 to vector<4x512xf32>
    %399 = arith.subf %398, %397 : vector<4x512xf32>
    %400 = arith.mulf %371, %399 : vector<4x512xf32>
    %cst_166 = arith.constant 1.000000e+00 : f32
    %401 = vector.broadcast %cst_166 : f32 to vector<4x512xf32>
    %402 = arith.addf %401, %400 : vector<4x512xf32>
    %403 = arith.mulf %364, %402 : vector<4x512xf32>
    %cst_167 = arith.constant dense<0.000000e+00> : vector<4x128xf32>
    %404 = tpu.matmul %403, %24, %cst_167 {dimension_numbers = #tpu.dot_dimension_numbers<[1], [0], [0], [1], [0, 0, 1, 1], [], []>} : vector<4x512xf32>, vector<512x128xf32>, vector<4x128xf32> -> vector<4x128xf32>
    %405 = arith.addf %341, %404 : vector<4x128xf32>
    %c1_168 = arith.constant 1 : index
    %c0_169 = arith.constant 0 : index
    %c0_170 = arith.constant 0 : index
    %406 = vector.load %arg22[%c1_168, %c0_169, %c0_170] : memref<2x4x128xf32, #tpu.memory_space<vmem>>, vector<1x4x128xf32>
    %407 = vector.shape_cast %406 : vector<1x4x128xf32> to vector<4x128xf32>
    %408 = vector.shape_cast %405 : vector<4x128xf32> to vector<1x4x128xf32>
    tpu.vector_store %arg22[%c1_168, %c0_169, %c0_170], %408 {strides = array<i32>} : memref<2x4x128xf32, #tpu.memory_space<vmem>>, vector<1x4x128xf32>,
    %c3_i32 = arith.constant 3 : i32
    %409 = arith.cmpi eq, %arg0, %c3_i32 : i32
    %410 = arith.extui %409 : i1 to i32
    %c0_i32_171 = arith.constant 0 : i32
    %411 = arith.cmpi ne, %410, %c0_i32_171 : i32
    scf.if %411 {
      %c0_172 = arith.constant 0 : index
      %c0_173 = arith.constant 0 : index
      %412 = vector.load %arg16[%c0_172, %c0_173] : memref<128x128xf32, #tpu.memory_space<vmem>>, vector<128x128xf32>
      %c0_174 = arith.constant 0 : index
      %c0_175 = arith.constant 0 : index
      %413 = vector.load %arg17[%c0_174, %c0_175] : memref<1x128xf32, #tpu.memory_space<vmem>>, vector<1x128xf32>
      %c0_176 = arith.constant 0 : index
      %c0_177 = arith.constant 0 : index
      %414 = vector.load %arg18[%c0_176, %c0_177] : memref<1x128xf32, #tpu.memory_space<vmem>>, vector<1x128xf32>
      %c0_178 = arith.constant 0 : index
      %c0_179 = arith.constant 0 : index
      %415 = vector.load %arg19[%c0_178, %c0_179] : memref<1x128xf32, #tpu.memory_space<vmem>>, vector<1x128xf32>
      %c0_180 = arith.constant 0 : index
      %c0_181 = arith.constant 0 : index
      %c0_182 = arith.constant 0 : index
      %416 = vector.load %arg22[%c0_180, %c0_181, %c0_182] : memref<2x4x128xf32, #tpu.memory_space<vmem>>, vector<1x4x128xf32>
      %417 = vector.shape_cast %416 : vector<1x4x128xf32> to vector<4x128xf32>
      %cst_183 = arith.constant dense<0.000000e+00> : vector<4x128xf32>
      %418 = tpu.matmul %417, %412, %cst_183 {dimension_numbers = #tpu.dot_dimension_numbers<[1], [0], [0], [1], [0, 0, 1, 1], [], []>} : vector<4x128xf32>, vector<128x128xf32>, vector<4x128xf32> -> vector<4x128xf32>
      %419 = vector.broadcast %413 : vector<1x128xf32> to vector<4x128xf32>
      %420 = arith.addf %418, %419 : vector<4x128xf32>
      %cst_184 = arith.constant dense<0.000000e+00> : vector<4xf32>
      %421 = vector.multi_reduction <add>, %420, %cst_184 [1] : vector<4x128xf32> to vector<4xf32>
      %422 = vector.shape_cast %421 : vector<4xf32> to vector<4x1xf32>
      %cst_185 = arith.constant 1.280000e+02 : f32
      %423 = vector.broadcast %cst_185 : f32 to vector<4x1xf32>
      %424 = arith.divf %422, %423 : vector<4x1xf32>
      %425 = vector.broadcast %424 : vector<4x1xf32> to vector<4x128xf32>
      %426 = arith.subf %420, %425 : vector<4x128xf32>
      %427 = arith.mulf %426, %426 : vector<4x128xf32>
      %cst_186 = arith.constant dense<0.000000e+00> : vector<4xf32>
      %428 = vector.multi_reduction <add>, %427, %cst_186 [1] : vector<4x128xf32> to vector<4xf32>
      %429 = vector.shape_cast %428 : vector<4xf32> to vector<4x1xf32>
      %cst_187 = arith.constant 1.280000e+02 : f32
      %430 = vector.broadcast %cst_187 : f32 to vector<4x1xf32>
      %431 = arith.divf %429, %430 : vector<4x1xf32>
      %cst_188 = arith.constant 9.99999974E-6 : f32
      %432 = vector.broadcast %cst_188 : f32 to vector<4x1xf32>
      %433 = arith.addf %431, %432 : vector<4x1xf32>
      %434 = math.rsqrt %433 : vector<4x1xf32>
      %435 = vector.broadcast %434 : vector<4x1xf32> to vector<4x128xf32>
      %436 = arith.mulf %426, %435 : vector<4x128xf32>
      %437 = vector.broadcast %414 : vector<1x128xf32> to vector<4x128xf32>
      %438 = arith.mulf %436, %437 : vector<4x128xf32>
      %439 = vector.broadcast %415 : vector<1x128xf32> to vector<4x128xf32>
      %440 = arith.addf %438, %439 : vector<4x128xf32>
      %c0_189 = arith.constant 0 : index
      %c0_190 = arith.constant 0 : index
      %c0_191 = arith.constant 0 : index
      %441 = vector.load %arg20[%c0_189, %c0_190, %c0_191] : memref<2x4x128xf32, #tpu.memory_space<vmem>>, vector<1x4x128xf32>
      %442 = vector.shape_cast %441 : vector<1x4x128xf32> to vector<4x128xf32>
      %443 = vector.shape_cast %440 : vector<4x128xf32> to vector<1x4x128xf32>
      tpu.vector_store %arg20[%c0_189, %c0_190, %c0_191], %443 {strides = array<i32>} : memref<2x4x128xf32, #tpu.memory_space<vmem>>, vector<1x4x128xf32>,
      %c1_192 = arith.constant 1 : index
      %c0_193 = arith.constant 0 : index
      %c0_194 = arith.constant 0 : index
      %444 = vector.load %arg22[%c1_192, %c0_193, %c0_194] : memref<2x4x128xf32, #tpu.memory_space<vmem>>, vector<1x4x128xf32>
      %445 = vector.shape_cast %444 : vector<1x4x128xf32> to vector<4x128xf32>
      %cst_195 = arith.constant dense<0.000000e+00> : vector<4x128xf32>
      %446 = tpu.matmul %445, %412, %cst_195 {dimension_numbers = #tpu.dot_dimension_numbers<[1], [0], [0], [1], [0, 0, 1, 1], [], []>} : vector<4x128xf32>, vector<128x128xf32>, vector<4x128xf32> -> vector<4x128xf32>
      %447 = vector.broadcast %413 : vector<1x128xf32> to vector<4x128xf32>
      %448 = arith.addf %446, %447 : vector<4x128xf32>
      %cst_196 = arith.constant dense<0.000000e+00> : vector<4xf32>
      %449 = vector.multi_reduction <add>, %448, %cst_196 [1] : vector<4x128xf32> to vector<4xf32>
      %450 = vector.shape_cast %449 : vector<4xf32> to vector<4x1xf32>
      %cst_197 = arith.constant 1.280000e+02 : f32
      %451 = vector.broadcast %cst_197 : f32 to vector<4x1xf32>
      %452 = arith.divf %450, %451 : vector<4x1xf32>
      %453 = vector.broadcast %452 : vector<4x1xf32> to vector<4x128xf32>
      %454 = arith.subf %448, %453 : vector<4x128xf32>
      %455 = arith.mulf %454, %454 : vector<4x128xf32>
      %cst_198 = arith.constant dense<0.000000e+00> : vector<4xf32>
      %456 = vector.multi_reduction <add>, %455, %cst_198 [1] : vector<4x128xf32> to vector<4xf32>
      %457 = vector.shape_cast %456 : vector<4xf32> to vector<4x1xf32>
      %cst_199 = arith.constant 1.280000e+02 : f32
      %458 = vector.broadcast %cst_199 : f32 to vector<4x1xf32>
      %459 = arith.divf %457, %458 : vector<4x1xf32>
      %cst_200 = arith.constant 9.99999974E-6 : f32
      %460 = vector.broadcast %cst_200 : f32 to vector<4x1xf32>
      %461 = arith.addf %459, %460 : vector<4x1xf32>
      %462 = math.rsqrt %461 : vector<4x1xf32>
      %463 = vector.broadcast %462 : vector<4x1xf32> to vector<4x128xf32>
      %464 = arith.mulf %454, %463 : vector<4x128xf32>
      %465 = vector.broadcast %414 : vector<1x128xf32> to vector<4x128xf32>
      %466 = arith.mulf %464, %465 : vector<4x128xf32>
      %467 = vector.broadcast %415 : vector<1x128xf32> to vector<4x128xf32>
      %468 = arith.addf %466, %467 : vector<4x128xf32>
      %c1_201 = arith.constant 1 : index
      %c0_202 = arith.constant 0 : index
      %c0_203 = arith.constant 0 : index
      %469 = vector.load %arg20[%c1_201, %c0_202, %c0_203] : memref<2x4x128xf32, #tpu.memory_space<vmem>>, vector<1x4x128xf32>
      %470 = vector.shape_cast %469 : vector<1x4x128xf32> to vector<4x128xf32>
      %471 = vector.shape_cast %468 : vector<4x128xf32> to vector<1x4x128xf32>
      tpu.vector_store %arg20[%c1_201, %c0_202, %c0_203], %471 {strides = array<i32>} : memref<2x4x128xf32, #tpu.memory_space<vmem>>, vector<1x4x128xf32>,
    } else {
    }
    return
  }
  func.func @transform_0(%arg0: i32) -> (i32, i32, i32) {
    %c0_i32 = arith.constant 0 : i32
    %c0_i32_0 = arith.constant 0 : i32
    %c0_i32_1 = arith.constant 0 : i32
    %c0_i32_2 = arith.constant 0 : i32
    return %c0_i32, %c0_i32_0, %c0_i32_1 : i32, i32, i32
  }
  func.func @transform_1(%arg0: i32) -> (i32, i32, i32) {
    %c0_i32 = arith.constant 0 : i32
    %c0_i32_0 = arith.constant 0 : i32
    %c0_i32_1 = arith.constant 0 : i32
    %c0_i32_2 = arith.constant 0 : i32
    return %c0_i32, %c0_i32_0, %c0_i32_1 : i32, i32, i32
  }
  func.func @transform_2(%arg0: i32) -> (i32, i32) {
    %c0_i32 = arith.constant 0 : i32
    %c0_i32_0 = arith.constant 0 : i32
    %c0_i32_1 = arith.constant 0 : i32
    return %c0_i32, %c0_i32_0 : i32, i32
  }
  func.func @transform_3(%arg0: i32) -> (i32, i32) {
    %c0_i32 = arith.constant 0 : i32
    %c0_i32_0 = arith.constant 0 : i32
    %c0_i32_1 = arith.constant 0 : i32
    return %c0_i32, %c0_i32_0 : i32, i32
  }
  func.func @transform_4(%arg0: i32) -> (i32, i32, i32) {
    %c0_i32 = arith.constant 0 : i32
    %c0_i32_0 = arith.constant 0 : i32
    %c0_i32_1 = arith.constant 0 : i32
    return %arg0, %c0_i32, %c0_i32_0 : i32, i32, i32
  }
  func.func @transform_5(%arg0: i32) -> (i32, i32, i32) {
    %c0_i32 = arith.constant 0 : i32
    %c0_i32_0 = arith.constant 0 : i32
    %c0_i32_1 = arith.constant 0 : i32
    return %arg0, %c0_i32, %c0_i32_0 : i32, i32, i32
  }
  func.func @transform_6(%arg0: i32) -> (i32, i32, i32) {
    %c0_i32 = arith.constant 0 : i32
    %c0_i32_0 = arith.constant 0 : i32
    %c0_i32_1 = arith.constant 0 : i32
    return %arg0, %c0_i32, %c0_i32_0 : i32, i32, i32
  }
  func.func @transform_7(%arg0: i32) -> (i32, i32, i32) {
    %c0_i32 = arith.constant 0 : i32
    %c0_i32_0 = arith.constant 0 : i32
    %c0_i32_1 = arith.constant 0 : i32
    return %arg0, %c0_i32, %c0_i32_0 : i32, i32, i32
  }
  func.func @transform_8(%arg0: i32) -> (i32, i32, i32) {
    %c0_i32 = arith.constant 0 : i32
    %c0_i32_0 = arith.constant 0 : i32
    %c0_i32_1 = arith.constant 0 : i32
    return %arg0, %c0_i32, %c0_i32_0 : i32, i32, i32
  }
  func.func @transform_9(%arg0: i32) -> (i32, i32, i32) {
    %c0_i32 = arith.constant 0 : i32
    %c0_i32_0 = arith.constant 0 : i32
    %c0_i32_1 = arith.constant 0 : i32
    return %arg0, %c0_i32, %c0_i32_0 : i32, i32, i32
  }
  func.func @transform_10(%arg0: i32) -> (i32, i32, i32) {
    %c0_i32 = arith.constant 0 : i32
    %c0_i32_0 = arith.constant 0 : i32
    %c0_i32_1 = arith.constant 0 : i32
    return %arg0, %c0_i32, %c0_i32_0 : i32, i32, i32
  }
  func.func @transform_11(%arg0: i32) -> (i32, i32, i32) {
    %c0_i32 = arith.constant 0 : i32
    %c0_i32_0 = arith.constant 0 : i32
    %c0_i32_1 = arith.constant 0 : i32
    return %arg0, %c0_i32, %c0_i32_0 : i32, i32, i32
  }
  func.func @transform_12(%arg0: i32) -> (i32, i32, i32) {
    %c0_i32 = arith.constant 0 : i32
    %c0_i32_0 = arith.constant 0 : i32
    %c0_i32_1 = arith.constant 0 : i32
    return %arg0, %c0_i32, %c0_i32_0 : i32, i32, i32
  }
  func.func @transform_13(%arg0: i32) -> (i32, i32, i32) {
    %c0_i32 = arith.constant 0 : i32
    %c0_i32_0 = arith.constant 0 : i32
    %c0_i32_1 = arith.constant 0 : i32
    return %arg0, %c0_i32, %c0_i32_0 : i32, i32, i32
  }
  func.func @transform_14(%arg0: i32) -> (i32, i32, i32) {
    %c0_i32 = arith.constant 0 : i32
    %c0_i32_0 = arith.constant 0 : i32
    %c0_i32_1 = arith.constant 0 : i32
    return %arg0, %c0_i32, %c0_i32_0 : i32, i32, i32
  }
  func.func @transform_15(%arg0: i32) -> (i32, i32) {
    %c0_i32 = arith.constant 0 : i32
    %c0_i32_0 = arith.constant 0 : i32
    %c0_i32_1 = arith.constant 0 : i32
    return %c0_i32, %c0_i32_0 : i32, i32
  }
  func.func @transform_16(%arg0: i32) -> (i32, i32) {
    %c0_i32 = arith.constant 0 : i32
    %c0_i32_0 = arith.constant 0 : i32
    %c0_i32_1 = arith.constant 0 : i32
    return %c0_i32, %c0_i32_0 : i32, i32
  }
  func.func @transform_17(%arg0: i32) -> (i32, i32) {
    %c0_i32 = arith.constant 0 : i32
    %c0_i32_0 = arith.constant 0 : i32
    %c0_i32_1 = arith.constant 0 : i32
    return %c0_i32, %c0_i32_0 : i32, i32
  }
  func.func @transform_18(%arg0: i32) -> (i32, i32) {
    %c0_i32 = arith.constant 0 : i32
    %c0_i32_0 = arith.constant 0 : i32
    %c0_i32_1 = arith.constant 0 : i32
    return %c0_i32, %c0_i32_0 : i32, i32
  }
  func.func @transform_19(%arg0: i32) -> (i32, i32, i32) {
    %c0_i32 = arith.constant 0 : i32
    %c0_i32_0 = arith.constant 0 : i32
    %c0_i32_1 = arith.constant 0 : i32
    %c0_i32_2 = arith.constant 0 : i32
    return %c0_i32, %c0_i32_0, %c0_i32_1 : i32, i32, i32
  }
}

</mosaic_0001>

<bundles_post_ra>
// kernel: proj_plus_forward.2
= control target key start
LH: loop header
LB: loop body
LE: loop exit
PB: predicated region body
PF: predicated region fallthrough
CT: control target
= control target key end

     0   :  { %12 = vsyncpa [#allocation3], 0  ;;  %s1147_s0 = inlined_call_operand.vmem [shape: f32[2,128], index: 0, kind: input, shape index: {}]   ;;  %s1148_s1 = inlined_call_operand.hbm [shape: f32[128,256], index: 1, kind: input, shape index: {}]   ;;  %s1149_s2 = inlined_call_operand.hbm [shape: f32[1,256], index: 2, kind: input, shape index: {}]   ;;  %s1150_s3 = inlined_call_operand.hbm [shape: f32[256,512], index: 3, kind: input, shape index: {}]   ;;  %s1151_s4 = inlined_call_operand.hbm [shape: f32[1,512], index: 4, kind: input, shape index: {}]   ;;  %s1152_s5 = inlined_call_operand.hbm [shape: f32[1,128], index: 5, kind: input, shape index: {}]   ;;  %s1153_s6 = inlined_call_operand.hbm [shape: f32[1,128], index: 6, kind: input, shape index: {}]   ;;  %s1154_s7 = inlined_call_operand.vmem [shape: f32[4,2,128], index: 7, kind: output, shape index: {}]  }
   0x1   :  { %13 = vsyncpa [#allocation5], 0 }
   0x2   :  { %14 = vsyncpa [#allocation8], 0 }
   0x3   :  { %15 = vsyncpa [#allocation11], 0  ;;  %s986_s24 = smov [#allocation4]   ;;  %s987_s26 = smov [#allocation7]  }
   0x4   :  { %s36_s25 = sshll.u32 %s986_s24, 4  ;;  %s58_s27 = sshll.u32 %s987_s26, 4  ;;  %s37_s25 = int_to_ptr.vmem [resolvable:$true] %s36_s25  ;;  %s59_s27 = int_to_ptr.vmem [resolvable:$true] %s58_s27 }
   0x5   :  { %s846_s30 = scalar_lea.hbm %s1149_s2, 32 }
   0x6   :  { %p847_p0 = scmp.ne.s32.totalorder %s1149_s2, %s846_s30  ;;  %p850_p1 = scmp.lt.u32.totalorder %s846_s30, %s1149_s2 }
   0x8   :  { %p852_p2 = pnand %p850_p1, %p847_p0 }
   0xa   :  { %855 = shalt.err (!%p852_p2)
}
   0xb   :  { %s856_s12 = scalar_lea.vmem %s37_s25, 32  ;;  %p861_p4 = scmp.lt.s32.totalorder %s37_s25, %s37_s25 }
   0xc   :  { %p857_p3 = scmp.ne.s32.totalorder %s37_s25, %s856_s12  ;;  %p862_p5 = scmp.lt.s32.totalorder %s856_s12, %s856_s12 }
   0xe   :  { %p863_p6 = por %p862_p5, %p861_p4 }
  0x10   :  { %p864_p7 = pnand %p863_p6, %p857_p3 }
  0x12   :  { %867 = shalt.err (!%p864_p7)
}
  0x13   :  { %39 = dma.hbm_to_vmem [thread:$0]  %s1149_s2, 32, %s37_s25, [#allocation5]  }
  0x14   :  { %s868_s17 = scalar_lea.hbm %s1151_s4, 64 }
  0x15   :  { %p869_p8 = scmp.ne.s32.totalorder %s1151_s4, %s868_s17  ;;  %p872_p9 = scmp.lt.u32.totalorder %s868_s17, %s1151_s4 }
  0x17   :  { %p874_p10 = pnand %p872_p9, %p869_p8 }
  0x19   :  { %877 = shalt.err (!%p874_p10)
}
  0x1a   :  { %s878_s22 = scalar_lea.vmem %s59_s27, 64  ;;  %p883_p12 = scmp.lt.s32.totalorder %s59_s27, %s59_s27 }
  0x1b   :  { %p879_p11 = scmp.ne.s32.totalorder %s59_s27, %s878_s22  ;;  %p884_p13 = scmp.lt.s32.totalorder %s878_s22, %s878_s22 }
  0x1d   :  { %p885_p0 = por %p884_p13, %p883_p12 }
  0x1f   :  { %p886_p1 = pnand %p885_p0, %p879_p11 }
  0x21   :  { %889 = shalt.err (!%p886_p1)
}
  0x22   :  { %61 = dma.hbm_to_vmem [thread:$0]  %s1151_s4, 64, %s59_s27, [#allocation8]  }
  0x23   :  { %s988_s24 = smov [#allocation2]   ;;  %s890_s29 = scalar_lea.hbm %s1148_s1, 4096 }
  0x24   :  { %s23_s25 = sshll.u32 %s988_s24, 4  ;;  %p891_p2 = scmp.ne.s32.totalorder %s1148_s1, %s890_s29  ;;  %s24_s25 = int_to_ptr.vmem [resolvable:$true] %s23_s25 }
  0x25   :  { %p894_p3 = scmp.lt.u32.totalorder %s890_s29, %s1148_s1 }
  0x27   :  { %p896_p4 = pnand %p894_p3, %p891_p2 }
  0x29   :  { %899 = shalt.err (!%p896_p4)
}
  0x2a   :  { %s900_s11 = scalar_lea.vmem %s24_s25, 4096  ;;  %p905_p6 = scmp.lt.s32.totalorder %s24_s25, %s24_s25 }
  0x2b   :  { %p901_p5 = scmp.ne.s32.totalorder %s24_s25, %s900_s11  ;;  %p906_p7 = scmp.lt.s32.totalorder %s900_s11, %s900_s11 }
  0x2d   :  { %p907_p8 = por %p906_p7, %p905_p6 }
  0x2f   :  { %p908_p9 = pnand %p907_p8, %p901_p5 }
  0x31   :  { %911 = shalt.err (!%p908_p9)
}
  0x32   :  { %s989_s4 = smov 256   ;;  %s990_s27 = smov 16  }
  0x33   :  { %29 = dma.hbm_to_vmem [thread:$0]  %s1148_s1, 4096, %s24_s25, [#allocation3], %s989_s4, %s989_s4, %s990_s27  }
  0x34   :  { %s991_s14 = smov [#allocation6]   ;;  %s912_s18 = scalar_lea.hbm %s1150_s3, 16384 }
  0x35   :  { %s45_s15 = sshll.u32 %s991_s14, 4  ;;  %p913_p10 = scmp.ne.s32.totalorder %s1150_s3, %s912_s18  ;;  %s46_s15 = int_to_ptr.vmem [resolvable:$true] %s45_s15 }
  0x36   :  { %p916_p11 = scmp.lt.u32.totalorder %s912_s18, %s1150_s3 }
  0x38   :  { %p918_p12 = pnand %p916_p11, %p913_p10 }
  0x3a   :  { %921 = shalt.err (!%p918_p12)
}
  0x3b   :  { %s922_s2 = scalar_lea.vmem %s46_s15, 16384  ;;  %p927_p0 = scmp.lt.s32.totalorder %s46_s15, %s46_s15 }
  0x3c   :  { %p923_p13 = scmp.ne.s32.totalorder %s46_s15, %s922_s2  ;;  %p928_p1 = scmp.lt.s32.totalorder %s922_s2, %s922_s2 }
  0x3e   :  { %p929_p2 = por %p928_p1, %p927_p0 }
  0x40   :  { %p930_p3 = pnand %p929_p2, %p923_p13 }
  0x42   :  { %933 = shalt.err (!%p930_p3)
}
  0x43   :  { %s992_s1 = smov 512   ;;  %s993_s23 = smov 32  }
  0x44   :  { %51 = dma.hbm_to_vmem [thread:$0]  %s1150_s3, 16384, %s46_s15, [#allocation5], %s992_s1, %s992_s1, %s993_s23  }
  0x45   :  { %s994_s26 = smov [#allocation9]   ;;  %s995_s29 = smov [#allocation10]  }
  0x46   :  { %s68_s28 = sshll.u32 %s994_s26, 4  ;;  %s78_s30 = sshll.u32 %s995_s29, 4  ;;  %s69_s28 = int_to_ptr.vmem [resolvable:$true] %s68_s28  ;;  %s79_s30 = int_to_ptr.vmem [resolvable:$true] %s78_s30 }
  0x47   :  { %s934_s10 = scalar_lea.hbm %s1152_s5, 16 }
  0x48   :  { %p935_p4 = scmp.ne.s32.totalorder %s1152_s5, %s934_s10  ;;  %p938_p5 = scmp.lt.u32.totalorder %s934_s10, %s1152_s5 }
  0x4a   :  { %p940_p6 = pnand %p938_p5, %p935_p4 }
  0x4c   :  { %943 = shalt.err (!%p940_p6)
}
  0x4d   :  { %s944_s3 = scalar_lea.vmem %s69_s28, 16  ;;  %s948_s13 = scalar_lea.vmem %s69_s28, 32 }
  0x4e   :  { %p945_p7 = scmp.ne.s32.totalorder %s69_s28, %s944_s3  ;;  %p949_p8 = scmp.lt.s32.totalorder %s69_s28, %s69_s28 }
  0x4f   :  { %p950_p9 = scmp.lt.s32.totalorder %s948_s13, %s944_s3 }
  0x51   :  { %p951_p10 = por %p950_p9, %p949_p8 }
  0x53   :  { %p952_p11 = pnand %p951_p10, %p945_p7 }
  0x55   :  { %955 = shalt.err (!%p952_p11)
}
  0x56   :  { %71 = dma.hbm_to_vmem [thread:$0]  %s1152_s5, 16, %s69_s28, [#allocation8]  }
  0x57   :  { %s956_s18 = scalar_lea.hbm %s1153_s6, 16 }
  0x58   :  { %p957_p12 = scmp.ne.s32.totalorder %s1153_s6, %s956_s18  ;;  %p960_p13 = scmp.lt.u32.totalorder %s956_s18, %s1153_s6 }
  0x5a   :  { %p962_p0 = pnand %p960_p13, %p957_p12 }
  0x5c   :  { %965 = shalt.err (!%p962_p0)
}
  0x5d   :  { %s966_s2 = scalar_lea.vmem %s79_s30, 16  ;;  %s970_s1 = scalar_lea.vmem %s79_s30, 32 }
  0x5e   :  { %p967_p1 = scmp.ne.s32.totalorder %s79_s30, %s966_s2  ;;  %p971_p2 = scmp.lt.s32.totalorder %s79_s30, %s79_s30 }
  0x5f   :  { %p972_p3 = scmp.lt.s32.totalorder %s970_s1, %s966_s2 }
  0x61   :  { %p973_p4 = por %p972_p3, %p971_p2 }
  0x63   :  { %p974_p5 = pnand %p973_p4, %p967_p1 }
  0x65   :  { %977 = shalt.err (!%p974_p5)
}
  0x66   :  { %81 = dma.hbm_to_vmem [thread:$0]  %s1153_s6, 16, %s79_s30, [#allocation11]  }
  0x67   :  { %978 = dma.done.wait [#allocation3], 4096  }
  0x68   :  { %979 = vsyncadd [#allocation3], 4294963200 }
  0x69   :  { %980 = dma.done.wait [#allocation5], 16416  }
  0x6a   :  { %981 = vsyncadd [#allocation5], 4294950880 }
  0x6b   :  { %982 = dma.done.wait [#allocation8], 80  }
  0x6c   :  { %983 = vsyncadd [#allocation8], 4294967216 }
  0x6d   :  { %984 = dma.done.wait [#allocation11], 16  }
  0x6e   :  { %985 = vsyncadd [#allocation11], 4294967280  ;;  %v996_v0 = vmov 0.0   ;;  %v102_v1 = vld [vmem:[#allocation2 + $0x8] sm:$0xff]  ;;  %v104_v2 = vld [vmem:[#allocation2 + $0x18] sm:$0xff]  ;;  %vm564_vm2 = vcmask 1041408  }
  0x6f   :  { %209 = vmatprep.mubr.f32.mxu0 %v996_v0  ;;  %v101_v3 = vld [vmem:[#allocation2] sm:$0xff]  ;;  %v658_v4 = vpack.c.bf16 %v104_v2, %v102_v1  ;;  %v103_v5 = vld [vmem:[#allocation2 + $0x10] sm:$0xff]  ;;  %v106_v6 = vld [vmem:[#allocation2 + $0x28] sm:$0xff] }
  0x70   :  { %v108_v7 = vld [vmem:[#allocation2 + $0x38] sm:$0xff]  ;;  %v660_v8 = vpack.c.bf16 %v103_v5, %v101_v3  ;;  %v105_v10 = vld [vmem:[#allocation2 + $0x20] sm:$0xff]  ;;  %v107_v11 = vld [vmem:[#allocation2 + $0x30] sm:$0xff] }
  0x71   :  { %v662_v9 = vpack.c.bf16 %v108_v7, %v106_v6  ;;  %v110_v12 = vld [vmem:[#allocation2 + $0x48] sm:$0xff]  ;;  %659 = vmatprep.subr.bf16.mxu0 %v658_v4  ;;  %v112_v13 = vld [vmem:[#allocation2 + $0x58] sm:$0xff]  ;;  %v664_v14 = vpack.c.bf16 %v107_v11, %v105_v10  ;;  %v109_v16 = vld [vmem:[#allocation2 + $0x40] sm:$0xff] }
  0x72   :  { %661 = vmatpush1.bf16.msra.mxu0 %v660_v8  ;;  %v666_v15 = vpack.c.bf16 %v112_v13, %v110_v12  ;;  %v111_v17 = vld [vmem:[#allocation2 + $0x50] sm:$0xff]  ;;  %v114_v18 = vld [vmem:[#allocation2 + $0x68] sm:$0xff]  ;;  %v116_v19 = vld [vmem:[#allocation2 + $0x78] sm:$0xff] }
  0x73   :  { %663 = vmatprep.subr.bf16.mxu0 %v662_v9  ;;  %v668_v20 = vpack.c.bf16 %v111_v17, %v109_v16  ;;  %v670_v21 = vpack.c.bf16 %v116_v19, %v114_v18  ;;  %v113_v22 = vld [vmem:[#allocation2 + $0x60] sm:$0xff]  ;;  %v115_v23 = vld [vmem:[#allocation2 + $0x70] sm:$0xff]  ;;  %v118_v24 = vld [vmem:[#allocation2 + $0x88] sm:$0xff] }
  0x74   :  { %v120_v25 = vld [vmem:[#allocation2 + $0x98] sm:$0xff]  ;;  %v271_v26 = vld [vmem:[#allocation6 + $0x8] sm:$0xff]  ;;  %v672_v28 = vpack.c.bf16 %v115_v23, %v113_v22  ;;  %v270_v30 = vld [vmem:[#allocation6] sm:$0xff] }
  0x75   :  { %v275_v27 = vld [vmem:[#allocation6 + $0x28] sm:$0xff]  ;;  %v274_v31 = vld [vmem:[#allocation6 + $0x20] sm:$0xff]  ;;  %v674_v32 = vpack.c.bf16 %v120_v25, %v118_v24  ;;  %v124_v38 = vld [vmem:[#allocation2 + $0xb8] sm:$0xff] }
  0x76   :  { %665 = vmatpush1.bf16.msra.mxu0 %v664_v14  ;;  %v690_v29 = vpack.c.bf16 %v275_v27, %v271_v26  ;;  %v117_v33 = vld [vmem:[#allocation2 + $0x80] sm:$0xff]  ;;  %v119_v34 = vld [vmem:[#allocation2 + $0x90] sm:$0xff]  ;;  %v692_v35 = vpack.c.bf16 %v274_v31, %v270_v30  ;;  %v122_v37 = vld [vmem:[#allocation2 + $0xa8] sm:$0xff] }
  0x77   :  { %667 = vmatprep.subr.bf16.mxu0 %v666_v15  ;;  %v279_v36 = vld [vmem:[#allocation6 + $0x48] sm:$0xff]  ;;  %v278_v41 = vld [vmem:[#allocation6 + $0x40] sm:$0xff]  ;;  %v676_v43 = vpack.c.bf16 %v119_v34, %v117_v33  ;;  %v678_v47 = vpack.c.bf16 %v124_v38, %v122_v37  ;;  %v128_v53 = vld [vmem:[#allocation2 + $0xd8] sm:$0xff] }
  0x78   :  { %691 = vmatprep.subr.bf16.mxu1 %v690_v29  ;;  %v283_v39 = vld [vmem:[#allocation6 + $0x68] sm:$0xff]  ;;  %v282_v42 = vld [vmem:[#allocation6 + $0x60] sm:$0xff]  ;;  %v132_v61 = vld [vmem:[#allocation2 + $0xf8] sm:$0xff] }
  0x79   :  { %693 = vmatpush1.bf16.msra.mxu1 %v692_v35  ;;  %v694_v40 = vpack.c.bf16 %v283_v39, %v279_v36  ;;  %v696_v44 = vpack.c.bf16 %v282_v42, %v278_v41  ;;  %v287_v45 = vld [vmem:[#allocation6 + $0x88] sm:$0xff]  ;;  %v121_v48 = vld [vmem:[#allocation2 + $0xa0] sm:$0xff]  ;;  %v272_v6 = vld [vmem:[#allocation6 + $0x10] sm:$0xff] }
  0x7a   :  { %669 = vmatpush1.bf16.msra.mxu0 %v668_v20  ;;  %v291_v46 = vld [vmem:[#allocation6 + $0xa8] sm:$0xff]  ;;  %v286_v51 = vld [vmem:[#allocation6 + $0x80] sm:$0xff]  ;;  %v273_v2 = vld [vmem:[#allocation6 + $0x18] sm:$0xff] }
  0x7b   :  { %671 = vmatprep.subr.bf16.mxu0 %v670_v21  ;;  %v123_v49 = vld [vmem:[#allocation2 + $0xb0] sm:$0xff]  ;;  %695 = vmatprep.subr.bf16.mxu1 %v694_v40  ;;  %v698_v50 = vpack.c.bf16 %v291_v46, %v287_v45  ;;  %v126_v52 = vld [vmem:[#allocation2 + $0xc8] sm:$0xff]  ;;  %v125_v58 = vld [vmem:[#allocation2 + $0xc0] sm:$0xff] }
  0x7c   :  { %v290_v54 = vld [vmem:[#allocation6 + $0xa0] sm:$0xff]  ;;  %v680_v56 = vpack.c.bf16 %v123_v49, %v121_v48  ;;  %v682_v57 = vpack.c.bf16 %v128_v53, %v126_v52  ;;  %v127_v59 = vld [vmem:[#allocation2 + $0xd0] sm:$0xff]  ;;  %v277_v3 = vld [vmem:[#allocation6 + $0x38] sm:$0xff] }
  0x7d   :  { %697 = vmatpush1.bf16.msra.mxu1 %v696_v44  ;;  %v700_v55 = vpack.c.bf16 %v290_v54, %v286_v51  ;;  %v130_v60 = vld [vmem:[#allocation2 + $0xe8] sm:$0xff]  ;;  %v684_v62 = vpack.c.bf16 %v127_v59, %v125_v58  ;;  %v129_v0 = vld [vmem:[#allocation2 + $0xe0] sm:$0xff]  ;;  %v131_v1 = vld [vmem:[#allocation2 + $0xf0] sm:$0xff]  ;;  %v754_v5 = vpack.c.bf16 %v277_v3, %v273_v2 }
  0x7e   :  { %673 = vmatpush1.bf16.msra.mxu0 %v672_v28  ;;  %699 = vmatprep.subr.bf16.mxu1 %v698_v50  ;;  %v686_v63 = vpack.c.bf16 %v132_v61, %v130_v60  ;;  %v688_v4 = vpack.c.bf16 %v131_v1, %v129_v0  ;;  %v276_v7 = vld [vmem:[#allocation6 + $0x30] sm:$0xff]  ;;  %v281_v8 = vld [vmem:[#allocation6 + $0x58] sm:$0xff]  ;;  %v295_v22 = vld [vmem:[#allocation6 + $0xc8] sm:$0xff] }
  0x7f   :  { %675 = vmatprep.subr.bf16.mxu0 %v674_v32  ;;  %v285_v9 = vld [vmem:[#allocation6 + $0x78] sm:$0xff]  ;;  %v100_v10 = vld [vmem:[%s1147_s0] sm:$0x3]  ;;  %v756_v11 = vpack.c.bf16 %v276_v7, %v272_v6  ;;  %v299_v23 = vld [vmem:[#allocation6 + $0xe8] sm:$0xff] }
  0x80   :  { %v758_v12 = vpack.c.bf16 %v285_v9, %v281_v8  ;;  %v280_v13 = vld [vmem:[#allocation6 + $0x50] sm:$0xff]  ;;  %v289_v15 = vld [vmem:[#allocation6 + $0x98] sm:$0xff]  ;;  %v702_v25 = vpack.c.bf16 %v299_v23, %v295_v22  ;;  %v294_v27 = vld [vmem:[#allocation6 + $0xc0] sm:$0xff] }
  0x81   :  { %701 = vmatpush1.bf16.msra.mxu1 %v700_v55  ;;  %v284_v14 = vld [vmem:[#allocation6 + $0x70] sm:$0xff]  ;;  %v293_v16 = vld [vmem:[#allocation6 + $0xb8] sm:$0xff]  ;;  %v298_v28 = vld [vmem:[#allocation6 + $0xe0] sm:$0xff] }
  0x82   :  { %677 = vmatpush1.bf16.msra.mxu0 %v676_v43  ;;  %v760_v17 = vpack.c.bf16 %v284_v14, %v280_v13  ;;  %v762_v18 = vpack.c.bf16 %v293_v16, %v289_v15  ;;  %v288_v19 = vld [vmem:[#allocation6 + $0x90] sm:$0xff]  ;;  %v297_v24 = vld [vmem:[#allocation6 + $0xd8] sm:$0xff]  ;;  %v704_v30 = vpack.c.bf16 %v298_v28, %v294_v27  ;;  %703 = vmatprep.subr.bf16.mxu1 %v702_v25  ;;  %v303_v34 = vld [vmem:[#allocation6 + $0x108] sm:$0xff] }
  0x83   :  { %679 = vmatprep.subr.bf16.mxu0 %v678_v47  ;;  %v292_v20 = vld [vmem:[#allocation6 + $0xb0] sm:$0xff]  ;;  %v301_v26 = vld [vmem:[#allocation6 + $0xf8] sm:$0xff]  ;;  %v307_v35 = vld [vmem:[#allocation6 + $0x128] sm:$0xff] }
  0x84   :  { %v764_v21 = vpack.c.bf16 %v292_v20, %v288_v19  ;;  %v766_v29 = vpack.c.bf16 %v301_v26, %v297_v24  ;;  %v296_v31 = vld [vmem:[#allocation6 + $0xd0] sm:$0xff]  ;;  %v305_v36 = vld [vmem:[#allocation6 + $0x118] sm:$0xff]  ;;  %v706_v37 = vpack.c.bf16 %v307_v35, %v303_v34  ;;  %v302_v39 = vld [vmem:[#allocation6 + $0x100] sm:$0xff] }
  0x85   :  { %v300_v32 = vld [vmem:[#allocation6 + $0xf0] sm:$0xff]  ;;  %705 = vmatpush1.bf16.msra.mxu1 %v704_v30  ;;  %v309_v38 = vld [vmem:[#allocation6 + $0x138] sm:$0xff]  ;;  %v306_v40 = vld [vmem:[#allocation6 + $0x120] sm:$0xff] }
  0x86   :  { %681 = vmatpush1.bf16.msra.mxu0 %v680_v56  ;;  %v768_v33 = vpack.c.bf16 %v300_v32, %v296_v31  ;;  %v770_v41 = vpack.c.bf16 %v309_v38, %v305_v36  ;;  %v708_v42 = vpack.c.bf16 %v306_v40, %v302_v39  ;;  %v304_v43 = vld [vmem:[#allocation6 + $0x110] sm:$0xff]  ;;  %707 = vmatprep.subr.bf16.mxu1 %v706_v37  ;;  %v311_v46 = vld [vmem:[#allocation6 + $0x148] sm:$0xff]  ;;  %v313_v48 = vld [vmem:[#allocation6 + $0x158] sm:$0xff] }
  0x87   :  { %683 = vmatprep.subr.bf16.mxu0 %v682_v57  ;;  %v308_v44 = vld [vmem:[#allocation6 + $0x130] sm:$0xff]  ;;  %v315_v47 = vld [vmem:[#allocation6 + $0x168] sm:$0xff]  ;;  %v317_v50 = vld [vmem:[#allocation6 + $0x178] sm:$0xff] }
  0x88   :  { %v772_v45 = vpack.c.bf16 %v308_v44, %v304_v43  ;;  %v710_v49 = vpack.c.bf16 %v315_v47, %v311_v46  ;;  %v310_v51 = vld [vmem:[#allocation6 + $0x140] sm:$0xff]  ;;  %v774_v53 = vpack.c.bf16 %v317_v50, %v313_v48  ;;  %v312_v55 = vld [vmem:[#allocation6 + $0x150] sm:$0xff]  ;;  %v319_v58 = vld [vmem:[#allocation6 + $0x188] sm:$0xff] }
  0x89   :  { %709 = vmatpush1.bf16.msra.mxu1 %v708_v42  ;;  %v314_v52 = vld [vmem:[#allocation6 + $0x160] sm:$0xff]  ;;  %v316_v56 = vld [vmem:[#allocation6 + $0x170] sm:$0xff]  ;;  %v323_v59 = vld [vmem:[#allocation6 + $0x1a8] sm:$0xff] }
  0x8a   :  { %685 = vmatpush1.bf16.msra.mxu0 %v684_v62  ;;  %v712_v54 = vpack.c.bf16 %v314_v52, %v310_v51  ;;  %711 = vmatprep.subr.bf16.mxu1 %v710_v49  ;;  %v776_v57 = vpack.c.bf16 %v316_v56, %v312_v55  ;;  %v321_v60 = vld [vmem:[#allocation6 + $0x198] sm:$0xff]  ;;  %v714_v61 = vpack.c.bf16 %v323_v59, %v319_v58  ;;  %v322_v0 = vld [vmem:[#allocation6 + $0x1a0] sm:$0xff]  ;;  %v320_v3 = vld [vmem:[#allocation6 + $0x190] sm:$0xff] }
  0x8b   :  { %687 = vmatprep.subr.bf16.mxu0 %v686_v63  ;;  %v325_v62 = vld [vmem:[#allocation6 + $0x1b8] sm:$0xff]  ;;  %v318_v63 = vld [vmem:[#allocation6 + $0x180] sm:$0xff]  ;;  %v327_v6 = vld [vmem:[#allocation6 + $0x1c8] sm:$0xff] }
  0x8c   :  { %v778_v1 = vpack.c.bf16 %v325_v62, %v321_v60  ;;  %v716_v2 = vpack.c.bf16 %v322_v0, %v318_v63  ;;  %v331_v7 = vld [vmem:[#allocation6 + $0x1e8] sm:$0xff]  ;;  %v329_v8 = vld [vmem:[#allocation6 + $0x1d8] sm:$0xff]  ;;  %v328_v15 = vld [vmem:[#allocation6 + $0x1d0] sm:$0xff] }
  0x8d   :  { %713 = vmatpush1.bf16.msra.mxu1 %v712_v54  ;;  %v718_v9 = vpack.c.bf16 %v331_v7, %v327_v6  ;;  %v332_v16 = vld [vmem:[#allocation6 + $0x1f0] sm:$0xff]  ;;  %v339_v19 = vld [vmem:[#allocation6 + $0x228] sm:$0xff]  ;;  %v337_v20 = vld [vmem:[#allocation6 + $0x218] sm:$0xff] }
  0x8e   :  { %689 = vmatpush1.bf16.msra.mxu0 %v688_v4  ;;  %v324_v4 = vld [vmem:[#allocation6 + $0x1b0] sm:$0xff]  ;;  %715 = vmatprep.subr.bf16.mxu1 %v714_v61  ;;  %v334_v24 = vld [vmem:[#allocation6 + $0x200] sm:$0xff]  ;;  %v347_v30 = vld [vmem:[#allocation6 + $0x268] sm:$0xff] }
  0x8f   :  { %755 = vmatprep.subr.bf16.mxu0 %v754_v5  ;;  %v780_v5 = vpack.c.bf16 %v324_v4, %v320_v3  ;;  %v338_v25 = vld [vmem:[#allocation6 + $0x220] sm:$0xff]  ;;  %v336_v26 = vld [vmem:[#allocation6 + $0x210] sm:$0xff]  ;;  %v349_v34 = vld [vmem:[#allocation6 + $0x278] sm:$0xff] }
  0x90   :  { %v724_v27 = vpack.c.bf16 %v338_v25, %v334_v24  ;;  %v340_v28 = vld [vmem:[#allocation6 + $0x230] sm:$0xff]  ;;  %v342_v35 = vld [vmem:[#allocation6 + $0x240] sm:$0xff]  ;;  %v355_v42 = vld [vmem:[#allocation6 + $0x2a8] sm:$0xff] }
  0x91   :  { %210 = vmatmul.mubr.f32.vlgmr.msra.gmra.mrb[0].mxu0 %v100_v10  ;;  %717 = vmatpush1.bf16.msra.mxu1 %v716_v2  ;;  %v333_v10 = vld [vmem:[#allocation6 + $0x1f8] sm:$0xff]  ;;  %v788_v31 = vpack.c.bf16 %v340_v28, %v336_v26  ;;  %v346_v37 = vld [vmem:[#allocation6 + $0x260] sm:$0xff]  ;;  %v344_v38 = vld [vmem:[#allocation6 + $0x250] sm:$0xff] }
  0x92   :  { %757 = vmatpush1.bf16.msra.mxu0 %v756_v11  ;;  %v326_v11 = vld [vmem:[#allocation6 + $0x1c0] sm:$0xff]  ;;  %v782_v13 = vpack.c.bf16 %v333_v10, %v329_v8  ;;  %719 = vmatprep.subr.bf16.mxu1 %v718_v9  ;;  %v348_v39 = vld [vmem:[#allocation6 + $0x270] sm:$0xff]  ;;  %v728_v40 = vpack.c.bf16 %v346_v37, %v342_v35  ;;  %v353_v43 = vld [vmem:[#allocation6 + $0x298] sm:$0xff] }
  0x93   :  { %759 = vmatprep.subr.bf16.mxu0 %v758_v12  ;;  %v330_v12 = vld [vmem:[#allocation6 + $0x1e0] sm:$0xff]  ;;  %v792_v44 = vpack.c.bf16 %v348_v39, %v344_v38  ;;  %v357_v46 = vld [vmem:[#allocation6 + $0x2b8] sm:$0xff]  ;;  %v352_v50 = vld [vmem:[#allocation6 + $0x290] sm:$0xff] }
  0x94   :  { %v720_v14 = vpack.c.bf16 %v330_v12, %v326_v11  ;;  %v350_v47 = vld [vmem:[#allocation6 + $0x280] sm:$0xff]  ;;  %v794_v49 = vpack.c.bf16 %v357_v46, %v353_v43  ;;  %v356_v51 = vld [vmem:[#allocation6 + $0x2b0] sm:$0xff]  ;;  %v359_v52 = vld [vmem:[#allocation6 + $0x2c8] sm:$0xff] }
  0x95   :  { %v354_v48 = vld [vmem:[#allocation6 + $0x2a0] sm:$0xff]  ;;  %v361_v54 = vld [vmem:[#allocation6 + $0x2d8] sm:$0xff]  ;;  %v360_v61 = vld [vmem:[#allocation6 + $0x2d0] sm:$0xff] }
  0x96   :  { %761 = vmatpush1.bf16.msra.mxu0 %v760_v17  ;;  %v335_v17 = vld [vmem:[#allocation6 + $0x208] sm:$0xff]  ;;  %721 = vmatpush1.bf16.msra.mxu1 %v720_v14  ;;  %v365_v55 = vld [vmem:[#allocation6 + $0x2f8] sm:$0xff]  ;;  %v732_v56 = vpack.c.bf16 %v354_v48, %v350_v47  ;;  %v358_v59 = vld [vmem:[#allocation6 + $0x2c0] sm:$0xff] }
  0x97   :  { %763 = vmatprep.subr.bf16.mxu0 %v762_v18  ;;  %v784_v18 = vpack.c.bf16 %v332_v16, %v328_v15  ;;  %v722_v22 = vpack.c.bf16 %v339_v19, %v335_v17  ;;  %v362_v60 = vld [vmem:[#allocation6 + $0x2e0] sm:$0xff]  ;;  %v798_v62 = vpack.c.bf16 %v365_v55, %v361_v54  ;;  %v364_v63 = vld [vmem:[#allocation6 + $0x2f0] sm:$0xff]  ;;  %v367_v0 = vld [vmem:[#allocation6 + $0x308] sm:$0xff] }
  0x98   :  { %v369_v2 = vld [vmem:[#allocation6 + $0x318] sm:$0xff]  ;;  %v736_v4 = vpack.c.bf16 %v362_v60, %v358_v59  ;;  %v366_v7 = vld [vmem:[#allocation6 + $0x300] sm:$0xff]  ;;  %v368_v9 = vld [vmem:[#allocation6 + $0x310] sm:$0xff] }
  0x99   :  { %723 = vmatprep.subr.bf16.mxu1 %v722_v22  ;;  %v373_v3 = vld [vmem:[#allocation6 + $0x338] sm:$0xff]  ;;  %v370_v8 = vld [vmem:[#allocation6 + $0x320] sm:$0xff]  ;;  %v372_v11 = vld [vmem:[#allocation6 + $0x330] sm:$0xff] }
  0x9a   :  { %765 = vmatpush1.bf16.msra.mxu0 %v764_v21  ;;  %v341_v21 = vld [vmem:[#allocation6 + $0x238] sm:$0xff]  ;;  %725 = vmatpush1.bf16.msra.mxu1 %v724_v27  ;;  %v802_v10 = vpack.c.bf16 %v373_v3, %v369_v2  ;;  %v375_v12 = vld [vmem:[#allocation6 + $0x348] sm:$0xff]  ;;  %v740_v16 = vpack.c.bf16 %v370_v8, %v366_v7  ;;  %v804_v17 = vpack.c.bf16 %v372_v11, %v368_v9  ;;  %v374_v19 = vld [vmem:[#allocation6 + $0x340] sm:$0xff] }
  0x9b   :  { %767 = vmatprep.subr.bf16.mxu0 %v766_v29  ;;  %v786_v23 = vpack.c.bf16 %v341_v21, %v337_v20  ;;  %v343_v29 = vld [vmem:[#allocation6 + $0x248] sm:$0xff]  ;;  %v377_v14 = vld [vmem:[#allocation6 + $0x358] sm:$0xff]  ;;  %v378_v20 = vld [vmem:[#allocation6 + $0x360] sm:$0xff] }
  0x9c   :  { %v726_v32 = vpack.c.bf16 %v347_v30, %v343_v29  ;;  %v381_v15 = vld [vmem:[#allocation6 + $0x378] sm:$0xff]  ;;  %v376_v21 = vld [vmem:[#allocation6 + $0x350] sm:$0xff]  ;;  %v383_v24 = vld [vmem:[#allocation6 + $0x388] sm:$0xff]  ;;  %v744_v28 = vpack.c.bf16 %v378_v20, %v374_v19 }
  0x9d   :  { %v806_v22 = vpack.c.bf16 %v381_v15, %v377_v14  ;;  %v387_v25 = vld [vmem:[#allocation6 + $0x3a8] sm:$0xff]  ;;  %v385_v26 = vld [vmem:[#allocation6 + $0x398] sm:$0xff]  ;;  %v388_v35 = vld [vmem:[#allocation6 + $0x3b0] sm:$0xff] }
  0x9e   :  { %769 = vmatpush1.bf16.msra.mxu0 %v768_v33  ;;  %v345_v33 = vld [vmem:[#allocation6 + $0x258] sm:$0xff]  ;;  %727 = vmatprep.subr.bf16.mxu1 %v726_v32  ;;  %v746_v30 = vpack.c.bf16 %v387_v25, %v383_v24  ;;  %v386_v32 = vld [vmem:[#allocation6 + $0x3a0] sm:$0xff]  ;;  %v395_v37 = vld [vmem:[#allocation6 + $0x3e8] sm:$0xff] }
  0x9f   :  { %771 = vmatprep.subr.bf16.mxu0 %v770_v41  ;;  %v790_v36 = vpack.c.bf16 %v349_v34, %v345_v33  ;;  %v351_v41 = vld [vmem:[#allocation6 + $0x288] sm:$0xff]  ;;  %729 = vmatpush1.bf16.msra.mxu1 %v728_v40  ;;  %v389_v27 = vld [vmem:[#allocation6 + $0x3b8] sm:$0xff]  ;;  %v384_v33 = vld [vmem:[#allocation6 + $0x390] sm:$0xff] }
  0xa0   :  { %v810_v34 = vpack.c.bf16 %v389_v27, %v385_v26  ;;  %v393_v38 = vld [vmem:[#allocation6 + $0x3d8] sm:$0xff]  ;;  %v390_v43 = vld [vmem:[#allocation6 + $0x3c0] sm:$0xff]  ;;  %v392_v46 = vld [vmem:[#allocation6 + $0x3d0] sm:$0xff] }
  0xa1   :  { %v397_v39 = vld [vmem:[#allocation6 + $0x3f8] sm:$0xff]  ;;  %v396_v47 = vld [vmem:[#allocation6 + $0x3f0] sm:$0xff] }
  0xa2   :  { %773 = vmatpush1.bf16.msra.mxu0 %v772_v45  ;;  %v730_v45 = vpack.c.bf16 %v355_v42, %v351_v41  ;;  %v812_v41 = vpack.c.bf16 %v388_v35, %v384_v33 }
  0xa3   :  { %775 = vmatprep.subr.bf16.mxu0 %v774_v53  ;;  %v363_v53 = vld [vmem:[#allocation6 + $0x2e8] sm:$0xff] }
  0xa4   :  { %731 = vmatprep.subr.bf16.mxu1 %v730_v45  ;;  %v734_v58 = vpack.c.bf16 %v363_v53, %v359_v52  ;;  %v814_v45 = vpack.c.bf16 %v397_v39, %v393_v38  ;;  %v133_v53 = vld [vmem:[#allocation4] sm:$0x3] }
  0xa5   :  { %733 = vmatpush1.bf16.msra.mxu1 %v732_v56 }
  0xa6   :  { %777 = vmatpush1.bf16.msra.mxu0 %v776_v57  ;;  %v796_v57 = vpack.c.bf16 %v356_v51, %v352_v50  ;;  %735 = vmatprep.subr.bf16.mxu1 %v734_v58  ;;  %v135_v50 = vlaneseq }
  0xa7   :  { %779 = vmatprep.subr.bf16.mxu0 %v778_v1  ;;  %v371_v1 = vld [vmem:[#allocation6 + $0x328] sm:$0xff] }
  0xa8   :  { %v738_v6 = vpack.c.bf16 %v371_v1, %v367_v0  ;;  %v1113_v51 = vshrl.u32 %v135_v50, 7 }
  0xa9   :  { %737 = vmatpush1.bf16.msra.mxu1 %v736_v4 }
  0xaa   :  { %781 = vmatpush1.bf16.msra.mxu0 %v780_v5  ;;  %v800_v5 = vpack.c.bf16 %v364_v63, %v360_v61  ;;  %739 = vmatprep.subr.bf16.mxu1 %v738_v6  ;;  %v137_v52 = vsub.s32 0, %v1113_v51  ;;  %v141_v54 = vsub.s32 1, %v1113_v51  ;;  %v414_v50 = vsub.s32 3, %v1113_v51 }
  0xab   :  { %783 = vmatprep.subr.bf16.mxu0 %v782_v13  ;;  %v379_v13 = vld [vmem:[#allocation6 + $0x368] sm:$0xff] }
  0xac   :  { %v138_v55 = vrot.slane %v133_v53, %v137_v52  ;;  %v142_v56 = vrot.slane %v133_v53, %v141_v54 }
  0xad   :  { %741 = vmatpush1.bf16.msra.mxu1 %v740_v16 }
  0xae   :  { %785 = vmatpush1.bf16.msra.mxu0 %v784_v18  ;;  %v742_v18 = vpack.c.bf16 %v379_v13, %v375_v12 }
  0xaf   :  { %787 = vmatprep.subr.bf16.mxu0 %v786_v23  ;;  %v380_v23 = vld [vmem:[#allocation6 + $0x370] sm:$0xff] }
  0xb0   :  { %743 = vmatprep.subr.bf16.mxu1 %v742_v18  ;;  %v808_v29 = vpack.c.bf16 %v380_v23, %v376_v21 }
  0xb1   :  { %745 = vmatpush1.bf16.msra.mxu1 %v744_v28 }
  0xb2   :  { %789 = vmatpush1.bf16.msra.mxu0 %v788_v31  ;;  %v382_v31 = vld [vmem:[#allocation6 + $0x380] sm:$0xff]  ;;  %747 = vmatprep.subr.bf16.mxu1 %v746_v30 }
  0xb3   :  { %791 = vmatprep.subr.bf16.mxu0 %v790_v36  ;;  %v391_v36 = vld [vmem:[#allocation6 + $0x3c8] sm:$0xff]  ;;  %v748_v40 = vpack.c.bf16 %v386_v32, %v382_v31 }
  0xb4   :  { %v750_v42 = vpack.c.bf16 %v395_v37, %v391_v36  ;;  %v997_v36 = vmov -1.0  }
  0xb5   :  { %749 = vmatpush1.bf16.msra.mxu1 %v748_v40 }
  0xb6   :  { %793 = vmatpush1.bf16.msra.mxu0 %v792_v44  ;;  %v394_v44 = vld [vmem:[#allocation6 + $0x3e0] sm:$0xff]  ;;  %751 = vmatprep.subr.bf16.mxu1 %v750_v42 }
  0xb7   :  { %795 = vmatprep.subr.bf16.mxu0 %v794_v49  ;;  %v752_v48 = vpack.c.bf16 %v394_v44, %v390_v43  ;;  %v816_v49 = vpack.c.bf16 %v396_v47, %v392_v46 }
  0xb9   :  { %753 = vmatpush1.bf16.msra.mxu1 %v752_v48  ;;  %v410_v48 = vsub.s32 2, %v1113_v51 }
  0xba   :  { %797 = vmatpush1.bf16.msra.mxu0 %v796_v57 }
  0xbb   :  { %799 = vmatprep.subr.bf16.mxu0 %v798_v62 }
  0xbe   :  { %801 = vmatpush1.bf16.msra.mxu0 %v800_v5 }
  0xbf   :  { %803 = vmatprep.subr.bf16.mxu0 %v802_v10 }
  0xc2   :  { %805 = vmatpush1.bf16.msra.mxu0 %v804_v17 }
  0xc3   :  { %807 = vmatprep.subr.bf16.mxu0 %v806_v22 }
  0xc6   :  { %809 = vmatpush1.bf16.msra.mxu0 %v808_v29 }
  0xc7   :  { %811 = vmatprep.subr.bf16.mxu0 %v810_v34 }
  0xca   :  { %813 = vmatpush1.bf16.msra.mxu0 %v812_v41 }
  0xcb   :  { %815 = vmatprep.subr.bf16.mxu0 %v814_v45 }
  0xce   :  { %817 = vmatpush1.bf16.msra.mxu0 %v816_v49  ;;  %v398_v49 = vld [vmem:[#allocation7] sm:$0xf] }
  0xcf   :  { %v403_v53 = vrot.slane %v398_v49, %v137_v52 }
 0x164   :  { %v211_v57 = vpop.f32.mrb[0].mxu0 }
 0x165   :  { %v212_v58 = vadd.f32 %v211_v57, %v138_v55  ;;  %v213_v59 = vpop.f32.mrb[1].mxu0  ;;  %v411_v55 = vrot.slane %v398_v49, %v410_v48  ;;  %v415_v57 = vrot.slane %v398_v49, %v414_v50 }
 0x166   :  { %v214_v60 = vadd.f32 %v213_v59, %v142_v56  ;;  %v407_v56 = vrot.slane %v398_v49, %v141_v54 }
 0x167   :  { %v218_v61 = vmul.f32 0.70710677, %v212_v58  ;;  %v216_v45 = vmul.f32 0.5, %v212_v58 }
 0x168   :  { %v219_v62 = vmul.f32 0.70710677, %v214_v60  ;;  %v217_v43 = vmul.f32 0.5, %v214_v60 }
 0x169   :  { %v224_v63 = vand.u32 2147483647, %v218_v61  ;;  %vm220_vm0 = vcmp.ge.f32.partialorder %v218_v61, 0.0 }
 0x16a   :  { %v225_v0 = vand.u32 2147483647, %v219_v62  ;;  %vm221_vm1 = vcmp.ge.f32.partialorder %v219_v62, 0.0  ;;  %v222_v37 = vsel %vm220_vm0, 1.0, %v997_v36 }
 0x16b   :  { %v226_v1 = vmul.f32 0.3275911, %v224_v63  ;;  %v252_v5 = vsub.f32 0.0, %v224_v63  ;;  %v223_v39 = vsel %vm221_vm1, 1.0, %v997_v36  ;;  %v653_v36 = vld [vmem:[#allocation9] ss:$0 sm:$0xff] }
 0x16c   :  { %v227_v2 = vmul.f32 0.3275911, %v225_v0  ;;  %v253_v6 = vsub.f32 0.0, %v225_v0 }
 0x16d   :  { %v228_v3 = vadd.f32 1.0, %v226_v1  ;;  %v254_v8 = vmul.f32 %v252_v5, %v224_v63 }
 0x16e   :  { %v229_v4 = vadd.f32 1.0, %v227_v2  ;;  %v255_v10 = vmul.f32 %v253_v6, %v225_v0 }
 0x16f   :  { %830 = vrcp.f32 %v228_v3  ;;  %v256_v14 = vmul.f32 1.442695, %v254_v8 }
 0x170   :  { %832 = vrcp.f32 %v229_v4  ;;  %v258_v16 = vmul.f32 1.442695, %v255_v10 }
 0x171   :  { %834 = vpow2.f32 %v256_v14 }
 0x172   :  { %836 = vpow2.f32 %v258_v16 }
 0x179   :  { %v831_v7 = vpop.eup %830 }
 0x17a   :  { %v833_v9 = vpop.eup %832  ;;  %v234_v11 = vmul.f32 1.0614054, %v831_v7 }
 0x17b   :  { %v235_v12 = vmul.f32 1.0614054, %v833_v9  ;;  %v835_v30 = vpop.eup %834 }
 0x17c   :  { %v236_v13 = vadd.f32 -1.4531521, %v234_v11  ;;  %v837_v32 = vpop.eup %836 }
 0x17d   :  { %v237_v15 = vadd.f32 -1.4531521, %v235_v12 }
 0x17e   :  { %v238_v17 = vmul.f32 %v831_v7, %v236_v13 }
 0x17f   :  { %v239_v18 = vmul.f32 %v833_v9, %v237_v15 }
 0x180   :  { %v240_v19 = vadd.f32 1.4214138, %v238_v17 }
 0x181   :  { %v241_v20 = vadd.f32 1.4214138, %v239_v18 }
 0x182   :  { %v242_v21 = vmul.f32 %v831_v7, %v240_v19 }
 0x183   :  { %v243_v22 = vmul.f32 %v833_v9, %v241_v20 }
 0x184   :  { %v244_v23 = vadd.f32 -0.28449672, %v242_v21 }
 0x185   :  { %v245_v24 = vadd.f32 -0.28449672, %v243_v22 }
 0x186   :  { %v246_v25 = vmul.f32 %v831_v7, %v244_v23 }
 0x187   :  { %v247_v26 = vmul.f32 %v833_v9, %v245_v24 }
 0x188   :  { %v248_v27 = vadd.f32 0.2548296, %v246_v25 }
 0x189   :  { %v249_v28 = vadd.f32 0.2548296, %v247_v26 }
 0x18a   :  { %v250_v29 = vmul.f32 %v831_v7, %v248_v27 }
 0x18b   :  { %v251_v31 = vmul.f32 %v833_v9, %v249_v28 }
 0x18c   :  { %v260_v33 = vmul.f32 %v835_v30, %v250_v29 }
 0x18d   :  { %v261_v34 = vmul.f32 %v837_v32, %v251_v31 }
 0x18e   :  { %v262_v35 = vsub.f32 1.0, %v260_v33 }
 0x18f   :  { %v263_v38 = vsub.f32 1.0, %v261_v34 }
 0x190   :  { %v264_v40 = vmul.f32 %v262_v35, %v222_v37 }
 0x191   :  { %v265_v41 = vmul.f32 %v263_v38, %v223_v39  ;;  %v654_v38 = vld [vmem:[#allocation10] ss:$0 sm:$0xff] }
 0x192   :  { %v266_v42 = vadd.f32 1.0, %v264_v40 }
 0x193   :  { %v267_v44 = vadd.f32 1.0, %v265_v41 }
 0x194   :  { %v268_v47 = vmul.f32 %v266_v42, %v216_v45 }
 0x195   :  { %v269_v46 = vmul.f32 %v267_v44, %v217_v43 }
 0x197   :  { %484 = vmatprep.mubr.f32.mxu1 %v269_v46  ;;  %555 = vmatprep.mubr.f32.mxu0 %v269_v46 }
 0x198   :  { %485 = vmatmul.mubr.f32.vlgmr.msra.gmra.mrb[0].mxu1 %v268_v47  ;;  %556 = vmatmul.mubr.f32.vlgmr.msra.gmra.mrb[2].mxu0 %v268_v47 }
 0x26b   :  { %v486_v58 = vpop.f32.mrb[0].mxu1  ;;  %v557_v59 = vpop.f32.mrb[2].mxu0 }
 0x26c   :  { %v487_v60 = vadd.f32 %v486_v58, %v403_v53  ;;  %v558_v61 = vadd.f32 %v557_v59, %v411_v55  ;;  %v488_v62 = vpop.f32.mrb[1].mxu1  ;;  %v559_v63 = vpop.f32.mrb[3].mxu0 }
 0x26d   :  { %v489_v0 = vadd.f32 %v488_v62, %v407_v56  ;;  %v560_v1 = vadd.f32 %v559_v63, %v415_v57 }
 0x26e   :  { %v611_v2 = vsel %vm564_vm2, %v558_v61, 0.0  ;;  %v565_v3 = vsel %vm564_vm2, %v487_v60, 0.0 }
 0x26f   :  { %612 = vadd.xlane.f32.xlu1 %v611_v2  ;;  %566 = vadd.xlane.f32.xlu0 %v565_v3  ;;  %v628_v52 = vsel %vm564_vm2, %v560_v1, 0.0  ;;  %v594_v51 = vsel %vm564_vm2, %v489_v0, 0.0 }
 0x273   :  { %629 = vadd.xlane.f32.xlu1 %v628_v52  ;;  %595 = vadd.xlane.f32.xlu0 %v594_v51 }
 0x2fc   :  { %v613_v54 = vpop.xlane.xlu1 %612  ;;  %v567_v4 = vpop.xlane.xlu0 %566 }
 0x2fd   :  { %v614_v5 = vmul.f32 0.0078125, %v613_v54  ;;  %v569_v6 = vmul.f32 0.0078125, %v567_v4 }
 0x2ff   :  { %v615_v7 = vsub.f32 %v558_v61, %v614_v5  ;;  %v570_v8 = vsub.f32 %v487_v60, %v569_v6 }
 0x300   :  { %v630_v9 = vpop.xlane.xlu1 %629  ;;  %v596_v10 = vpop.xlane.xlu0 %595 }
 0x301   :  { %v631_v11 = vmul.f32 0.0078125, %v630_v9  ;;  %v597_v12 = vmul.f32 0.0078125, %v596_v10  ;;  %v571_v13 = vmul.f32 %v570_v8, %v570_v8  ;;  %v616_v17 = vmul.f32 %v615_v7, %v615_v7 }
 0x303   :  { %v632_v14 = vsub.f32 %v560_v1, %v631_v11  ;;  %v598_v15 = vsub.f32 %v489_v0, %v597_v12  ;;  %v572_v16 = vsel %vm564_vm2, %v571_v13, 0.0  ;;  %v617_v19 = vsel %vm564_vm2, %v616_v17, 0.0 }
 0x304   :  { %573 = vadd.xlane.f32.xlu0 %v572_v16 }
 0x305   :  { %v599_v18 = vmul.f32 %v598_v15, %v598_v15  ;;  %v633_v21 = vmul.f32 %v632_v14, %v632_v14 }
 0x307   :  { %v600_v20 = vsel %vm564_vm2, %v599_v18, 0.0  ;;  %v634_v22 = vsel %vm564_vm2, %v633_v21, 0.0 }
 0x308   :  { %618 = vadd.xlane.f32.xlu0 %v617_v19  ;;  %601 = vadd.xlane.f32.xlu1 %v600_v20 }
 0x30c   :  { %635 = vadd.xlane.f32.xlu1 %v634_v22 }
 0x391   :  { %v574_v23 = vpop.xlane.xlu0 %573 }
 0x392   :  { %v575_v24 = vmul.f32 0.0078125, %v574_v23 }
 0x394   :  { %v576_v25 = vadd.f32 1e-05, %v575_v24 }
 0x395   :  { %v602_v26 = vpop.xlane.xlu1 %601  ;;  %v619_v27 = vpop.xlane.xlu0 %618 }
 0x396   :  { %838 = vrsqrt.f32 %v576_v25  ;;  %v603_v28 = vmul.f32 0.0078125, %v602_v26  ;;  %v620_v29 = vmul.f32 0.0078125, %v619_v27 }
 0x398   :  { %v604_v30 = vadd.f32 1e-05, %v603_v28  ;;  %v621_v31 = vadd.f32 1e-05, %v620_v29 }
 0x399   :  { %v636_v32 = vpop.xlane.xlu1 %635 }
 0x39a   :  { %840 = vrsqrt.f32 %v604_v30  ;;  %v637_v33 = vmul.f32 0.0078125, %v636_v32 }
 0x39b   :  { %842 = vrsqrt.f32 %v621_v31 }
 0x39c   :  { %v638_v34 = vadd.f32 1e-05, %v637_v33 }
 0x39e   :  { %844 = vrsqrt.f32 %v638_v34 }
 0x3a0   :  { %v839_v35 = vpop.eup %838 }
 0x3a1   :  { %v578_v37 = vmul.f32 %v839_v35, %v570_v8 }
 0x3a3   :  { %v585_v39 = vmul.f32 %v653_v36, %v578_v37 }
 0x3a4   :  { %v841_v40 = vpop.eup %840 }
 0x3a5   :  { %v843_v41 = vpop.eup %842  ;;  %v592_v42 = vadd.f32 %v654_v38, %v585_v39  ;;  %v606_v43 = vmul.f32 %v841_v40, %v598_v15 }
 0x3a6   :  { %v623_v44 = vmul.f32 %v843_v41, %v615_v7 }
 0x3a7   :  { %593 = vst [vmem:[%s1154_s7] sm:$0x3] %v592_v42  ;;  %v607_v45 = vmul.f32 %v653_v36, %v606_v43 }
 0x3a8   :  { %v845_v46 = vpop.eup %844  ;;  %v624_v47 = vmul.f32 %v653_v36, %v623_v44 }
 0x3a9   :  { %v608_v48 = vadd.f32 %v654_v38, %v607_v45  ;;  %v640_v49 = vmul.f32 %v845_v46, %v632_v14 }
 0x3aa   :  { %v625_v50 = vadd.f32 %v654_v38, %v624_v47 }
 0x3ab   :  { %655 = vst [vmem:[%s1154_s7 + $0x2] sm:$0x3] %v608_v48  ;;  %v641_v53 = vmul.f32 %v653_v36, %v640_v49 }
 0x3ac   :  { %656 = vst [vmem:[%s1154_s7 + $0x4] sm:$0x3] %v625_v50 }
 0x3ad   :  { %v642_v55 = vadd.f32 %v654_v38, %v641_v53 }
 0x3af   :  { %657 = vst [vmem:[%s1154_s7 + $0x6] sm:$0x3] %v642_v55 }
 0x3b0   :  { %649 = vsyncpa [#allocation3], 1 }
 0x3b1   :  { %650 = vsyncpa [#allocation5], 1 }
 0x3b2   :  { %651 = vsyncpa [#allocation8], 1 }
 0x3b3   :  { %652 = vsyncpa [#allocation11], 1 }

// kernel: proj_plus_forward.3
= control target key start
LH: loop header
LB: loop body
LE: loop exit
PB: predicated region body
PF: predicated region fallthrough
CT: control target
= control target key end

     0   :  { %s7708_s0 = inlined_call_operand.vmem [shape: f32[2,8,128], index: 0, kind: input, shape index: {}]   ;;  %s7709_s1 = inlined_call_operand.vmem [shape: f32[2,4,128], index: 1, kind: input, shape index: {}]   ;;  %s7710_s2 = inlined_call_operand.vmem [shape: f32[128,128], index: 2, kind: input, shape index: {}]   ;;  %s7711_s3 = inlined_call_operand.vmem [shape: f32[1,128], index: 3, kind: input, shape index: {}]   ;;  %s7712_s4 = inlined_call_operand.vmem [shape: f32[4,1,128], index: 4, kind: input, shape index: {}]   ;;  %s7713_s5 = inlined_call_operand.vmem [shape: f32[4,1,128], index: 5, kind: input, shape index: {}]   ;;  %s7714_s6 = inlined_call_operand.vmem [shape: f32[4,1,128], index: 6, kind: input, shape index: {}]   ;;  %s7715_s7 = inlined_call_operand.vmem [shape: f32[4,1,128], index: 7, kind: input, shape index: {}]   ;;  %s7716_s8 = inlined_call_operand.hbm [shape: f32[4,128,128], index: 8, kind: input, shape index: {}]   ;;  %s7717_s9 = inlined_call_operand.vmem [shape: f32[4,128,256], index: 9, kind: input, shape index: {}]   ;;  %s7718_s10 = inlined_call_operand.hbm [shape: f32[4,128,128], index: 10, kind: input, shape index: {}]   ;;  %s7719_s11 = inlined_call_operand.vmem [shape: f32[4,1,128], index: 11, kind: input, shape index: {}]   ;;  %s7720_s12 = inlined_call_operand.vmem [shape: f32[4,1,128], index: 12, kind: input, shape index: {}]   ;;  %s7721_s13 = inlined_call_operand.hbm [shape: f32[4,128,512], index: 13, kind: input, shape index: {}]   ;;  %s7722_s14 = inlined_call_operand.hbm [shape: f32[4,512,128], index: 14, kind: input, shape index: {}]   ;;  %s7723_s15 = inlined_call_operand.vmem [shape: f32[128,128], index: 15, kind: input, shape index: {}]   ;;  %s7724_s16 = inlined_call_operand.vmem [shape: f32[1,128], index: 16, kind: input, shape index: {}]   ;;  %s7725_s17 = inlined_call_operand.vmem [shape: f32[1,128], index: 17, kind: input, shape index: {}]   ;;  %s7726_s18 = inlined_call_operand.vmem [shape: f32[1,128], index: 18, kind: input, shape index: {}]   ;;  %s7727_s19 = inlined_call_operand.hbm [shape: f32[2,4,128], index: 19, kind: output, shape index: {}]  }
   0x1   :  { %7820 = sst [smem:[#allocation93_spill]] %s7708_s0 }
   0x2   :  { %7821 = sst [smem:[#allocation94_spill]] %s7709_s1 }
   0x3   :  { %7822 = sst [smem:[#allocation95_spill]] %s7710_s2 }
   0x4   :  { %7823 = sst [smem:[#allocation96_spill]] %s7711_s3 }
   0x5   :  { %7824 = sst [smem:[#allocation97_spill]] %s7712_s4 }
   0x6   :  { %7825 = sst [smem:[#allocation98_spill]] %s7713_s5 }
   0x7   :  { %7826 = sst [smem:[#allocation99_spill]] %s7714_s6 }
   0x8   :  { %7827 = sst [smem:[#allocation100_spill]] %s7716_s8 }
   0x9   :  { %7828 = sst [smem:[#allocation101_spill]] %s7718_s10 }
   0xa   :  { %7829 = sst [smem:[#allocation102_spill]] %s7720_s12 }
   0xb   :  { %7830 = sst [smem:[#allocation103_spill]] %s7721_s13 }
   0xc   :  { %7831 = sst [smem:[#allocation104_spill]] %s7723_s15 }
   0xd   :  { %7832 = sst [smem:[#allocation105_spill]] %s7724_s16 }
   0xe   :  { %7833 = sst [smem:[#allocation106_spill]] %s7725_s17 }
   0xf   :  { %7834 = sst [smem:[#allocation107_spill]] %s7726_s18 }
  0x10   :  { %7835 = sst [smem:[#allocation108_spill]] %s7727_s19 }
  0x11   :  { %24 = vsyncpa [#allocation5], 0 }
  0x12   :  { %26 = vsyncpa [#allocation5 + $0x1], 0 }
  0x13   :  { %27 = vsyncpa [#allocation8], 0 }
  0x14   :  { %29 = vsyncpa [#allocation8 + $0x1], 0 }
  0x15   :  { %30 = vsyncpa [#allocation11], 0 }
  0x16   :  { %32 = vsyncpa [#allocation11 + $0x1], 0 }
  0x17   :  { %33 = vsyncpa [#allocation6], 0  ;;  %s6358_s0 = smov 0   ;;  %s6360_s30 = smov 0  }
  0x18   :  { %s6362_s20 = smov 0   ;;  %s6364_s21 = smov 0  }
  0x19 LB: > { %7836 = sst [smem:[#allocation17_spill]] %s6231_s20  ;;  %s6377_s1 = sadd.s32 4294967295, %s6235_s21   ;;  %s6235_s21 = sphi %s6364_s21, %s8016_s21   ;;  %s6231_s20 = sphi %s6362_s20, %s8018_s20   ;;  %s6227_s30 = sphi %s6360_s30, %s8020_s30   ;;  %s6223_s0 = sphi %s6358_s0, %s8019_s0  }
  0x1a   : > { %s6380_s22 = sadd.s32 1, %s6235_s21   ;;  %s234_s23 = sadd.s32 1, %s6231_s20 }
  0x1b   : > { %7837 = sst [smem:[#allocation18_spill]] %s6380_s22  ;;  %s231_s2 = ssub.s32 %s6235_s21, %s6380_s22 }
  0x1c   : > { %p232_p0 = scmp.eq.s32.totalorder %s231_s2, 0  ;;  %p241_p1 = scmp.ne.s32.totalorder %s6231_s20, %s6227_s30 }
  0x1d   : > { %p242_p2 = scmp.eq.s32.totalorder %s6235_s21, 0  ;;  %p247_p3 = scmp.ne.s32.totalorder %s6227_s30, %s6223_s0 }
  0x1e   : > { %s6390_s24 = scalar_select %p232_p0, %s6231_s20, %s234_s23  }
  0x1f   : > { %p243_p4 = por %p242_p2, %p241_p1  ;;  %p248_p5 = scmp.eq.s32.totalorder %s6377_s1, 0 }
  0x20   : > { %7838 = sst [smem:[#allocation19_spill]] %s6390_s24  ;;  %p5912_p6 = scmp.lt.s32.totalorder %s6235_s21, 4 }
  0x21   : > { %p6394_p7 = por %p248_p5, %p247_p3  ;;  %s6399_s3 = sand.u32 1, %s6231_s20  }
  0x22   : > { %s7734_s26 = sshll.u32 %s6399_s3, 7  ;;  %s7735_s27 = sshll.u32 %s6235_s21, 11 }
  0x23   : > { %s7839_s25 = scalar_select %p6394_p7, 1, 0 }
  0x24   : > { %p6403_p8 = pnand %p5912_p6, %p243_p4  ;;  %s609_s29 = sand.u32 1, %s6235_s21  }
  0x25   : > { %s7841_s10 = sld [smem:[#allocation101_spill]]  ;;  %s613_s24 = scalar_lea.vmem [#allocation7], %s7734_s26 }
  0x26   : > { %s620_s20 = sshll.u32 %s613_s24, 4  ;;  %s6421_s22 = scalar_lea.sflag [#allocation8], %s609_s29  ;;  %s6418_s20 = int_to_ptr.vmem [resolvable:$true] %s620_s20 }
  0x27   : > { %p6427_p12 = pneg %p6403_p8 }
  0x2b   : > { %s6413_s23 = scalar_lea.hbm %s7841_s10, %s7735_s27  ;;  %s6048_s24 = scalar_lea.hbm %s7841_s10, 8192 }
  0x2c   : > { %s6043_s19 = scalar_lea.hbm %s6413_s23, 2048  ;;  %p6049_p1 = scmp.lt.u32.totalorder %s6413_s23, %s7841_s10 }
  0x2d   : > { %p6044_p11 = scmp.ne.s32.totalorder %s6413_s23, %s6043_s19  ;;  %p6050_p2 = scmp.lt.u32.totalorder %s6048_s24, %s6043_s19 }
  0x2e   : > { %p6052_p4 = scmp.lt.u32.totalorder %s6043_s19, %s6413_s23 }
  0x2f   : > { %p6046_p13 = pnand %p6427_p12, %p6044_p11  ;;  %p6051_p3 = por %p6050_p2, %p6049_p1 }
  0x31   : > { %p6047_p0 = pneg %p6046_p13  ;;  %p6053_p5 = por %p6052_p4, %p6051_p3 }
  0x33   : > { %p6054_p6 = pnand %p6053_p5, %p6047_p0 }
  0x35   : > { %6057 = shalt.err (!%p6054_p6)
}
  0x36   : > { %s6058_s29 = scalar_lea.vmem %s6418_s20, 2048  ;;  %s6237_s26 = smov [#allocation7]  }
  0x37   : > { %p6059_p11 = scmp.ne.s32.totalorder %s6418_s20, %s6058_s29  ;;  %s6063_s2 = sshll.u32 %s6237_s26, 4  ;;  %s6064_s2 = int_to_ptr.vmem [resolvable:$false] %s6063_s2 }
  0x38   : > { %s6065_s18 = scalar_lea.vmem %s6064_s2, 4096  ;;  %p6066_p10 = scmp.lt.s32.totalorder %s6418_s20, %s6064_s2 }
  0x39   : > { %p6061_p13 = pnand %p6059_p11, %p6427_p12  ;;  %p6067_p7 = scmp.lt.s32.totalorder %s6065_s18, %s6058_s29 }
  0x3b   : > { %p6062_p9 = pneg %p6061_p13  ;;  %p6068_p1 = por %p6067_p7, %p6066_p10 }
  0x3d   : > { %p6069_p2 = pnand %p6068_p1, %p6062_p9 }
  0x3f   : > { %6072 = shalt.err (!%p6069_p2)
}
  0x40   : > { %s7737_s19 = smov 128   ;;  %s7739_s27 = smov 8  }
  0x41   : > { %5905 = dma.hbm_to_vmem [thread:$0]  (!%p6403_p8), %s6413_s23, 2048, %s6418_s20, %s6421_s22, %s7737_s19, %s7737_s19, %s7739_s27  }
  0x42   : > { %p7843_p7 = scmp.lt.s32.totalorder %s6235_s21, 5  ;;  %p7844_p9 = scmp.ge.s32.totalorder %s6235_s21, 1 }
  0x43   : > { %s7846_s29 = sshll.u32 %s6235_s21, 11  ;;  %s7847_s8 = sld [smem:[#allocation100_spill]] }
  0x44   : > { %p6458_p10 = pnand %p7844_p9, %p7843_p7  ;;  %s7848_s10 = sshll.u32 %s6399_s3, 7 }
  0x45   : > { %s584_s17 = scalar_lea.vmem [#allocation4], %s7848_s10  ;;  %s7742_s20 = sshll.u32 %s6399_s3, 9 }
  0x46   : > { %s7845_s24 = scalar_select %p6458_p10, 1, 0 }
  0x47   : > { %s591_s16 = sshll.u32 %s584_s17, 4  ;;  %s581_s23 = scalar_lea.sflag [#allocation5], %s6399_s3  ;;  %s6472_s16 = int_to_ptr.vmem [resolvable:$true] %s591_s16 }
  0x49   : > { %s6467_s18 = scalar_lea.hbm %s7847_s8, %s7846_s29  ;;  %s6078_s29 = scalar_lea.hbm %s7847_s8, 8192 }
  0x4a   : > { %s6073_s19 = scalar_lea.hbm %s6467_s18, 2048  ;;  %p6079_p5 = scmp.lt.u32.totalorder %s6467_s18, %s7847_s8 }
  0x4b   : > { %p6074_p0 = scmp.ne.s32.totalorder %s6467_s18, %s6073_s19  ;;  %p6080_p6 = scmp.lt.u32.totalorder %s6078_s29, %s6073_s19 }
  0x4c   : > { %p6082_p13 = scmp.lt.u32.totalorder %s6073_s19, %s6467_s18 }
  0x4d   : > { %p6076_p3 = pnand %p6074_p0, %p6427_p12  ;;  %p6081_p11 = por %p6080_p6, %p6079_p5 }
  0x4f   : > { %p6077_p4 = pneg %p6076_p3  ;;  %p6083_p1 = por %p6082_p13, %p6081_p11 }
  0x51   : > { %p6084_p2 = pnand %p6083_p1, %p6077_p4 }
  0x53   : > { %6087 = shalt.err (!%p6084_p2)
}
  0x54   : > { %s6088_s10 = scalar_lea.vmem %s6472_s16, 2048  ;;  %s6240_s17 = smov [#allocation4]  }
  0x55   : > { %p6089_p7 = scmp.ne.s32.totalorder %s6472_s16, %s6088_s10  ;;  %s6093_s27 = sshll.u32 %s6240_s17, 4  ;;  %s6094_s27 = int_to_ptr.vmem [resolvable:$false] %s6093_s27 }
  0x56   : > { %s6095_s15 = scalar_lea.vmem %s6094_s27, 4096  ;;  %p6096_p3 = scmp.lt.s32.totalorder %s6472_s16, %s6094_s27 }
  0x57   : > { %p6091_p9 = pnand %p6089_p7, %p6427_p12  ;;  %p6097_p10 = scmp.lt.s32.totalorder %s6095_s15, %s6088_s10 }
  0x59   : > { %p6092_p0 = pneg %p6091_p9  ;;  %p6098_p5 = por %p6097_p10, %p6096_p3 }
  0x5b   : > { %p6099_p6 = pnand %p6098_p5, %p6092_p0 }
  0x5d   : > { %6102 = shalt.err (!%p6099_p6)
}
  0x5e   : > { %s7849_s19 = smov 8   ;;  %s7850_s26 = smov 128  }
  0x5f   : > { %5902 = dma.hbm_to_vmem [thread:$0]  (!%p6403_p8), %s6467_s18, 2048, %s6472_s16, %s581_s23, %s7850_s26, %s7850_s26, %s7849_s19  }
  0x60   : > { %s4624_s29 = sshll.u32 %s6235_s21, 13  ;;  %s646_s2 = scalar_lea.vmem [#allocation9], %s7742_s20 }
  0x61   : > { %s653_s10 = sshll.u32 %s646_s2, 4  ;;  %s7851_s13 = sld [smem:[#allocation103_spill]]  ;;  %s6511_s10 = int_to_ptr.vmem [resolvable:$true] %s653_s10 }
  0x67   : > { %s6509_s15 = scalar_lea.hbm %s7851_s13, %s4624_s29  ;;  %s6108_s23 = scalar_lea.hbm %s7851_s13, 32768 }
  0x68   : > { %s6103_s8 = scalar_lea.hbm %s6509_s15, 8192  ;;  %p6109_p13 = scmp.lt.u32.totalorder %s6509_s15, %s7851_s13 }
  0x69   : > { %p6104_p10 = scmp.ne.s32.totalorder %s6509_s15, %s6103_s8  ;;  %p6110_p1 = scmp.lt.u32.totalorder %s6108_s23, %s6103_s8 }
  0x6a   : > { %p6112_p7 = scmp.lt.u32.totalorder %s6103_s8, %s6509_s15 }
  0x6b   : > { %p6106_p4 = pnand %p6104_p10, %p6427_p12  ;;  %p6111_p2 = por %p6110_p1, %p6109_p13 }
  0x6d   : > { %p6107_p11 = pneg %p6106_p4  ;;  %p6113_p9 = por %p6112_p7, %p6111_p2 }
  0x6f   : > { %p6114_p0 = pnand %p6113_p9, %p6107_p11 }
  0x71   : > { %6117 = shalt.err (!%p6114_p0)
}
  0x72   : > { %s6118_s17 = scalar_lea.vmem %s6511_s10, 8192  ;;  %s6241_s27 = smov [#allocation9]  }
  0x73   : > { %p6119_p3 = scmp.ne.s32.totalorder %s6511_s10, %s6118_s17  ;;  %s6123_s16 = sshll.u32 %s6241_s27, 4  ;;  %s6124_s16 = int_to_ptr.vmem [resolvable:$false] %s6123_s16 }
  0x74   : > { %s6125_s20 = scalar_lea.vmem %s6124_s16, 16384  ;;  %p6126_p10 = scmp.lt.s32.totalorder %s6511_s10, %s6124_s16 }
  0x75   : > { %p6121_p5 = pnand %p6119_p3, %p6427_p12  ;;  %p6127_p4 = scmp.lt.s32.totalorder %s6125_s20, %s6118_s17 }
  0x77   : > { %p6122_p6 = pneg %p6121_p5  ;;  %p6128_p13 = por %p6127_p4, %p6126_p10 }
  0x79   : > { %p6129_p1 = pnand %p6128_p13, %p6122_p6 }
  0x7b   : > { %6132 = shalt.err (!%p6129_p1)
}
  0x7c   : > { %s6242_s8 = smov 512   ;;  %s6243_s18 = smov 32  }
  0x7d   : > { %5908 = dma.hbm_to_vmem [thread:$0]  (!%p6403_p8), %s6509_s15, 8192, %s6511_s10, %s6421_s22, %s6242_s8, %s6242_s8, %s6243_s18  }
  0x7e   : > { %s6540_s17 = scalar_lea.hbm %s7722_s14, %s4624_s29  ;;  %s7852_s27 = sshll.u32 %s6399_s3, 9 }
  0x7f   : > { %s667_s16 = scalar_lea.vmem [#allocation10], %s7852_s27  ;;  %s664_s13 = scalar_lea.sflag [#allocation11], %s6399_s3 }
  0x80   : > { %s674_s20 = sshll.u32 %s667_s16, 4  ;;  %s6133_s12 = scalar_lea.hbm %s6540_s17, 8192  ;;  %s6544_s20 = int_to_ptr.vmem [resolvable:$true] %s674_s20 }
  0x81   : > { %p6134_p11 = scmp.ne.s32.totalorder %s6540_s17, %s6133_s12  ;;  %s6138_s29 = scalar_lea.hbm %s7722_s14, 32768 }
  0x82   : > { %p6139_p9 = scmp.lt.u32.totalorder %s6540_s17, %s7722_s14  ;;  %p6140_p0 = scmp.lt.u32.totalorder %s6138_s29, %s6133_s12 }
  0x83   : > { %p6136_p2 = pnand %p6134_p11, %p6427_p12  ;;  %p6142_p5 = scmp.lt.u32.totalorder %s6133_s12, %s6540_s17 }
  0x84   : > { %p6141_p3 = por %p6140_p0, %p6139_p9 }
  0x85   : > { %p6137_p7 = pneg %p6136_p2 }
  0x86   : > { %p6143_p6 = por %p6142_p5, %p6141_p3 }
  0x88   : > { %p6144_p10 = pnand %p6143_p6, %p6137_p7 }
  0x8a   : > { %6147 = shalt.err (!%p6144_p10)
}
  0x8b   : > { %s6148_s8 = scalar_lea.vmem %s6544_s20, 8192  ;;  %s6244_s18 = smov [#allocation10]  }
  0x8c   : > { %p6149_p4 = scmp.ne.s32.totalorder %s6544_s20, %s6148_s8  ;;  %s6153_s23 = sshll.u32 %s6244_s18, 4  ;;  %s6154_s23 = int_to_ptr.vmem [resolvable:$false] %s6153_s23 }
  0x8d   : > { %s6155_s2 = scalar_lea.vmem %s6154_s23, 16384  ;;  %p6156_p11 = scmp.lt.s32.totalorder %s6544_s20, %s6154_s23 }
  0x8e   : > { %p6151_p13 = pnand %p6149_p4, %p6427_p12  ;;  %p6157_p2 = scmp.lt.s32.totalorder %s6155_s2, %s6148_s8 }
  0x90   : > { %p6152_p1 = pneg %p6151_p13  ;;  %p6158_p9 = por %p6157_p2, %p6156_p11 }
  0x92   : > { %p6159_p0 = pnand %p6158_p9, %p6152_p1 }
  0x94   : > { %6162 = shalt.err (!%p6159_p0)
}
  0x95   : > { %5911 = dma.hbm_to_vmem [thread:$0]  (!%p6403_p8), %s6540_s17, 8192, %s6544_s20, %s664_s13, %s7850_s26, %s7850_s26, %s7849_s19  }
  0x96   : > { %p7853_p12 = scmp.ne.s32.totalorder %s7845_s24, 0 }
  0x98   : > { %686 = sbr.rel (%p7853_p12) target bundleno = 5637 (0x1605), region = 96 }
  0x9f   : > { %s688_s12 = sand.u32 1, %s6227_s30   ;;  %p7854_p7 = scmp.ne.s32.totalorder %s7839_s25, 0 }
  0xa0   : > { %s4567_s0 = sshll.u32 %s688_s12, 7  ;;  %s689_s27 = scalar_lea.sflag [#allocation5], %s688_s12 }
  0xa1   : > { %s6576_s16 = scalar_lea.vmem [#allocation4], %s4567_s0 }
  0xa2   : > { %6206 = dma.done.wait (%p7854_p7), %s689_s27, 2048  }
  0xa3   : > { %6208 = vsyncadd (%p7854_p7), %s689_s27, 4294965248  ;;  %s697_s3 = sand.u32 1, %s6377_s1   ;;  %s6583_s13 = scalar_lea.vmem [#allocation7], %s4567_s0 }
  0xa4   : > { %s698_s28 = scalar_lea.sflag [#allocation8], %s697_s3 }
  0xa5   : > { %6210 = dma.done.wait (%p7854_p7), %s698_s28, 10240  }
  0xa6   : > { %6212 = vsyncadd (%p7854_p7), %s698_s28, 4294957056  ;;  %s4569_s24 = sshll.u32 %s688_s12, 9  ;;  %s716_s26 = scalar_lea.sflag [#allocation11], %s688_s12 }
  0xa7   : > { %s6589_s19 = scalar_lea.vmem [#allocation9], %s4569_s24  ;;  %s6591_s17 = scalar_lea.vmem [#allocation10], %s4569_s24 }
  0xa8   : > { %6214 = dma.done.wait (%p7854_p7), %s716_s26, 8192  }
  0xa9   : > { %6216 = vsyncadd (%p7854_p7), %s716_s26, 4294959104  ;;  %p807_p8 = scmp.lt.s32.totalorder %s6377_s1, 3  ;;  %s7855_s4 = sld [smem:[#allocation97_spill]] }
  0xaa   : > { %s7856_s5 = sld [smem:[#allocation98_spill]]  ;;  %s7857_s6 = sld [smem:[#allocation99_spill]] }
  0xab   : > { %s808_s20 = scalar_select %p807_p8, %s6377_s1, 3 }
  0xac   : > { %s7858_s18 = sld [smem:[#allocation102_spill]]  ;;  %p4573_p3 = scmp.ne.s32.totalorder %s6377_s1, 0 }
  0xad   : > { %s6617_s0 = scalar_lea.vmem %s7715_s7, %s808_s20  ;;  %s4626_s27 = sshll.u32 %s808_s20, 8  ;;  %v6245_v3 = vmov (!%p4573_p3), 0.0|0.0   ;;  %vm6246_vm0 = vmmov (!%p4573_p3), 0   ;;  %v6247_v7 = vmov (!%p4573_p3), 0.0  }
  0xae   : > { %s6622_s24 = scalar_lea.vmem %s7719_s11, %s808_s20  ;;  %s6627_s22 = scalar_lea.vmem %s7717_s9, %s4626_s27  ;;  %5303 = vmatprep.subr.bf16.mxu0 (!%p4573_p3), %v6245_v3  ;;  %5327 = vmatprep.subr.bf16.mxu1 (!%p4573_p3), %v6245_v3 }
  0xaf   : > { %s6602_s29 = scalar_lea.vmem %s7855_s4, %s808_s20  ;;  %833 = sbr.rel (%p4573_p3) target bundleno = 433 (0x1b1), region = 116  ;;  %4969 = vmatprep.mubr.msk.f32.mxu0 (!%p4573_p3), %vm6246_vm0, %v6247_v7  ;;  %5004 = vmatprep.mubr.msk.f32.mxu1 (!%p4573_p3), %vm6246_vm0, %v6247_v7 }
  0xb0   : > { %s6607_s8 = scalar_lea.vmem %s7856_s5, %s808_s20  ;;  %s6612_s2 = scalar_lea.vmem %s7857_s6, %s808_s20 }
  0xb1   : > { %s7859_s4 = sld [smem:[#allocation94_spill]] (!%p4573_p3)  ;;  %s7860_s5 = sld [smem:[#allocation95_spill]] (!%p4573_p3) }
  0xb2   : > { %s6632_s23 = scalar_lea.vmem %s7858_s18, %s808_s20  ;;  %s7862_s12 = sld [smem:[#allocation96_spill]] (!%p4573_p3) }
  0xb7   : > { %v834_v0 = vld [vmem:[%s7859_s4] sm:$0xff]   ;;  %v839_v2 = vld [vmem:[%s7860_s5 + $0x8] sm:$0xff]  ;;  %v840_v5 = vld [vmem:[%s7860_s5 + $0x10] sm:$0xff]  ;;  %s7861_s4 = sld [smem:[#allocation93_spill]] }
  0xb8   : > { %v838_v1 = vld [vmem:[%s7860_s5] sm:$0xff]  ;;  %836 = vst [vmem:[#allocation3] sm:$0xff] %v834_v0   ;;  %v841_v6 = vld [vmem:[%s7860_s5 + $0x18] sm:$0xff]  ;;  %v843_v10 = vld [vmem:[%s7860_s5 + $0x28] sm:$0xff] }
  0xb9   : > { %v5304_v4 = vpack.c.bf16 %v839_v2, %v838_v1  ;;  %v5307_v8 = vpack.c.bf16 %v841_v6, %v840_v5  ;;  %v842_v9 = vld [vmem:[%s7860_s5 + $0x20] sm:$0xff]  ;;  %v844_v12 = vld [vmem:[%s7860_s5 + $0x30] sm:$0xff]  ;;  %v845_v13 = vld [vmem:[%s7860_s5 + $0x38] sm:$0xff] }
  0xba   : > { %v5310_v11 = vpack.c.bf16 %v843_v10, %v842_v9  ;;  %v5313_v14 = vpack.c.bf16 %v845_v13, %v844_v12  ;;  %v846_v15 = vld [vmem:[%s7860_s5 + $0x40] sm:$0xff]  ;;  %v847_v16 = vld [vmem:[%s7860_s5 + $0x48] sm:$0xff]  ;;  %v848_v18 = vld [vmem:[%s7860_s5 + $0x50] sm:$0xff] }
  0xbb   : > { %5305 = vmatpush3.bf16.msra.mxu0 %v5304_v4  ;;  %5329 = vmatpush3.bf16.msra.mxu1 %v5304_v4  ;;  %v5316_v17 = vpack.c.bf16 %v847_v16, %v846_v15  ;;  %v849_v19 = vld [vmem:[%s7860_s5 + $0x58] sm:$0xff]  ;;  %v850_v21 = vld [vmem:[%s7860_s5 + $0x60] sm:$0xff]  ;;  %v851_v22 = vld [vmem:[%s7860_s5 + $0x68] sm:$0xff] }
  0xbc   : > { %5306 = vmatprep.subr.bf16.mxu0 %v6245_v3  ;;  %5330 = vmatprep.subr.bf16.mxu1 %v6245_v3  ;;  %v5319_v20 = vpack.c.bf16 %v849_v19, %v848_v18  ;;  %v5322_v23 = vpack.c.bf16 %v851_v22, %v850_v21  ;;  %v852_v24 = vld [vmem:[%s7860_s5 + $0x70] sm:$0xff]  ;;  %v853_v25 = vld [vmem:[%s7860_s5 + $0x78] sm:$0xff]  ;;  %v4574_v29 = vld [vmem:[%s7862_s12] ss:$0 sm:$0xff] }
  0xbd   : > { %v5325_v26 = vpack.c.bf16 %v853_v25, %v852_v24  ;;  %v855_v27 = vld [vmem:[%s7861_s4] sm:$0xff]  ;;  %v4575_v28 = vld [vmem:[%s7861_s4 + $0x8] sm:$0xff] }
  0xbf   : > { %5308 = vmatpush3.bf16.msra.mxu0 %v5307_v8  ;;  %5332 = vmatpush3.bf16.msra.mxu1 %v5307_v8 }
  0xc0   : > { %5309 = vmatprep.subr.bf16.mxu0 %v6245_v3  ;;  %5333 = vmatprep.subr.bf16.mxu1 %v6245_v3 }
  0xc3   : > { %5311 = vmatpush3.bf16.msra.mxu0 %v5310_v11  ;;  %5335 = vmatpush3.bf16.msra.mxu1 %v5310_v11 }
  0xc4   : > { %5312 = vmatprep.subr.bf16.mxu0 %v6245_v3  ;;  %5336 = vmatprep.subr.bf16.mxu1 %v6245_v3 }
  0xc7   : > { %5314 = vmatpush3.bf16.msra.mxu0 %v5313_v14  ;;  %5338 = vmatpush3.bf16.msra.mxu1 %v5313_v14 }
  0xc8   : > { %5315 = vmatprep.subr.bf16.mxu0 %v6245_v3  ;;  %5339 = vmatprep.subr.bf16.mxu1 %v6245_v3 }
  0xcb   : > { %5317 = vmatpush3.bf16.msra.mxu0 %v5316_v17  ;;  %5341 = vmatpush3.bf16.msra.mxu1 %v5316_v17 }
  0xcc   : > { %5318 = vmatprep.subr.bf16.mxu0 %v6245_v3  ;;  %5342 = vmatprep.subr.bf16.mxu1 %v6245_v3 }
  0xcf   : > { %5320 = vmatpush3.bf16.msra.mxu0 %v5319_v20  ;;  %5344 = vmatpush3.bf16.msra.mxu1 %v5319_v20 }
  0xd0   : > { %5321 = vmatprep.subr.bf16.mxu0 %v6245_v3  ;;  %5345 = vmatprep.subr.bf16.mxu1 %v6245_v3 }
  0xd3   : > { %5323 = vmatpush3.bf16.msra.mxu0 %v5322_v23  ;;  %5347 = vmatpush3.bf16.msra.mxu1 %v5322_v23 }
  0xd4   : > { %5324 = vmatprep.subr.bf16.mxu0 %v6245_v3  ;;  %5348 = vmatprep.subr.bf16.mxu1 %v6245_v3 }
  0xd7   : > { %5326 = vmatpush3.bf16.msra.mxu0 %v5325_v26  ;;  %5350 = vmatpush3.bf16.msra.mxu1 %v5325_v26 }
  0xda   : > { %4970 = vmatmul.mubr.f32.vlgmr.msra.gmra.mrb[0].mxu0 %v855_v27  ;;  %5005 = vmatmul.mubr.f32.vlgmr.msra.gmra.mrb[0].mxu1 %v4575_v28 }
 0x1ad   : > { %v928_v30 = vpop.f32.mrb[0].mxu0  ;;  %v1001_v31 = vpop.f32.mrb[0].mxu1 }
 0x1ae   : > { %v929_v32 = vadd.f32 %v4574_v29, %v928_v30  ;;  %v1002_v33 = vadd.f32 %v4574_v29, %v1001_v31  ;;  %v4971_v34 = vpop.f32.mrb[1].mxu0  ;;  %v5006_v35 = vpop.f32.mrb[1].mxu1 }
 0x1b0   : > { %932 = vst [vmem:[#allocation2] sm:$0xff] %v929_v32  ;;  %1006 = vst [vmem:[#allocation2 + $0x8] sm:$0xff] %v1002_v33 }
 0x1b1 PF: > { %v6695_v36 = vld [vmem:[#allocation3] sm:$0xf]  ;;  %vm1233_vm1 = vcmask 1043456   ;;  %v1013_v39 = vld [vmem:[%s6576_s16] sm:$0xff]  ;;  %v1014_v40 = vld [vmem:[%s6576_s16 + $0x8] sm:$0xff]  ;;  %v7745_v42 = vmov 0.0|0.0  }
 0x1b2   : > { %v1234_v37 = vsel %vm1233_vm1, %v6695_v36, 0.0  ;;  %v1015_v41 = vld [vmem:[%s6576_s16 + $0x10] sm:$0xff]  ;;  %5351 = vmatprep.subr.bf16.mxu0 %v7745_v42  ;;  %v6703_v43 = vpack.c.bf16 %v1014_v40, %v1013_v39  ;;  %v1016_v44 = vld [vmem:[%s6576_s16 + $0x18] sm:$0xff]  ;;  %v1030_v45 = vld [vmem:[%s6627_s22 + $0x8] sm:$0xff]  ;;  %vm6249_vm2 = vmmov 0   ;;  %vm1476_vm3 = vcmask 523264  }
 0x1b3   : > { %1235 = vadd.xlane.f32.xlu0 %v1234_v37  ;;  %v1032_v46 = vld [vmem:[%s6627_s22 + $0x18] sm:$0xff]  ;;  %v1029_v48 = vld [vmem:[%s6627_s22] sm:$0xff]  ;;  %v1031_v49 = vld [vmem:[%s6627_s22 + $0x10] sm:$0xff]  ;;  %v6713_v50 = vpack.c.bf16 %v1016_v44, %v1015_v41  ;;  %v7743_v41 = vmov 0.0   ;;  %vm1626_vm4 = vcmask 60416   ;;  %vm1630_vm5 = vcmask 27648  }
 0x1b4   : > { %v6708_v47 = vpack.c.bf16 %v1032_v46, %v1030_v45  ;;  %5353 = vmatpush3.bf16.msra.mxu0 %v6703_v43  ;;  %v6715_v51 = vpack.c.bf16 %v1031_v49, %v1029_v48  ;;  %v1017_v52 = vld [vmem:[%s6576_s16 + $0x20] sm:$0xff]  ;;  %v1034_v53 = vld [vmem:[%s6627_s22 + $0x28] sm:$0xff]  ;;  %v1036_v54 = vld [vmem:[%s6627_s22 + $0x38] sm:$0xff]  ;;  %5039 = vmatprep.mubr.msk.f32.mxu0 %vm6249_vm2, %v7743_v41  ;;  %vm1649_vm6 = vcmask 31744   ;;  %vm1726_vm7 = vcmask 64512   ;;  %p4614_p5 = scmp.ne.s32.totalorder %s6377_s1, 3 }
 0x1b5   : > { %5354 = vmatprep.subr.bf16.mxu0 %v7745_v42  ;;  %v1018_v55 = vld [vmem:[%s6576_s16 + $0x28] sm:$0xff]  ;;  %v6723_v56 = vpack.c.bf16 %v1036_v54, %v1034_v53  ;;  %v1033_v57 = vld [vmem:[%s6627_s22 + $0x20] sm:$0xff]  ;;  %v1035_v58 = vld [vmem:[%s6627_s22 + $0x30] sm:$0xff]  ;;  %1395 = vmatprep.mubr.f32.mxu1 %v7743_v41  ;;  %vm6254_vm0 = vmmov (!%p4614_p5), 0   ;;  %s8012_s27 = sld [smem:[#allocation105_spill]] (!%p4614_p5)  ;;  %s8013_s6 = sld [smem:[#allocation106_spill]] (!%p4614_p5) }
 0x1b6   : > { %5376 = vmatprep.subr.bf16.mxu1 %v6708_v47  ;;  %v6728_v59 = vpack.c.bf16 %v1035_v58, %v1033_v57  ;;  %v6732_v60 = vpack.c.bf16 %v1018_v55, %v1017_v52  ;;  %v1019_v6 = vld [vmem:[%s6576_s16 + $0x30] sm:$0xff]  ;;  %v1020_v7 = vld [vmem:[%s6576_s16 + $0x38] sm:$0xff]  ;;  %v1038_v8 = vld [vmem:[%s6627_s22 + $0x48] sm:$0xff]  ;;  %s8014_s25 = sld [smem:[#allocation107_spill]] (!%p4614_p5) }
 0x1b7   : > { %v1205_v38 = vld [vmem:[#allocation2] sm:$0xff]  ;;  %5378 = vmatpush1.bf16.msra.mxu1 %v6715_v51  ;;  %v6751_v9 = vpack.c.bf16 %v1020_v7, %v1019_v6  ;;  %v1040_v10 = vld [vmem:[%s6627_s22 + $0x58] sm:$0xff]  ;;  %v1037_v11 = vld [vmem:[%s6627_s22 + $0x40] sm:$0xff] }
 0x1b8   : > { %1207 = vadd.xlane.f32.xlu0 %v1205_v38  ;;  %5380 = vmatprep.subr.bf16.mxu1 %v6723_v56  ;;  %v1039_v12 = vld [vmem:[%s6627_s22 + $0x50] sm:$0xff]  ;;  %v6756_v13 = vpack.c.bf16 %v1040_v10, %v1038_v8  ;;  %v1021_v15 = vld [vmem:[%s6576_s16 + $0x40] sm:$0xff]  ;;  %v1022_v16 = vld [vmem:[%s6576_s16 + $0x48] sm:$0xff] }
 0x1b9   : > { %5356 = vmatpush3.bf16.msra.mxu0 %v6713_v50  ;;  %v6758_v14 = vpack.c.bf16 %v1039_v12, %v1037_v11  ;;  %v1042_v17 = vld [vmem:[%s6627_s22 + $0x68] sm:$0xff]  ;;  %v6767_v18 = vpack.c.bf16 %v1022_v16, %v1021_v15  ;;  %v1044_v19 = vld [vmem:[%s6627_s22 + $0x78] sm:$0xff]  ;;  %v1041_v20 = vld [vmem:[%s6627_s22 + $0x60] sm:$0xff] }
 0x1ba   : > { %5357 = vmatprep.subr.bf16.mxu0 %v7745_v42  ;;  %v1043_v21 = vld [vmem:[%s6627_s22 + $0x70] sm:$0xff]  ;;  %v6772_v22 = vpack.c.bf16 %v1044_v19, %v1042_v17  ;;  %v1024_v25 = vld [vmem:[%s6576_s16 + $0x58] sm:$0xff]  ;;  %v1046_v26 = vld [vmem:[%s6627_s22 + $0x88] sm:$0xff] }
 0x1bb   : > { %5382 = vmatpush1.bf16.msra.mxu1 %v6728_v59  ;;  %v6774_v23 = vpack.c.bf16 %v1043_v21, %v1041_v20  ;;  %v1023_v24 = vld [vmem:[%s6576_s16 + $0x50] sm:$0xff]  ;;  %v1048_v28 = vld [vmem:[%s6627_s22 + $0x98] sm:$0xff]  ;;  %v1045_v29 = vld [vmem:[%s6627_s22 + $0x80] sm:$0xff] }
 0x1bc   : > { %5384 = vmatprep.subr.bf16.mxu1 %v6756_v13  ;;  %v6783_v27 = vpack.c.bf16 %v1024_v25, %v1023_v24  ;;  %v1047_v30 = vld [vmem:[%s6627_s22 + $0x90] sm:$0xff]  ;;  %v6788_v31 = vpack.c.bf16 %v1048_v28, %v1046_v26  ;;  %v1025_v33 = vld [vmem:[%s6576_s16 + $0x60] sm:$0xff]  ;;  %v1026_v34 = vld [vmem:[%s6576_s16 + $0x68] sm:$0xff] }
 0x1bd   : > { %5359 = vmatpush3.bf16.msra.mxu0 %v6732_v60  ;;  %v6790_v32 = vpack.c.bf16 %v1047_v30, %v1045_v29  ;;  %v1050_v35 = vld [vmem:[%s6627_s22 + $0xa8] sm:$0xff]  ;;  %v6796_v37 = vpack.c.bf16 %v1026_v34, %v1025_v33  ;;  %v1049_v39 = vld [vmem:[%s6627_s22 + $0xa0] sm:$0xff]  ;;  %v1051_v40 = vld [vmem:[%s6627_s22 + $0xb0] sm:$0xff] }
 0x1be   : > { %5360 = vmatprep.subr.bf16.mxu0 %v7745_v42  ;;  %v1027_v45 = vld [vmem:[%s6576_s16 + $0x70] sm:$0xff]  ;;  %v1028_v46 = vld [vmem:[%s6576_s16 + $0x78] sm:$0xff]  ;;  %v1054_v48 = vld [vmem:[%s6627_s22 + $0xc8] sm:$0xff]  ;;  %v6811_v49 = vpack.c.bf16 %v1051_v40, %v1049_v39  ;;  %s6251_s16 = smov 64  }
 0x1bf   : > { %5386 = vmatpush1.bf16.msra.mxu1 %v6758_v14  ;;  %v1056_v52 = vld [vmem:[%s6627_s22 + $0xd8] sm:$0xff]  ;;  %v1053_v54 = vld [vmem:[%s6627_s22 + $0xc0] sm:$0xff]  ;;  %v1055_v55 = vld [vmem:[%s6627_s22 + $0xd0] sm:$0xff]  ;;  %v6821_v57 = vpack.c.bf16 %v1028_v46, %v1027_v45 }
 0x1c0   : > { %5388 = vmatprep.subr.bf16.mxu1 %v6772_v22  ;;  %v6816_v53 = vpack.c.bf16 %v1056_v52, %v1054_v48  ;;  %v6825_v58 = vpack.c.bf16 %v1055_v55, %v1053_v54  ;;  %v4578_v15 = vld [vmem:[%s6612_s2] ss:$0 sm:$0xff] }
 0x1c1   : > { %5362 = vmatpush3.bf16.msra.mxu0 %v6751_v9  ;;  %v4579_v17 = vld [vmem:[%s6617_s0] ss:$0 sm:$0xff] }
 0x1c2   : > { %5363 = vmatprep.subr.bf16.mxu0 %v7745_v42  ;;  %v4576_v21 = vld [vmem:[%s6602_s29] ss:$0 sm:$0xff] }
 0x1c3   : > { %5390 = vmatpush1.bf16.msra.mxu1 %v6774_v23  ;;  %v4577_v26 = vld [vmem:[%s6607_s8] ss:$0 sm:$0xff] }
 0x1c4   : > { %5392 = vmatprep.subr.bf16.mxu1 %v6788_v31 }
 0x1c5   : > { %5365 = vmatpush3.bf16.msra.mxu0 %v6767_v18 }
 0x1c6   : > { %5366 = vmatprep.subr.bf16.mxu0 %v7745_v42 }
 0x1c7   : > { %5394 = vmatpush1.bf16.msra.mxu1 %v6790_v32 }
 0x1c9   : > { %5368 = vmatpush3.bf16.msra.mxu0 %v6783_v27 }
 0x1ca   : > { %5369 = vmatprep.subr.bf16.mxu0 %v7745_v42 }
 0x1cd   : > { %5371 = vmatpush3.bf16.msra.mxu0 %v6796_v37 }
 0x1ce   : > { %5372 = vmatprep.subr.bf16.mxu0 %v7745_v42 }
 0x1d1   : > { %5374 = vmatpush3.bf16.msra.mxu0 %v6821_v57 }
 0x1d2   : > { %5408 = vmatprep.subr.bf16.mxu0 %v6708_v47 }
 0x240   : > { %v1236_v61 = vpop.xlane.xlu0 %1235 }
 0x241   : > { %v1237_v62 = vmul.f32 0.0078125, %v1236_v61  ;;  %v1058_v61 = vld [vmem:[%s6627_s22 + $0xe8] sm:$0xff] }
 0x243   : > { %v6739_v63 = vsub.f32 %v6695_v36, %v1237_v62  ;;  %v1060_v62 = vld [vmem:[%s6627_s22 + $0xf8] sm:$0xff] }
 0x245   : > { %v1208_v0 = vpop.xlane.xlu0 %1207  ;;  %v1239_v2 = vmul.f32 %v6739_v63, %v6739_v63 }
 0x246   : > { %v1210_v1 = vmul.f32 0.0078125, %v1208_v0  ;;  %v6833_v0 = vpack.c.bf16 %v1060_v62, %v1058_v61 }
 0x247   : > { %v1240_v4 = vsel %vm1233_vm1, %v1239_v2, 0.0  ;;  %v1059_v2 = vld [vmem:[%s6627_s22 + $0xf0] sm:$0xff] }
 0x248   : > { %v6743_v3 = vsub.f32 %v1205_v38, %v1210_v1  ;;  %1241 = vadd.xlane.f32.xlu1 %v1240_v4  ;;  %v1052_v38 = vld [vmem:[%s6627_s22 + $0xb8] sm:$0xff]  ;;  %v1057_v1 = vld [vmem:[%s6627_s22 + $0xe0] sm:$0xff] }
 0x249   : > { %v6805_v44 = vpack.c.bf16 %v1052_v38, %v1050_v35  ;;  %v6838_v4 = vpack.c.bf16 %v1059_v2, %v1057_v1 }
 0x24a   : > { %v1212_v5 = vmul.f32 %v6743_v3, %v6743_v3 }
 0x24b   : > { %5396 = vmatprep.subr.bf16.mxu1 %v6805_v44 }
 0x24c   : > { %1213 = vadd.xlane.f32.xlu1 %v1212_v5  ;;  %5398 = vmatpush1.bf16.msra.mxu1 %v6811_v49 }
 0x24d   : > { %5400 = vmatprep.subr.bf16.mxu1 %v6816_v53 }
 0x250   : > { %5402 = vmatpush1.bf16.msra.mxu1 %v6825_v58 }
 0x251   : > { %5404 = vmatprep.subr.bf16.mxu1 %v6833_v0 }
 0x254   : > { %5406 = vmatpush1.bf16.msra.mxu1 %v6838_v4 }
 0x255   : > { %5042 = vmatprep.subr.mxu1 %v7743_v41 }
 0x2d5   : > { %v1242_v5 = vpop.xlane.xlu1 %1241 }
 0x2d6   : > { %v1243_v6 = vmul.f32 0.0078125, %v1242_v5 }
 0x2d8   : > { %v1244_v7 = vadd.f32 1e-05, %v1243_v6 }
 0x2d9   : > { %v1214_v8 = vpop.xlane.xlu1 %1213 }
 0x2da   : > { %5964 = vrsqrt.f32 %v1244_v7  ;;  %v1215_v10 = vmul.f32 0.0078125, %v1214_v8 }
 0x2dc   : > { %v1216_v11 = vadd.f32 1e-05, %v1215_v10 }
 0x2de   : > { %5966 = vrsqrt.f32 %v1216_v11 }
 0x2e4   : > { %v5965_v12 = vpop.eup %5964 }
 0x2e5   : > { %v1246_v16 = vmul.f32 %v5965_v12, %v6739_v63 }
 0x2e7   : > { %v1253_v19 = vmul.f32 %v4578_v15, %v1246_v16 }
 0x2e8   : > { %v5967_v20 = vpop.eup %5966 }
 0x2e9   : > { %v1260_v24 = vadd.f32 %v4579_v17, %v1253_v19  ;;  %v1218_v25 = vmul.f32 %v5967_v20, %v6743_v3 }
 0x2eb   : > { %5040 = vmatmul.mubr.f32.vlgmr.msra.gmra.mrb[0].mxu0 %v1260_v24  ;;  %v1225_v28 = vmul.f32 %v4576_v21, %v1218_v25 }
 0x2ec   : > { %5410 = vmatpush1.bf16.msra.mxu0 %v6715_v51  ;;  %1466 = vmatprep.mubr.f32.mxu0 %v7743_v41 }
 0x2ed   : > { %5412 = vmatprep.subr.bf16.mxu0 %v6723_v56  ;;  %v1232_v29 = vadd.f32 %v4577_v26, %v1225_v28 }
 0x2ef   : > { %1396 = vmatmul.mubr.f32.vlgmr.msra.gmra.mrb[0].mxu1 %v1232_v29 }
 0x2f0   : > { %5414 = vmatpush1.bf16.msra.mxu0 %v6728_v59  ;;  %5044 = vmatprep.mubr.msk.f32.mxu1 %vm6249_vm2, %v7743_v41 }
 0x2f1   : > { %5416 = vmatprep.subr.bf16.mxu0 %v6756_v13 }
 0x2f4   : > { %5418 = vmatpush1.bf16.msra.mxu0 %v6758_v14 }
 0x2f5   : > { %5420 = vmatprep.subr.bf16.mxu0 %v6772_v22 }
 0x2f8   : > { %5422 = vmatpush1.bf16.msra.mxu0 %v6774_v23 }
 0x2f9   : > { %5424 = vmatprep.subr.bf16.mxu0 %v6788_v31 }
 0x2fc   : > { %5426 = vmatpush1.bf16.msra.mxu0 %v6790_v32 }
 0x2fd   : > { %5428 = vmatprep.subr.bf16.mxu0 %v6805_v44 }
 0x300   : > { %5430 = vmatpush1.bf16.msra.mxu0 %v6811_v49 }
 0x301   : > { %5432 = vmatprep.subr.bf16.mxu0 %v6816_v53 }
 0x304   : > { %5434 = vmatpush1.bf16.msra.mxu0 %v6825_v58 }
 0x305   : > { %5436 = vmatprep.subr.bf16.mxu0 %v6833_v0 }
 0x308   : > { %5438 = vmatpush1.bf16.msra.mxu0 %v6838_v4 }
 0x309   : > { %5439 = vmatprep.subr.bf16.mxu0 %v7745_v42 }
 0x30b   : > { %1467 = vmatmul.mubr.f32.vlgmr.msra.gmra.mrb[2].mxu0 %v1260_v24 }
 0x30c   : > { %5098 = vmatprep.mubr.msk.f32.mxu0 %vm6249_vm2, %v7743_v41 }
 0x3be   : > { %v1327_v63 = vpop.f32.mrb[0].mxu0 }
 0x3bf   : > { %v5041_v3 = vpop.f32.mrb[1].mxu0  ;;  %v1473_v35 = vmul.f32 0.35355338, %v1327_v63 }
 0x3c2   : > { %v1397_v30 = vpop.f32.mrb[0].mxu1 }
 0x3c3   : > { %v1474_v33 = vmul.f32 0.35355338, %v1397_v30  ;;  %v6869_v34 = vpop.f32.mrb[1].mxu1 }
 0x3c5   : > { %5043 = vmatpush3.xpose.msk.msra.mxu1 %vm1476_vm3, %v1474_v33 }
 0x3c6   : > { %5047 = vmatprep.subr.mxu1 %v7743_v41 }
 0x3c8   : > { %5045 = vmatmul.mubr.msk.f32.vlgmr.msra.gmra.mrb[2].mxu1 %vm1476_vm3, %v1473_v35 }
 0x3c9   : > { %5049 = vmatprep.mubr.msk.f32.mxu1 %vm6249_vm2, %v7743_v41 }
 0x3de   : > { %v1468_v38 = vpop.f32.mrb[2].mxu0 }
 0x3df   : > { %v1475_v39 = vmul.f32 0.35355338, %v1468_v38  ;;  %v1470_v40 = vpop.f32.mrb[3].mxu0 }
 0x3e1   : > { %5048 = vmatpush3.xpose.msk.msra.mxu1 %vm1476_vm3, %v1475_v39 }
 0x3e2   : > { %5052 = vmatprep.subr.mxu1 %v7743_v41 }
 0x3e4   : > { %5050 = vmatmul.mubr.msk.f32.vlgmr.msra.gmra.mrb[4].mxu1 %vm1476_vm3, %v1473_v35 }
 0x3e5   : > { %5053 = vmatpush3.msk.msra.mxu1 %vm1233_vm1, %v1470_v40  ;;  %5054 = vmatprep.mubr.msk.f32.mxu1 %vm6249_vm2, %v7743_v41 }
 0x3e6   : > { %5057 = vmatprep.subr.mxu1 %v7743_v41 }
 0x49b   : > { %v1549_v45 = vpop.f32.mrb[2].mxu1 }
 0x49c   : > { %v5046_v46 = vpop.f32.mrb[3].mxu1  ;;  %v1627_v48 = vsel %vm1626_vm4, %v1549_v45, -inf }
 0x49d   : > { %1628 = vmax.xlane.f32.xlu0 %v1627_v48 }
 0x4b3   : > { %1803 = vrot.lane.b32.xlu0 %v1474_v33, %s6251_s16 }
 0x4b7   : > { %v1622_v52 = vpop.f32.mrb[4].mxu1 }
 0x4b8   : > { %v5051_v54 = vpop.f32.mrb[5].mxu1  ;;  %v1631_v55 = vsel %vm1630_vm5, %v1622_v52, -inf }
 0x4b9   : > { %1632 = vmax.xlane.f32.xlu1 %v1631_v55  ;;  %v1062_v54 = vld [vmem:[%s6583_s13 + $0x8] sm:$0xff] }
 0x4ca   : > { %1801 = vrot.lane.b32.xlu1 %v1473_v35, %s6251_s16 }
 0x4ce   : > { %1879 = vrot.lane.b32.xlu1 %v1475_v39, %s6251_s16 }
 0x52a   : > { %v1629_v61 = vpop.xlane.xlu0 %1628 }
 0x52e   : > { %v1804_v12 = vpop.permute.xlu0 %1803 }
 0x546   : > { %v1633_v62 = vpop.xlane.xlu1 %1632 }
 0x547   : > { %v1634_v1 = vmax.f32 %v1629_v61, %v1633_v62  ;;  %v1063_v62 = vld [vmem:[%s6583_s13 + $0x10] sm:$0xff] }
 0x549   : > { %v1638_v2 = vsub.f32 %v1622_v52, %v1634_v1  ;;  %v1635_v6 = vsub.f32 %v1549_v45, %v1634_v1  ;;  %v1061_v52 = vld [vmem:[%s6583_s13] sm:$0xff]  ;;  %v1064_v1 = vld [vmem:[%s6583_s13 + $0x18] sm:$0xff] }
 0x54a   : > { %v1802_v10 = vpop.permute.xlu1 %1801  ;;  %v6925_v61 = vpack.c.bf16 %v1062_v54, %v1061_v52 }
 0x54b   : > { %v1639_v5 = vmul.f32 1.442695, %v1638_v2  ;;  %v1636_v7 = vmul.f32 1.442695, %v1635_v6  ;;  %v6931_v2 = vpack.c.bf16 %v1064_v1, %v1063_v62  ;;  %v1066_v6 = vld [vmem:[%s6583_s13 + $0x28] sm:$0xff] }
 0x54c   : > { %7863 = vst [vmem:[#allocation20_spill] sm:$0xff] %v6925_v61 }
 0x54d   : > { %5968 = vpow2.f32 %v1639_v5  ;;  %7864 = vst [vmem:[#allocation21_spill] sm:$0xff] %v6931_v2  ;;  %v1065_v5 = vld [vmem:[%s6583_s13 + $0x20] sm:$0xff] }
 0x54e   : > { %5970 = vpow2.f32 %v1636_v7  ;;  %v1880_v15 = vpop.permute.xlu1 %1879  ;;  %v6939_v7 = vpack.c.bf16 %v1066_v6, %v1065_v5  ;;  %v2698_v6 = vld [vmem:[#allocation3 + $0x4] sm:$0xf] }
 0x550   : > { %7865 = vst [vmem:[#allocation22_spill] sm:$0xff] %v6939_v7 }
 0x557   : > { %v5969_v8 = vpop.eup %5968 }
 0x558   : > { %5055 = vmatmul.mubr.msk.f32.vlgmr.msra.gmra.mrb[6].mxu1 %vm1649_vm6, %v5969_v8  ;;  %v5971_v11 = vpop.eup %5970  ;;  %v1644_v29 = vsel %vm1630_vm5, %v5969_v8, 0.0  ;;  %v1067_v8 = vld [vmem:[%s6583_s13 + $0x30] sm:$0xff] }
 0x559   : > { %5058 = vmatpush3.msra.mxu1 %v6869_v34  ;;  %5059 = vmatprep.mubr.msk.f32.mxu1 %vm6249_vm2, %v7743_v41  ;;  %v1641_v28 = vsel %vm1626_vm4, %v5971_v11, 0.0 }
 0x55a   : > { %5062 = vmatprep.subr.mxu1 %v7743_v41 }
 0x560   : > { %5060 = vmatmul.mubr.msk.f32.vlgmr.msra.gmra.mrb[6].mxu1 %vm1726_vm7, %v5971_v11 }
 0x561   : > { %5063 = vmatpush3.xpose.msk.msra.mxu1 %vm1476_vm3, %v1804_v12  ;;  %5064 = vmatprep.mubr.msk.f32.mxu1 %vm6249_vm2, %v7743_v41  ;;  %v1069_v12 = vld [vmem:[%s6583_s13 + $0x40] sm:$0xff] }
 0x562   : > { %5067 = vmatprep.subr.mxu1 %v7743_v41 }
 0x564   : > { %5065 = vmatmul.mubr.msk.f32.vlgmr.msra.gmra.mrb[8].mxu1 %vm1476_vm3, %v1802_v10 }
 0x565   : > { %5068 = vmatpush3.xpose.msk.msra.mxu1 %vm1476_vm3, %v1880_v15  ;;  %5069 = vmatprep.mubr.msk.f32.mxu1 %vm6249_vm2, %v7743_v41  ;;  %v1070_v15 = vld [vmem:[%s6583_s13 + $0x48] sm:$0xff] }
 0x566   : > { %5072 = vmatprep.subr.mxu1 %v7743_v41 }
 0x568   : > { %5070 = vmatmul.mubr.msk.f32.vlgmr.msra.gmra.mrb[10].mxu1 %vm1476_vm3, %v1802_v10  ;;  %v1068_v10 = vld [vmem:[%s6583_s13 + $0x38] sm:$0xff] }
 0x569   : > { %5074 = vmatprep.mubr.msk.f32.mxu1 %vm6249_vm2, %v7743_v41  ;;  %v6945_v11 = vpack.c.bf16 %v1068_v10, %v1067_v8  ;;  %v2712_v10 = vsel %vm1233_vm1, %v2698_v6, 0.0 }
 0x56b   : > { %7866 = vst [vmem:[#allocation23_spill] sm:$0xff] %v6945_v11 }
 0x633   : > { %v6906_v16 = vpop.f32.mrb[6].mxu1 }
 0x634   : > { %v5061_v17 = vpop.f32.mrb[7].mxu1 }
 0x635   : > { %v1071_v17 = vld [vmem:[%s6583_s13 + $0x50] sm:$0xff] }
 0x637   : > { %v1875_v19 = vpop.f32.mrb[8].mxu1 }
 0x638   : > { %v5066_v20 = vpop.f32.mrb[9].mxu1  ;;  %v1953_v21 = vsel %vm1626_vm4, %v1875_v19, -inf }
 0x639   : > { %1954 = vmax.xlane.f32.xlu1 %v1953_v21  ;;  %v1072_v20 = vld [vmem:[%s6583_s13 + $0x58] sm:$0xff] }
 0x63a   : > { %v6956_v21 = vpack.c.bf16 %v1072_v20, %v1071_v17  ;;  %v1080_v17 = vld [vmem:[%s6589_s19 + $0x18] sm:$0xff] }
 0x63b   : > { %v1949_v24 = vpop.f32.mrb[10].mxu1 }
 0x63c   : > { %v5071_v25 = vpop.f32.mrb[11].mxu1  ;;  %v1956_v26 = vsel %vm1630_vm5, %v1949_v24, -inf  ;;  %7868 = vst [vmem:[#allocation25_spill] sm:$0xff] %v6956_v21 }
 0x63d   : > { %1957 = vmax.xlane.f32.xlu0 %v1956_v26  ;;  %v1074_v25 = vld [vmem:[%s6583_s13 + $0x68] sm:$0xff] }
 0x64a   : > { %2052 = vrot.lane.b32.xlu1 %v6869_v34, %s6251_s16 }
 0x653   : > { %1974 = vrot.lane.b32.xlu0 %v1470_v40, %s6251_s16 }
 0x66e   : > { %1642 = vadd.xlane.f32.xlu1 %v1641_v28 }
 0x672   : > { %1645 = vadd.xlane.f32.xlu0 %v1644_v29 }
 0x6c6   : > { %v1955_v63 = vpop.xlane.xlu1 %1954 }
 0x6ca   : > { %v1958_v3 = vpop.xlane.xlu0 %1957  ;;  %v2053_v48 = vpop.permute.xlu1 %2052 }
 0x6cb   : > { %v1959_v30 = vmax.f32 %v1955_v63, %v1958_v3 }
 0x6cd   : > { %v1960_v33 = vsub.f32 %v1875_v19, %v1959_v30  ;;  %v1963_v35 = vsub.f32 %v1949_v24, %v1959_v30  ;;  %v6952_v19 = vpack.c.bf16 %v1070_v15, %v1069_v12  ;;  %v1073_v24 = vld [vmem:[%s6583_s13 + $0x60] sm:$0xff]  ;;  %v1078_v12 = vld [vmem:[%s6589_s19 + $0x8] sm:$0xff] }
 0x6ce   : > { %v1975_v38 = vpop.permute.xlu0 %1974  ;;  %v6962_v26 = vpack.c.bf16 %v1074_v25, %v1073_v24  ;;  %v1082_v15 = vld [vmem:[%s6589_s19 + $0x28] sm:$0xff]  ;;  %v1077_v24 = vld [vmem:[%s6589_s19] sm:$0xff] }
 0x6cf   : > { %v1961_v39 = vmul.f32 1.442695, %v1960_v33  ;;  %v1964_v45 = vmul.f32 1.442695, %v1963_v35  ;;  %5073 = vmatpush3.msk.msra.mxu1 %vm1233_vm1, %v1975_v38  ;;  %7867 = vst [vmem:[#allocation24_spill] sm:$0xff] %v6952_v19  ;;  %5441 = vmatpush3.bf16.msra.mxu0 %v6952_v19  ;;  %v1075_v33 = vld [vmem:[%s6583_s13 + $0x70] sm:$0xff]  ;;  %v6986_v20 = vpack.c.bf16 %v1082_v15, %v1078_v12 }
 0x6d0   : > { %5077 = vmatprep.subr.mxu1 %v7743_v41  ;;  %5442 = vmatprep.subr.bf16.mxu0 %v7745_v42  ;;  %7869 = vst [vmem:[#allocation26_spill] sm:$0xff] %v6962_v26  ;;  %v1076_v35 = vld [vmem:[%s6583_s13 + $0x78] sm:$0xff]  ;;  %v1081_v25 = vld [vmem:[%s6589_s19 + $0x20] sm:$0xff] }
 0x6d1   : > { %5972 = vpow2.f32 %v1961_v39  ;;  %v6972_v38 = vpack.c.bf16 %v1076_v35, %v1075_v33  ;;  %7872 = vst [vmem:[#allocation29_spill] sm:$0xff] %v6986_v20  ;;  %v1090_v35 = vld [vmem:[%s6589_s19 + $0x68] sm:$0xff]  ;;  %v1100_v12 = vld [vmem:[%s6589_s19 + $0xb8] sm:$0xff]  ;;  %v1093_v15 = vld [vmem:[%s6589_s19 + $0x80] sm:$0xff] }
 0x6d2   : > { %5974 = vpow2.f32 %v1964_v45 }
 0x6d3   : > { %5444 = vmatpush3.bf16.msra.mxu0 %v6956_v21  ;;  %7870 = vst [vmem:[#allocation27_spill] sm:$0xff] %v6972_v38 }
 0x6d4   : > { %5445 = vmatprep.subr.bf16.mxu0 %v7745_v42 }
 0x6d7   : > { %5447 = vmatpush3.bf16.msra.mxu0 %v6962_v26 }
 0x6d8   : > { %5448 = vmatprep.subr.bf16.mxu0 %v7745_v42 }
 0x6db   : > { %v5973_v34 = vpop.eup %5972  ;;  %5450 = vmatpush3.bf16.msra.mxu0 %v6972_v38 }
 0x6dc   : > { %v5975_v40 = vpop.eup %5974  ;;  %v1966_v46 = vsel %vm1626_vm4, %v5973_v34, 0.0  ;;  %5464 = vmatprep.subr.bf16.mxu0 %v6986_v20 }
 0x6dd   : > { %5075 = vmatmul.mubr.msk.f32.vlgmr.msra.gmra.mrb[12].mxu1 %vm1649_vm6, %v5975_v40  ;;  %1967 = vadd.xlane.f32.xlu0 %v1966_v46  ;;  %v1969_v55 = vsel %vm1630_vm5, %v5975_v40, 0.0 }
 0x6de   : > { %5078 = vmatpush3.msra.mxu1 %v2053_v48  ;;  %5079 = vmatprep.mubr.msk.f32.mxu1 %vm6249_vm2, %v7743_v41 }
 0x6df   : > { %5451 = vmatprep.subr.bf16.mxu1 %v7745_v42 }
 0x6e1   : > { %1970 = vadd.xlane.f32.xlu0 %v1969_v55 }
 0x6e5   : > { %5080 = vmatmul.mubr.msk.f32.vlgmr.msra.gmra.mrb[12].mxu1 %vm1726_vm7, %v5973_v34 }
 0x6e6   : > { %5453 = vmatpush3.bf16.msra.mxu1 %v6925_v61  ;;  %5117 = vmatprep.mubr.msk.f32.mxu1 %vm6249_vm2, %v7743_v41 }
 0x6e7   : > { %5454 = vmatprep.subr.bf16.mxu1 %v7745_v42 }
 0x6ea   : > { %5456 = vmatpush3.bf16.msra.mxu1 %v6931_v2 }
 0x6eb   : > { %5457 = vmatprep.subr.bf16.mxu1 %v7745_v42 }
 0x6ee   : > { %5459 = vmatpush3.bf16.msra.mxu1 %v6939_v7 }
 0x6ef   : > { %5460 = vmatprep.subr.bf16.mxu1 %v7745_v42  ;;  %v1118_v42 = vld [vmem:[%s6589_s19 + $0x148] sm:$0xff] }
 0x6f2   : > { %5462 = vmatpush3.bf16.msra.mxu1 %v6945_v11 }
 0x6fb   : > { %v1643_v28 = vpop.xlane.xlu1 %1642 }
 0x6ff   : > { %v1646_v29 = vpop.xlane.xlu0 %1645 }
 0x700   : > { %v1647_v63 = vadd.f32 %v1646_v29, %v1643_v28  ;;  %v6993_v29 = vpack.c.bf16 %v1081_v25, %v1077_v24  ;;  %v1095_v24 = vld [vmem:[%s6589_s19 + $0x90] sm:$0xff] }
 0x701   : > { %v1099_v25 = vld [vmem:[%s6589_s19 + $0xb0] sm:$0xff] }
 0x702   : > { %5976 = vrcp.f32 %v1647_v63  ;;  %7874 = vst [vmem:[#allocation31_spill] sm:$0xff] %v6993_v29  ;;  %v1079_v63 = vld [vmem:[%s6589_s19 + $0x10] sm:$0xff] }
 0x70c   : > { %v5977_v3 = vpop.eup %5976 }
 0x70d   : > { %v1800_v30 = vmul.f32 %v5977_v3, %v6906_v16  ;;  %v1083_v3 = vld [vmem:[%s6589_s19 + $0x30] sm:$0xff] }
 0x70e   : > { %v6999_v33 = vpack.c.bf16 %v1083_v3, %v1079_v63  ;;  %v7038_v3 = vpack.c.bf16 %v1099_v25, %v1095_v24  ;;  %v1108_v24 = vld [vmem:[%s6589_s19 + $0xf8] sm:$0xff]  ;;  %v1101_v25 = vld [vmem:[%s6589_s19 + $0xc0] sm:$0xff] }
 0x70f   : > { %5118 = vmatmul.mubr.msk.f32.vlgmr.msra.gmra.mrb[14].mxu1 %vm1476_vm3, %v1800_v30  ;;  %v1086_v30 = vld [vmem:[%s6589_s19 + $0x48] sm:$0xff] }
 0x710   : > { %2438 = vmatprep.mubr.f32.mxu1 %v7743_v41  ;;  %7875 = vst [vmem:[#allocation32_spill] sm:$0xff] %v6999_v33  ;;  %7883 = vst [vmem:[#allocation40_spill] sm:$0xff] %v7038_v3 }
 0x76a   : > { %v1968_v39 = vpop.xlane.xlu0 %1967 }
 0x76e   : > { %v1971_v45 = vpop.xlane.xlu0 %1970 }
 0x76f   : > { %v1972_v34 = vadd.f32 %v1971_v45, %v1968_v39  ;;  %v1088_v39 = vld [vmem:[%s6589_s19 + $0x58] sm:$0xff] }
 0x770   : > { %v1092_v45 = vld [vmem:[%s6589_s19 + $0x78] sm:$0xff] }
 0x771   : > { %5978 = vrcp.f32 %v1972_v34  ;;  %v7006_v34 = vpack.c.bf16 %v1090_v35, %v1086_v30 }
 0x773   : > { %7876 = vst [vmem:[#allocation33_spill] sm:$0xff] %v7006_v34 }
 0x77b   : > { %v5979_v40 = vpop.eup %5978 }
 0x7b8   : > { %v2124_v46 = vpop.f32.mrb[12].mxu1 }
 0x7b9   : > { %v2128_v48 = vmul.f32 %v5979_v40, %v2124_v46  ;;  %v5081_v16 = vpop.f32.mrb[13].mxu1  ;;  %v7008_v40 = vpack.c.bf16 %v1092_v45, %v1088_v39  ;;  %v1085_v46 = vld [vmem:[%s6589_s19 + $0x40] sm:$0xff] }
 0x7ba   : > { %v1087_v16 = vld [vmem:[%s6589_s19 + $0x50] sm:$0xff] }
 0x7bb   : > { %5099 = vmatmul.mubr.msk.f32.vlgmr.msra.gmra.mrb[4].mxu0 %vm1476_vm3, %v2128_v48  ;;  %7877 = vst [vmem:[#allocation34_spill] sm:$0xff] %v7008_v40  ;;  %v1089_v48 = vld [vmem:[%s6589_s19 + $0x60] sm:$0xff] }
 0x7bc   : > { %2367 = vmatprep.mubr.f32.mxu0 %v7743_v41  ;;  %5466 = vmatpush1.bf16.msra.mxu0 %v6993_v29  ;;  %v1115_v41 = vld [vmem:[%s6589_s19 + $0x130] sm:$0xff]  ;;  %v1133_v29 = vld [vmem:[%s6589_s19 + $0x1c0] sm:$0xff] }
 0x7bd   : > { %5468 = vmatprep.subr.bf16.mxu0 %v7006_v34  ;;  %v1131_v34 = vld [vmem:[%s6589_s19 + $0x1b0] sm:$0xff] }
 0x7e2   : > { %v2271_v52 = vpop.f32.mrb[14].mxu1 }
 0x7e3   : > { %v5119_v54 = vpop.f32.mrb[15].mxu1 }
 0x7e4   : > { %v1091_v54 = vld [vmem:[%s6589_s19 + $0x70] sm:$0xff] }
 0x88e   : > { %v2198_v55 = vpop.f32.mrb[4].mxu0 }
 0x88f   : > { %v2272_v62 = vadd.f32 %v2271_v52, %v2198_v55  ;;  %v5100_v1 = vpop.f32.mrb[5].mxu0  ;;  %v7014_v52 = vpack.c.bf16 %v1089_v48, %v1085_v46  ;;  %v1094_v55 = vld [vmem:[%s6589_s19 + $0x88] sm:$0xff] }
 0x890   : > { %v7021_v1 = vpack.c.bf16 %v1091_v54, %v1087_v16 }
 0x891   : > { %v6978_v5 = vadd.f32 %v2272_v62, %v6695_v36  ;;  %v1084_v36 = vld [vmem:[%s6589_s19 + $0x38] sm:$0xff]  ;;  %7878 = vst [vmem:[#allocation35_spill] sm:$0xff] %v7014_v52  ;;  %v1098_v62 = vld [vmem:[%s6589_s19 + $0xa8] sm:$0xff]  ;;  %5470 = vmatpush1.bf16.msra.mxu0 %v7014_v52  ;;  %v1127_v52 = vld [vmem:[%s6589_s19 + $0x190] sm:$0xff] }
 0x892   : > { %v6991_v28 = vpack.c.bf16 %v1084_v36, %v1080_v17  ;;  %7879 = vst [vmem:[#allocation36_spill] sm:$0xff] %v7021_v1  ;;  %v1097_v36 = vld [vmem:[%s6589_s19 + $0xa0] sm:$0xff] }
 0x893   : > { %7871 = vst [vmem:[#allocation28_spill] sm:$0xff] %v6978_v5  ;;  %v2276_v8 = vsel %vm1233_vm1, %v6978_v5, 0.0  ;;  %v7034_v63 = vpack.c.bf16 %v1097_v36, %v1093_v15  ;;  %v1106_v15 = vld [vmem:[%s6589_s19 + $0xe8] sm:$0xff] }
 0x894   : > { %2277 = vadd.xlane.f32.xlu1 %v2276_v8  ;;  %7873 = vst [vmem:[#allocation30_spill] sm:$0xff] %v6991_v28  ;;  %5496 = vmatprep.subr.bf16.mxu1 %v6991_v28  ;;  %v7023_v8 = vpack.c.bf16 %v1098_v62, %v1094_v55  ;;  %v7051_v55 = vld [vmem:[#allocation2 + $0x8] sm:$0xff] }
 0x895   : > { %5498 = vmatpush1.bf16.msra.mxu1 %v6999_v33  ;;  %7882 = vst [vmem:[#allocation39_spill] sm:$0xff] %v7034_v63 }
 0x896   : > { %5500 = vmatprep.subr.bf16.mxu1 %v7008_v40  ;;  %7880 = vst [vmem:[#allocation37_spill] sm:$0xff] %v7023_v8  ;;  %5472 = vmatprep.subr.bf16.mxu0 %v7023_v8  ;;  %v1129_v8 = vld [vmem:[%s6589_s19 + $0x1a0] sm:$0xff] }
 0x897   : > { %5474 = vmatpush1.bf16.msra.mxu0 %v7034_v63  ;;  %v1126_v63 = vld [vmem:[%s6589_s19 + $0x188] sm:$0xff] }
 0x898   : > { %2713 = vadd.xlane.f32.xlu1 %v2712_v10  ;;  %v1096_v10 = vld [vmem:[%s6589_s19 + $0x98] sm:$0xff] }
 0x899   : > { %v7028_v17 = vpack.c.bf16 %v1100_v12, %v1096_v10  ;;  %5502 = vmatpush1.bf16.msra.mxu1 %v7021_v1  ;;  %v1102_v12 = vld [vmem:[%s6589_s19 + $0xc8] sm:$0xff] }
 0x89a   : > { %v7060_v36 = vpack.c.bf16 %v1106_v15, %v1102_v12  ;;  %v1112_v12 = vld [vmem:[%s6589_s19 + $0x118] sm:$0xff] }
 0x89b   : > { %7881 = vst [vmem:[#allocation38_spill] sm:$0xff] %v7028_v17  ;;  %5504 = vmatprep.subr.bf16.mxu1 %v7028_v17 }
 0x89c   : > { %7884 = vst [vmem:[#allocation41_spill] sm:$0xff] %v7060_v36  ;;  %5476 = vmatprep.subr.bf16.mxu0 %v7060_v36  ;;  %v1124_v36 = vld [vmem:[%s6589_s19 + $0x178] sm:$0xff] }
 0x89d   : > { %5506 = vmatpush1.bf16.msra.mxu1 %v7038_v3 }
 0x921   : > { %v2278_v30 = vpop.xlane.xlu1 %2277 }
 0x922   : > { %v2279_v35 = vmul.f32 0.0078125, %v2278_v30  ;;  %v1105_v30 = vld [vmem:[%s6589_s19 + $0xe0] sm:$0xff] }
 0x924   : > { %v7044_v39 = vsub.f32 %v6978_v5, %v2279_v35 }
 0x925   : > { %v2714_v45 = vpop.xlane.xlu1 %2713 }
 0x926   : > { %v2281_v46 = vmul.f32 %v7044_v39, %v7044_v39  ;;  %v2715_v48 = vmul.f32 0.0078125, %v2714_v45  ;;  %v7067_v45 = vpack.c.bf16 %v1105_v30, %v1101_v25  ;;  %v1113_v25 = vld [vmem:[%s6589_s19 + $0x120] sm:$0xff] }
 0x928   : > { %v2282_v16 = vsel %vm1233_vm1, %v2281_v46, 0.0  ;;  %v7049_v54 = vsub.f32 %v2698_v6, %v2715_v48  ;;  %v1104_v6 = vld [vmem:[%s6589_s19 + $0xd8] sm:$0xff]  ;;  %7886 = vst [vmem:[#allocation43_spill] sm:$0xff] %v7067_v45  ;;  %v1103_v46 = vld [vmem:[%s6589_s19 + $0xd0] sm:$0xff]  ;;  %5478 = vmatpush1.bf16.msra.mxu0 %v7067_v45 }
 0x929   : > { %2283 = vadd.xlane.f32.xlu0 %v2282_v16  ;;  %v7065_v35 = vpack.c.bf16 %v1108_v24, %v1104_v6  ;;  %v1107_v48 = vld [vmem:[%s6589_s19 + $0xf0] sm:$0xff]  ;;  %v1116_v6 = vld [vmem:[%s6589_s19 + $0x138] sm:$0xff]  ;;  %v1109_v24 = vld [vmem:[%s6589_s19 + $0x100] sm:$0xff] }
 0x92a   : > { %v2717_v62 = vmul.f32 %v7049_v54, %v7049_v54  ;;  %v7072_v16 = vpack.c.bf16 %v1107_v48, %v1103_v46  ;;  %v7085_v30 = vpack.c.bf16 %v1116_v6, %v1112_v12  ;;  %v7087_v46 = vpack.c.bf16 %v1113_v25, %v1109_v24  ;;  %v1111_v48 = vld [vmem:[%s6589_s19 + $0x110] sm:$0xff]  ;;  %v1120_v45 = vld [vmem:[%s6589_s19 + $0x158] sm:$0xff]  ;;  %v1117_v24 = vld [vmem:[%s6589_s19 + $0x140] sm:$0xff] }
 0x92b   : > { %7885 = vst [vmem:[#allocation42_spill] sm:$0xff] %v7065_v35  ;;  %5508 = vmatprep.subr.bf16.mxu1 %v7065_v35  ;;  %v7102_v6 = vpack.c.bf16 %v1124_v36, %v1120_v45  ;;  %v1121_v25 = vld [vmem:[%s6589_s19 + $0x160] sm:$0xff]  ;;  %v1128_v45 = vld [vmem:[%s6589_s19 + $0x198] sm:$0xff] }
 0x92c   : > { %v2718_v10 = vsel %vm1233_vm1, %v2717_v62, 0.0  ;;  %7887 = vst [vmem:[#allocation44_spill] sm:$0xff] %v7072_v16  ;;  %v1110_v62 = vld [vmem:[%s6589_s19 + $0x108] sm:$0xff]  ;;  %5510 = vmatpush1.bf16.msra.mxu1 %v7072_v16  ;;  %7889 = vst [vmem:[#allocation46_spill] sm:$0xff] %v7085_v30 }
 0x92d   : > { %2699 = vadd.xlane.f32.xlu0 %v7051_v55  ;;  %2719 = vadd.xlane.f32.xlu1 %v2718_v10  ;;  %v1114_v10 = vld [vmem:[%s6589_s19 + $0x128] sm:$0xff]  ;;  %7890 = vst [vmem:[#allocation47_spill] sm:$0xff] %v7087_v46  ;;  %7893 = vst [vmem:[#allocation50_spill] sm:$0xff] %v7102_v6 }
 0x92e   : > { %v7080_v15 = vpack.c.bf16 %v1114_v10, %v1110_v62  ;;  %v7093_v62 = vpack.c.bf16 %v1115_v41, %v1111_v48  ;;  %v1122_v10 = vld [vmem:[%s6589_s19 + $0x168] sm:$0xff]  ;;  %5512 = vmatprep.subr.bf16.mxu1 %v7085_v30  ;;  %v1119_v41 = vld [vmem:[%s6589_s19 + $0x150] sm:$0xff]  ;;  %v7108_v48 = vpack.c.bf16 %v1121_v25, %v1117_v24  ;;  %v1125_v24 = vld [vmem:[%s6589_s19 + $0x180] sm:$0xff] }
 0x92f   : > { %v7100_v12 = vpack.c.bf16 %v1122_v10, %v1118_v42  ;;  %v1132_v10 = vld [vmem:[%s6589_s19 + $0x1b8] sm:$0xff] }
 0x930   : > { %7888 = vst [vmem:[#allocation45_spill] sm:$0xff] %v7080_v15  ;;  %5480 = vmatprep.subr.bf16.mxu0 %v7080_v15  ;;  %7891 = vst [vmem:[#allocation48_spill] sm:$0xff] %v7093_v62  ;;  %5514 = vmatpush1.bf16.msra.mxu1 %v7093_v62  ;;  %v1123_v15 = vld [vmem:[%s6589_s19 + $0x170] sm:$0xff]  ;;  %v7122_v25 = vpack.c.bf16 %v1132_v10, %v1128_v45  ;;  %v1140_v10 = vld [vmem:[%s6589_s19 + $0x1f8] sm:$0xff] }
 0x931   : > { %5482 = vmatpush1.bf16.msra.mxu0 %v7087_v46  ;;  %7892 = vst [vmem:[#allocation49_spill] sm:$0xff] %v7100_v12  ;;  %7894 = vst [vmem:[#allocation51_spill] sm:$0xff] %v7108_v48  ;;  %v1130_v46 = vld [vmem:[%s6589_s19 + $0x1a8] sm:$0xff]  ;;  %5516 = vmatprep.subr.bf16.mxu1 %v7102_v6  ;;  %v7115_v42 = vpack.c.bf16 %v1123_v15, %v1119_v41  ;;  %v7135_v41 = vpack.c.bf16 %v1131_v34, %v1127_v52  ;;  %v1137_v6 = vld [vmem:[%s6589_s19 + $0x1e0] sm:$0xff] }
 0x932   : > { %5484 = vmatprep.subr.bf16.mxu0 %v7100_v12  ;;  %v7117_v36 = vpack.c.bf16 %v1130_v46, %v1126_v63  ;;  %7897 = vst [vmem:[#allocation54_spill] sm:$0xff] %v7122_v25  ;;  %v7128_v12 = vpack.c.bf16 %v1129_v8, %v1125_v24  ;;  %v1134_v15 = vld [vmem:[%s6589_s19 + $0x1c8] sm:$0xff]  ;;  %v1136_v46 = vld [vmem:[%s6589_s19 + $0x1d8] sm:$0xff]  ;;  %v1135_v8 = vld [vmem:[%s6589_s19 + $0x1d0] sm:$0xff] }
 0x933   : > { %7895 = vst [vmem:[#allocation52_spill] sm:$0xff] %v7115_v42  ;;  %v1138_v63 = vld [vmem:[%s6589_s19 + $0x1e8] sm:$0xff]  ;;  %7899 = vst [vmem:[#allocation56_spill] sm:$0xff] %v7135_v41  ;;  %v7143_v62 = vpack.c.bf16 %v1140_v10, %v1136_v46  ;;  %v1139_v24 = vld [vmem:[%s6589_s19 + $0x1f0] sm:$0xff] }
 0x934   : > { %7896 = vst [vmem:[#allocation53_spill] sm:$0xff] %v7117_v36  ;;  %7898 = vst [vmem:[#allocation55_spill] sm:$0xff] %v7128_v12  ;;  %5518 = vmatpush1.bf16.msra.mxu1 %v7115_v42  ;;  %v7137_v45 = vpack.c.bf16 %v1138_v63, %v1134_v15  ;;  %v7152_v34 = vpack.c.bf16 %v1139_v24, %v1135_v8  ;;  %v4596_v24 = vld [vmem:[%s6622_s24] ss:$0 sm:$0xff] }
 0x935   : > { %5486 = vmatpush1.bf16.msra.mxu0 %v7108_v48  ;;  %5520 = vmatprep.subr.bf16.mxu1 %v7122_v25  ;;  %7901 = vst [vmem:[#allocation58_spill] sm:$0xff] %v7143_v62  ;;  %v7148_v48 = vpack.c.bf16 %v1137_v6, %v1133_v29 }
 0x936   : > { %5488 = vmatprep.subr.bf16.mxu0 %v7117_v36  ;;  %7900 = vst [vmem:[#allocation57_spill] sm:$0xff] %v7137_v45  ;;  %7903 = vst [vmem:[#allocation60_spill] sm:$0xff] %v7152_v34  ;;  %v1142_v36 = vld [vmem:[%s6591_s17 + $0x8] sm:$0xff] }
 0x937   : > { %7902 = vst [vmem:[#allocation59_spill] sm:$0xff] %v7148_v48 }
 0x938   : > { %5522 = vmatpush1.bf16.msra.mxu1 %v7135_v41 }
 0x939   : > { %5490 = vmatpush1.bf16.msra.mxu0 %v7128_v12  ;;  %5524 = vmatprep.subr.bf16.mxu1 %v7143_v62  ;;  %v1141_v12 = vld [vmem:[%s6591_s17] sm:$0xff] }
 0x93a   : > { %5492 = vmatprep.subr.bf16.mxu0 %v7137_v45 }
 0x93c   : > { %5526 = vmatpush1.bf16.msra.mxu1 %v7152_v34 }
 0x93d   : > { %5494 = vmatpush1.bf16.msra.mxu0 %v7148_v48 }
 0x9b6   : > { %v2284_v52 = vpop.xlane.xlu0 %2283 }
 0x9b7   : > { %v2285_v15 = vmul.f32 0.0078125, %v2284_v52 }
 0x9b9   : > { %v2286_v63 = vadd.f32 1e-05, %v2285_v15  ;;  %v4597_v15 = vld [vmem:[%s6632_s23] ss:$0 sm:$0xff] }
 0x9ba   : > { %v2700_v29 = vpop.xlane.xlu0 %2699 }
 0x9bb   : > { %5980 = vrsqrt.f32 %v2286_v63  ;;  %v2701_v6 = vmul.f32 0.0078125, %v2700_v29  ;;  %v1158_v29 = vld [vmem:[%s6591_s17 + $0x88] sm:$0xff] }
 0x9bd   : > { %v7158_v46 = vsub.f32 %v7051_v55, %v2701_v6  ;;  %v1157_v55 = vld [vmem:[%s6591_s17 + $0x80] sm:$0xff] }
 0x9be   : > { %v1189_v6 = vld [vmem:[%s6591_s17 + $0x180] sm:$0xff]  ;;  %v7168_v45 = vpack.c.bf16 %v1158_v29, %v1157_v55  ;;  %v1191_v55 = vld [vmem:[%s6591_s17 + $0x190] sm:$0xff] }
 0x9bf   : > { %v2703_v10 = vmul.f32 %v7158_v46, %v7158_v46  ;;  %v1143_v29 = vld [vmem:[%s6591_s17 + $0x10] sm:$0xff] }
 0x9c0   : > { %7904 = vst [vmem:[#allocation61_spill] sm:$0xff] %v7168_v45  ;;  %5528 = vmatprep.subr.bf16.mxu0 %v7168_v45 }
 0x9c1   : > { %2704 = vadd.xlane.f32.xlu0 %v2703_v10  ;;  %v1190_v10 = vld [vmem:[%s6591_s17 + $0x188] sm:$0xff] }
 0x9c5   : > { %v5981_v8 = vpop.eup %5980 }
 0x9c6   : > { %v2288_v52 = vmul.f32 %v5981_v8, %v7044_v39  ;;  %v7173_v39 = vpack.c.bf16 %v1190_v10, %v1189_v6  ;;  %v7175_v8 = vpack.c.bf16 %v1142_v36, %v1141_v12  ;;  %v1192_v36 = vld [vmem:[%s6591_s17 + $0x198] sm:$0xff] }
 0x9c7   : > { %v1144_v6 = vld [vmem:[%s6591_s17 + $0x18] sm:$0xff]  ;;  %v7193_v10 = vpack.c.bf16 %v1192_v36, %v1191_v55  ;;  %v1193_v55 = vld [vmem:[%s6591_s17 + $0x1a0] sm:$0xff] }
 0x9c8   : > { %v2295_v48 = vmul.f32 %v4596_v24, %v2288_v52  ;;  %7905 = vst [vmem:[#allocation62_spill] sm:$0xff] %v7173_v39  ;;  %7906 = vst [vmem:[#allocation63_spill] sm:$0xff] %v7175_v8  ;;  %v1174_v24 = vld [vmem:[%s6591_s17 + $0x108] sm:$0xff]  ;;  %5560 = vmatprep.subr.bf16.mxu1 %v7173_v39 }
 0x9c9   : > { %7909 = vst [vmem:[#allocation66_spill] sm:$0xff] %v7193_v10 }
 0x9ca   : > { %v2302_v63 = vadd.f32 %v4597_v15, %v2295_v48  ;;  %v1173_v48 = vld [vmem:[%s6591_s17 + $0x100] sm:$0xff]  ;;  %v1159_v15 = vld [vmem:[%s6591_s17 + $0x90] sm:$0xff] }
 0x9cb   : > { %v7180_v52 = vpack.c.bf16 %v1174_v24, %v1173_v48  ;;  %v7195_v48 = vpack.c.bf16 %v1144_v6, %v1143_v29  ;;  %v1175_v24 = vld [vmem:[%s6591_s17 + $0x110] sm:$0xff]  ;;  %v1194_v29 = vld [vmem:[%s6591_s17 + $0x1a8] sm:$0xff]  ;;  %v1145_v6 = vld [vmem:[%s6591_s17 + $0x20] sm:$0xff] }
 0x9cc   : > { %2368 = vmatmul.mubr.f32.vlgmr.msra.gmra.mrb[6].mxu0 %v2302_v63  ;;  %2439 = vmatmul.mubr.f32.vlgmr.msra.gmra.mrb[16].mxu1 %v2302_v63  ;;  %v1160_v63 = vld [vmem:[%s6591_s17 + $0x98] sm:$0xff] }
 0x9cd   : > { %7907 = vst [vmem:[#allocation64_spill] sm:$0xff] %v7180_v52  ;;  %5530 = vmatpush3.bf16.msra.mxu0 %v7175_v8  ;;  %5562 = vmatpush3.bf16.msra.mxu1 %v7180_v52  ;;  %v7188_v12 = vpack.c.bf16 %v1160_v63, %v1159_v15  ;;  %7910 = vst [vmem:[#allocation67_spill] sm:$0xff] %v7195_v48  ;;  %v1176_v8 = vld [vmem:[%s6591_s17 + $0x118] sm:$0xff]  ;;  %v1161_v15 = vld [vmem:[%s6591_s17 + $0xa0] sm:$0xff] }
 0x9ce   : > { %v7200_v45 = vpack.c.bf16 %v1176_v8, %v1175_v24  ;;  %5564 = vmatprep.subr.bf16.mxu1 %v7193_v10  ;;  %v1162_v63 = vld [vmem:[%s6591_s17 + $0xa8] sm:$0xff]  ;;  %v7213_v24 = vpack.c.bf16 %v1194_v29, %v1193_v55  ;;  %v1195_v55 = vld [vmem:[%s6591_s17 + $0x1b0] sm:$0xff] }
 0x9cf   : > { %7908 = vst [vmem:[#allocation65_spill] sm:$0xff] %v7188_v12  ;;  %5532 = vmatprep.subr.bf16.mxu0 %v7188_v12  ;;  %v7208_v36 = vpack.c.bf16 %v1162_v63, %v1161_v15  ;;  %v1146_v8 = vld [vmem:[%s6591_s17 + $0x28] sm:$0xff]  ;;  %v1163_v15 = vld [vmem:[%s6591_s17 + $0xb0] sm:$0xff]  ;;  %v1164_v63 = vld [vmem:[%s6591_s17 + $0xb8] sm:$0xff] }
 0x9d0   : > { %7911 = vst [vmem:[#allocation68_spill] sm:$0xff] %v7200_v45  ;;  %7913 = vst [vmem:[#allocation70_spill] sm:$0xff] %v7213_v24  ;;  %v7215_v10 = vpack.c.bf16 %v1146_v8, %v1145_v6  ;;  %v1178_v12 = vld [vmem:[%s6591_s17 + $0x128] sm:$0xff]  ;;  %v7228_v29 = vpack.c.bf16 %v1164_v63, %v1163_v15  ;;  %v1196_v6 = vld [vmem:[%s6591_s17 + $0x1b8] sm:$0xff] }
 0x9d1   : > { %5534 = vmatpush3.bf16.msra.mxu0 %v7195_v48  ;;  %5566 = vmatpush3.bf16.msra.mxu1 %v7200_v45  ;;  %7912 = vst [vmem:[#allocation69_spill] sm:$0xff] %v7208_v36  ;;  %v1177_v48 = vld [vmem:[%s6591_s17 + $0x120] sm:$0xff]  ;;  %v1147_v8 = vld [vmem:[%s6591_s17 + $0x30] sm:$0xff]  ;;  %v1166_v63 = vld [vmem:[%s6591_s17 + $0xc8] sm:$0xff] }
 0x9d2   : > { %7914 = vst [vmem:[#allocation71_spill] sm:$0xff] %v7215_v10  ;;  %5536 = vmatprep.subr.bf16.mxu0 %v7208_v36  ;;  %v7220_v52 = vpack.c.bf16 %v1178_v12, %v1177_v48  ;;  %5568 = vmatprep.subr.bf16.mxu1 %v7213_v24  ;;  %7916 = vst [vmem:[#allocation73_spill] sm:$0xff] %v7228_v29  ;;  %v1148_v12 = vld [vmem:[%s6591_s17 + $0x38] sm:$0xff]  ;;  %v7233_v48 = vpack.c.bf16 %v1196_v6, %v1195_v55  ;;  %v1165_v15 = vld [vmem:[%s6591_s17 + $0xc0] sm:$0xff] }
 0x9d3   : > { %v7235_v24 = vpack.c.bf16 %v1148_v12, %v1147_v8  ;;  %v1180_v36 = vld [vmem:[%s6591_s17 + $0x138] sm:$0xff]  ;;  %v1197_v55 = vld [vmem:[%s6591_s17 + $0x1c0] sm:$0xff]  ;;  %v7248_v6 = vpack.c.bf16 %v1166_v63, %v1165_v15  ;;  %v1198_v8 = vld [vmem:[%s6591_s17 + $0x1c8] sm:$0xff] }
 0x9d4   : > { %7915 = vst [vmem:[#allocation72_spill] sm:$0xff] %v7220_v52  ;;  %7917 = vst [vmem:[#allocation74_spill] sm:$0xff] %v7233_v48  ;;  %v1149_v12 = vld [vmem:[%s6591_s17 + $0x40] sm:$0xff]  ;;  %v1167_v15 = vld [vmem:[%s6591_s17 + $0xd0] sm:$0xff] }
 0x9d5   : > { %5538 = vmatpush3.bf16.msra.mxu0 %v7215_v10  ;;  %5570 = vmatpush3.bf16.msra.mxu1 %v7220_v52  ;;  %7918 = vst [vmem:[#allocation75_spill] sm:$0xff] %v7235_v24  ;;  %v1179_v10 = vld [vmem:[%s6591_s17 + $0x130] sm:$0xff]  ;;  %7920 = vst [vmem:[#allocation77_spill] sm:$0xff] %v7248_v6  ;;  %v1168_v63 = vld [vmem:[%s6591_s17 + $0xd8] sm:$0xff] }
 0x9d6   : > { %5540 = vmatprep.subr.bf16.mxu0 %v7228_v29  ;;  %v7240_v45 = vpack.c.bf16 %v1180_v36, %v1179_v10  ;;  %5572 = vmatprep.subr.bf16.mxu1 %v7233_v48  ;;  %v1150_v10 = vld [vmem:[%s6591_s17 + $0x48] sm:$0xff]  ;;  %v7253_v36 = vpack.c.bf16 %v1198_v8, %v1197_v55  ;;  %v1199_v55 = vld [vmem:[%s6591_s17 + $0x1d0] sm:$0xff]  ;;  %v7268_v8 = vpack.c.bf16 %v1168_v63, %v1167_v15  ;;  %v1169_v15 = vld [vmem:[%s6591_s17 + $0xe0] sm:$0xff] }
 0x9d7   : > { %v7255_v48 = vpack.c.bf16 %v1150_v10, %v1149_v12  ;;  %v1182_v29 = vld [vmem:[%s6591_s17 + $0x148] sm:$0xff]  ;;  %v1200_v12 = vld [vmem:[%s6591_s17 + $0x1d8] sm:$0xff]  ;;  %v1151_v10 = vld [vmem:[%s6591_s17 + $0x50] sm:$0xff] }
 0x9d8   : > { %7919 = vst [vmem:[#allocation76_spill] sm:$0xff] %v7240_v45  ;;  %7921 = vst [vmem:[#allocation78_spill] sm:$0xff] %v7253_v36  ;;  %v1170_v63 = vld [vmem:[%s6591_s17 + $0xe8] sm:$0xff] }
 0x9d9   : > { %5542 = vmatpush3.bf16.msra.mxu0 %v7235_v24  ;;  %5574 = vmatpush3.bf16.msra.mxu1 %v7240_v45  ;;  %7922 = vst [vmem:[#allocation79_spill] sm:$0xff] %v7255_v48  ;;  %v1181_v24 = vld [vmem:[%s6591_s17 + $0x140] sm:$0xff]  ;;  %7924 = vst [vmem:[#allocation81_spill] sm:$0xff] %v7268_v8 }
 0x9da   : > { %5544 = vmatprep.subr.bf16.mxu0 %v7248_v6  ;;  %v7260_v52 = vpack.c.bf16 %v1182_v29, %v1181_v24  ;;  %5576 = vmatprep.subr.bf16.mxu1 %v7253_v36  ;;  %v1152_v24 = vld [vmem:[%s6591_s17 + $0x58] sm:$0xff]  ;;  %v7273_v29 = vpack.c.bf16 %v1200_v12, %v1199_v55  ;;  %v1201_v55 = vld [vmem:[%s6591_s17 + $0x1e0] sm:$0xff]  ;;  %v7288_v12 = vpack.c.bf16 %v1170_v63, %v1169_v15  ;;  %v1171_v15 = vld [vmem:[%s6591_s17 + $0xf0] sm:$0xff] }
 0x9db   : > { %v7275_v36 = vpack.c.bf16 %v1152_v24, %v1151_v10  ;;  %v1184_v6 = vld [vmem:[%s6591_s17 + $0x158] sm:$0xff]  ;;  %v1202_v10 = vld [vmem:[%s6591_s17 + $0x1e8] sm:$0xff]  ;;  %v1153_v24 = vld [vmem:[%s6591_s17 + $0x60] sm:$0xff] }
 0x9dc   : > { %7923 = vst [vmem:[#allocation80_spill] sm:$0xff] %v7260_v52  ;;  %7925 = vst [vmem:[#allocation82_spill] sm:$0xff] %v7273_v29  ;;  %v1172_v63 = vld [vmem:[%s6591_s17 + $0xf8] sm:$0xff] }
 0x9dd   : > { %5546 = vmatpush3.bf16.msra.mxu0 %v7255_v48  ;;  %5578 = vmatpush3.bf16.msra.mxu1 %v7260_v52  ;;  %7926 = vst [vmem:[#allocation83_spill] sm:$0xff] %v7275_v36  ;;  %v1183_v48 = vld [vmem:[%s6591_s17 + $0x150] sm:$0xff]  ;;  %7928 = vst [vmem:[#allocation85_spill] sm:$0xff] %v7288_v12 }
 0x9de   : > { %5548 = vmatprep.subr.bf16.mxu0 %v7268_v8  ;;  %v7280_v45 = vpack.c.bf16 %v1184_v6, %v1183_v48  ;;  %5580 = vmatprep.subr.bf16.mxu1 %v7273_v29  ;;  %v1154_v48 = vld [vmem:[%s6591_s17 + $0x68] sm:$0xff]  ;;  %v7293_v6 = vpack.c.bf16 %v1202_v10, %v1201_v55  ;;  %v7308_v55 = vpack.c.bf16 %v1172_v63, %v1171_v15  ;;  %v1204_v10 = vld [vmem:[%s6591_s17 + $0x1f8] sm:$0xff]  ;;  %v7936_v15 = vmov 0.0|0.0  }
 0x9df   : > { %v7295_v29 = vpack.c.bf16 %v1154_v48, %v1153_v24  ;;  %v1186_v8 = vld [vmem:[%s6591_s17 + $0x168] sm:$0xff]  ;;  %v1155_v24 = vld [vmem:[%s6591_s17 + $0x70] sm:$0xff]  ;;  %v1156_v48 = vld [vmem:[%s6591_s17 + $0x78] sm:$0xff] }
 0x9e0   : > { %7927 = vst [vmem:[#allocation84_spill] sm:$0xff] %v7280_v45  ;;  %7929 = vst [vmem:[#allocation86_spill] sm:$0xff] %v7293_v6  ;;  %v7315_v34 = vpack.c.bf16 %v1156_v48, %v1155_v24 }
 0x9e1   : > { %5550 = vmatpush3.bf16.msra.mxu0 %v7275_v36  ;;  %5582 = vmatpush3.bf16.msra.mxu1 %v7280_v45  ;;  %7930 = vst [vmem:[#allocation87_spill] sm:$0xff] %v7295_v29  ;;  %v1185_v36 = vld [vmem:[%s6591_s17 + $0x160] sm:$0xff]  ;;  %v1203_v45 = vld [vmem:[%s6591_s17 + $0x1f0] sm:$0xff]  ;;  %7932 = vst [vmem:[#allocation89_spill] sm:$0xff] %v7308_v55 }
 0x9e2   : > { %5552 = vmatprep.subr.bf16.mxu0 %v7288_v12  ;;  %v7300_v52 = vpack.c.bf16 %v1186_v8, %v1185_v36  ;;  %5584 = vmatprep.subr.bf16.mxu1 %v7293_v6  ;;  %v7313_v39 = vpack.c.bf16 %v1204_v10, %v1203_v45  ;;  %7934 = vst [vmem:[#allocation91_spill] sm:$0xff] %v7315_v34  ;;  %v1187_v36 = vld [vmem:[%s6591_s17 + $0x170] sm:$0xff]  ;;  %v1188_v8 = vld [vmem:[%s6591_s17 + $0x178] sm:$0xff]  ;;  %s8011_s17 = sld [smem:[#allocation104_spill]] (!%p4614_p5) }
 0x9e3   : > { %v7320_v6 = vpack.c.bf16 %v1188_v8, %v1187_v36 }
 0x9e4   : > { %7931 = vst [vmem:[#allocation88_spill] sm:$0xff] %v7300_v52  ;;  %7933 = vst [vmem:[#allocation90_spill] sm:$0xff] %v7313_v39 }
 0x9e5   : > { %5554 = vmatpush3.bf16.msra.mxu0 %v7295_v29  ;;  %5586 = vmatpush3.bf16.msra.mxu1 %v7300_v52  ;;  %7935 = vst [vmem:[#allocation92_spill] sm:$0xff] %v7320_v6 }
 0x9e6   : > { %5556 = vmatprep.subr.bf16.mxu0 %v7308_v55  ;;  %5588 = vmatprep.subr.bf16.mxu1 %v7313_v39 }
 0x9e9   : > { %5558 = vmatpush3.bf16.msra.mxu0 %v7315_v34  ;;  %5590 = vmatpush3.bf16.msra.mxu1 %v7320_v6 }
 0x9ea   : > { %5591 = vmatprep.subr.bf16.mxu0 %v7936_v15  ;;  %5616 = vmatprep.subr.bf16.mxu1 %v6708_v47 }
 0xa9f   : > { %v7327_v45 = vpop.f32.mrb[6].mxu0  ;;  %v7329_v63 = vpop.f32.mrb[16].mxu1 }
 0xaa0   : > { %v7332_v10 = vmul.f32 0.70710677, %v7327_v45  ;;  %v7335_v24 = vmul.f32 0.70710677, %v7329_v63  ;;  %v7337_v48 = vpop.f32.mrb[7].mxu0  ;;  %v7339_v36 = vpop.f32.mrb[17].mxu1 }
 0xaa1   : > { %v7344_v34 = vmul.f32 0.70710677, %v7337_v48  ;;  %v7348_v29 = vmul.f32 0.70710677, %v7339_v36 }
 0xaa2   : > { %v2461_v8 = vand.u32 2147483647, %v7332_v10  ;;  %v2463_v6 = vand.u32 2147483647, %v7335_v24  ;;  %vm2453_vm8 = vcmp.ge.f32.partialorder %v7332_v10, 0.0  ;;  %vm2455_vm9 = vcmp.ge.f32.partialorder %v7335_v24, 0.0 }
 0xaa3   : > { %v2462_v52 = vand.u32 2147483647, %v7344_v34  ;;  %v2464_v42 = vand.u32 2147483647, %v7348_v29  ;;  %vm2454_vm10 = vcmp.ge.f32.partialorder %v7344_v34, 0.0  ;;  %vm2456_vm11 = vcmp.ge.f32.partialorder %v7348_v29, 0.0 }
 0xaa4   : > { %v2465_v39 = vmul.f32 0.3275911, %v2461_v8  ;;  %v2467_v55 = vmul.f32 0.3275911, %v2463_v6  ;;  %v2517_v35 = vsub.f32 0.0, %v2461_v8  ;;  %v2519_v3 = vsub.f32 0.0, %v2463_v6 }
 0xaa5   : > { %v2466_v41 = vmul.f32 0.3275911, %v2462_v52  ;;  %v2468_v30 = vmul.f32 0.3275911, %v2464_v42  ;;  %v2518_v40 = vsub.f32 0.0, %v2462_v52  ;;  %v2520_v7 = vsub.f32 0.0, %v2464_v42 }
 0xaa6   : > { %v2469_v12 = vadd.f32 1.0, %v2465_v39  ;;  %v2471_v62 = vadd.f32 1.0, %v2467_v55  ;;  %v2521_v1 = vmul.f32 %v2517_v35, %v2461_v8  ;;  %v2523_v11 = vmul.f32 %v2519_v3, %v2463_v6 }
 0xaa7   : > { %v2470_v25 = vadd.f32 1.0, %v2466_v41  ;;  %v2472_v16 = vadd.f32 1.0, %v2468_v30  ;;  %v2522_v2 = vmul.f32 %v2518_v40, %v2462_v52  ;;  %v2524_v26 = vmul.f32 %v2520_v7, %v2464_v42 }
 0xaa8   : > { %5982 = vrcp.f32 %v2469_v12  ;;  %v2529_v5 = vmul.f32 1.442695, %v2523_v11 }
 0xaa9   : > { %5984 = vrcp.f32 %v2471_v62  ;;  %v2525_v62 = vmul.f32 1.442695, %v2521_v1  ;;  %v2527_v8 = vmul.f32 1.442695, %v2522_v2  ;;  %v2531_v40 = vmul.f32 1.442695, %v2524_v26 }
 0xaaa   : > { %5986 = vrcp.f32 %v2470_v25 }
 0xaab   : > { %5988 = vrcp.f32 %v2472_v16 }
 0xaac   : > { %5990 = vpow2.f32 %v2525_v62 }
 0xaad   : > { %5992 = vpow2.f32 %v2529_v5 }
 0xaae   : > { %5994 = vpow2.f32 %v2527_v8 }
 0xaaf   : > { %5996 = vpow2.f32 %v2531_v40  ;;  %v6252_v40 = vmov -1.0  }
 0xab0   : > { %v2459_v10 = vsel %vm2455_vm9, 1.0, %v6252_v40  ;;  %v2460_v34 = vsel %vm2456_vm11, 1.0, %v6252_v40 }
 0xab2   : > { %v5983_v17 = vpop.eup %5982 }
 0xab3   : > { %v5985_v33 = vpop.eup %5984  ;;  %v2481_v28 = vmul.f32 1.0614054, %v5983_v17 }
 0xab4   : > { %v2483_v39 = vmul.f32 1.0614054, %v5985_v33  ;;  %v5987_v12 = vpop.eup %5986 }
 0xab5   : > { %v2485_v55 = vadd.f32 -1.4531521, %v2481_v28  ;;  %v2482_v25 = vmul.f32 1.0614054, %v5987_v12  ;;  %v5989_v20 = vpop.eup %5988 }
 0xab6   : > { %v2487_v41 = vadd.f32 -1.4531521, %v2483_v39  ;;  %v2484_v21 = vmul.f32 1.0614054, %v5989_v20 }
 0xab7   : > { %v2489_v61 = vmul.f32 %v5983_v17, %v2485_v55  ;;  %v2486_v16 = vadd.f32 -1.4531521, %v2482_v25 }
 0xab8   : > { %v2491_v30 = vmul.f32 %v5985_v33, %v2487_v41  ;;  %v2488_v19 = vadd.f32 -1.4531521, %v2484_v21 }
 0xab9   : > { %v2493_v38 = vadd.f32 1.4214138, %v2489_v61  ;;  %v2490_v28 = vmul.f32 %v5987_v12, %v2486_v16 }
 0xaba   : > { %v2495_v35 = vadd.f32 1.4214138, %v2491_v30  ;;  %v2492_v11 = vmul.f32 %v5989_v20, %v2488_v19  ;;  %v5991_v30 = vpop.eup %5990 }
 0xabb   : > { %v2497_v3 = vmul.f32 %v5983_v17, %v2493_v38  ;;  %v2494_v39 = vadd.f32 1.4214138, %v2490_v28 }
 0xabc   : > { %v2499_v6 = vmul.f32 %v5985_v33, %v2495_v35  ;;  %v2496_v25 = vadd.f32 1.4214138, %v2492_v11  ;;  %v5993_v35 = vpop.eup %5992 }
 0xabd   : > { %v2501_v1 = vadd.f32 -0.28449672, %v2497_v3  ;;  %v2498_v41 = vmul.f32 %v5987_v12, %v2494_v39 }
 0xabe   : > { %v2503_v52 = vadd.f32 -0.28449672, %v2499_v6  ;;  %v2500_v62 = vmul.f32 %v5989_v20, %v2496_v25  ;;  %v2458_v25 = vsel %vm2454_vm10, 1.0, %v6252_v40 }
 0xabf   : > { %v2505_v55 = vmul.f32 %v5983_v17, %v2501_v1  ;;  %v2502_v42 = vadd.f32 -0.28449672, %v2498_v41  ;;  %v5995_v1 = vpop.eup %5994 }
 0xac0   : > { %v2507_v61 = vmul.f32 %v5985_v33, %v2503_v52  ;;  %v2504_v21 = vadd.f32 -0.28449672, %v2500_v62  ;;  %v5997_v41 = vpop.eup %5996  ;;  %v2446_v62 = vmul.f32 0.5, %v7337_v48  ;;  %v2705_v48 = vpop.xlane.xlu0 %2704 }
 0xac1   : > { %v2509_v7 = vadd.f32 0.2548296, %v2505_v55  ;;  %v2506_v5 = vmul.f32 %v5987_v12, %v2502_v42 }
 0xac2   : > { %v2511_v2 = vadd.f32 0.2548296, %v2507_v61  ;;  %v2508_v8 = vmul.f32 %v5989_v20, %v2504_v21  ;;  %v2720_v21 = vpop.xlane.xlu1 %2719 }
 0xac3   : > { %v2513_v38 = vmul.f32 %v5983_v17, %v2509_v7  ;;  %v2510_v26 = vadd.f32 0.2548296, %v2506_v5  ;;  %v2457_v17 = vsel %vm2453_vm8, 1.0, %v6252_v40 }
 0xac4   : > { %v2515_v16 = vmul.f32 %v5985_v33, %v2511_v2  ;;  %v2512_v39 = vadd.f32 0.2548296, %v2508_v8  ;;  %v2721_v8 = vmul.f32 0.0078125, %v2720_v21 }
 0xac5   : > { %v2533_v3 = vmul.f32 %v5991_v30, %v2513_v38  ;;  %v2514_v6 = vmul.f32 %v5987_v12, %v2510_v26  ;;  %v2447_v26 = vmul.f32 0.5, %v7329_v63 }
 0xac6   : > { %v2535_v19 = vmul.f32 %v5993_v35, %v2515_v16  ;;  %v2516_v55 = vmul.f32 %v5989_v20, %v2512_v39  ;;  %v2445_v20 = vmul.f32 0.5, %v7327_v45  ;;  %v2706_v45 = vmul.f32 0.0078125, %v2705_v48  ;;  %v6034_v39 = vld [vmem:[%s6617_s0] ss:$0 sm:$0xff] }
 0xac7   : > { %v2537_v28 = vsub.f32 1.0, %v2533_v3  ;;  %v2534_v33 = vmul.f32 %v5995_v1, %v2514_v6  ;;  %v2448_v3 = vmul.f32 0.5, %v7339_v36  ;;  %v7937_v6 = vmov 0.0   ;;  %v6032_v36 = vld [vmem:[%s6612_s2] ss:$0 sm:$0xff] }
 0xac8   : > { %v2539_v52 = vsub.f32 1.0, %v2535_v19  ;;  %v2536_v12 = vmul.f32 %v5997_v41, %v2516_v55  ;;  %v2722_v63 = vadd.f32 1e-05, %v2721_v8 }
 0xac9   : > { %v2541_v11 = vmul.f32 %v2537_v28, %v2457_v17  ;;  %v2538_v61 = vsub.f32 1.0, %v2534_v33 }
 0xaca   : > { %v2543_v24 = vmul.f32 %v2539_v52, %v2459_v10  ;;  %v2540_v2 = vsub.f32 1.0, %v2536_v12  ;;  %5998 = vrsqrt.f32 %v2722_v63 }
 0xacb   : > { %v2542_v7 = vmul.f32 %v2538_v61, %v2458_v25  ;;  %v2545_v42 = vadd.f32 1.0, %v2541_v11 }
 0xacc   : > { %v2544_v5 = vmul.f32 %v2540_v2, %v2460_v34  ;;  %v2547_v30 = vadd.f32 1.0, %v2543_v24 }
 0xacd   : > { %v2546_v38 = vadd.f32 1.0, %v2542_v7  ;;  %v2549_v35 = vmul.f32 %v2545_v42, %v2445_v20 }
 0xace   : > { %v2548_v29 = vadd.f32 1.0, %v2544_v5  ;;  %v2551_v28 = vmul.f32 %v2547_v30, %v2447_v26 }
 0xacf   : > { %v2550_v16 = vmul.f32 %v2546_v38, %v2446_v62 }
 0xad0   : > { %v2552_v19 = vmul.f32 %v2548_v29, %v2448_v3 }
 0xad1   : > { %2617 = vmatprep.mubr.f32.mxu0 %v2550_v16 }
 0xad2   : > { %2618 = vmatmul.mubr.f32.vlgmr.msra.gmra.mrb[8].mxu0 %v2549_v35  ;;  %2687 = vmatprep.mubr.f32.mxu1 %v2552_v19 }
 0xad3   : > { %5593 = vmatpush3.bf16.msra.mxu0 %v6703_v43  ;;  %5152 = vmatprep.mubr.msk.f32.mxu0 %vm6249_vm2, %v7937_v6  ;;  %v2707_v43 = vadd.f32 1e-05, %v2706_v45 }
 0xad4   : > { %5594 = vmatprep.subr.bf16.mxu0 %v7936_v15  ;;  %2688 = vmatmul.mubr.f32.vlgmr.msra.gmra.mrb[18].mxu1 %v2551_v28 }
 0xad5   : > { %5618 = vmatpush1.bf16.msra.mxu1 %v6715_v51  ;;  %2861 = vmatprep.mubr.f32.mxu1 %v7937_v6  ;;  %6000 = vrsqrt.f32 %v2707_v43 }
 0xad6   : > { %5620 = vmatprep.subr.bf16.mxu1 %v6723_v56 }
 0xad7   : > { %5596 = vmatpush3.bf16.msra.mxu0 %v6713_v50  ;;  %v5999_v50 = vpop.eup %5998 }
 0xad8   : > { %5597 = vmatprep.subr.bf16.mxu0 %v7936_v15 }
 0xad9   : > { %5622 = vmatpush1.bf16.msra.mxu1 %v6728_v59 }
 0xada   : > { %5624 = vmatprep.subr.bf16.mxu1 %v6756_v13 }
 0xadb   : > { %5599 = vmatpush3.bf16.msra.mxu0 %v6732_v60 }
 0xadc   : > { %5600 = vmatprep.subr.bf16.mxu0 %v7936_v15 }
 0xadd   : > { %5626 = vmatpush1.bf16.msra.mxu1 %v6758_v14 }
 0xade   : > { %5628 = vmatprep.subr.bf16.mxu1 %v6772_v22 }
 0xadf   : > { %5602 = vmatpush3.bf16.msra.mxu0 %v6751_v9  ;;  %v6001_v60 = vpop.eup %6000  ;;  %v2724_v9 = vmul.f32 %v5999_v50, %v7049_v54 }
 0xae0   : > { %5603 = vmatprep.subr.bf16.mxu0 %v7936_v15 }
 0xae1   : > { %5630 = vmatpush1.bf16.msra.mxu1 %v6774_v23  ;;  %v2725_v1 = vmul.f32 %v6032_v36, %v2724_v9 }
 0xae2   : > { %5632 = vmatprep.subr.bf16.mxu1 %v6788_v31 }
 0xae3   : > { %5605 = vmatpush3.bf16.msra.mxu0 %v6767_v18  ;;  %v2709_v18 = vmul.f32 %v6001_v60, %v7158_v46  ;;  %v2726_v17 = vadd.f32 %v6034_v39, %v2725_v1 }
 0xae4   : > { %5606 = vmatprep.subr.bf16.mxu0 %v7936_v15 }
 0xae5   : > { %5634 = vmatpush1.bf16.msra.mxu1 %v6790_v32 }
 0xae6   : > { %5636 = vmatprep.subr.bf16.mxu1 %v6805_v44 }
 0xae7   : > { %5608 = vmatpush3.bf16.msra.mxu0 %v6783_v27  ;;  %v6033_v27 = vld [vmem:[%s6602_s29] ss:$0 sm:$0xff] }
 0xae8   : > { %5609 = vmatprep.subr.bf16.mxu0 %v7936_v15  ;;  %v2710_v54 = vmul.f32 %v6033_v27, %v2709_v18 }
 0xae9   : > { %5638 = vmatpush1.bf16.msra.mxu1 %v6811_v49 }
 0xaea   : > { %5640 = vmatprep.subr.bf16.mxu1 %v6816_v53 }
 0xaeb   : > { %5611 = vmatpush3.bf16.msra.mxu0 %v6796_v37  ;;  %v6035_v37 = vld [vmem:[%s6607_s8] ss:$0 sm:$0xff] }
 0xaec   : > { %5612 = vmatprep.subr.bf16.mxu0 %v7936_v15  ;;  %v2711_v46 = vadd.f32 %v6035_v37, %v2710_v54 }
 0xaed   : > { %5642 = vmatpush1.bf16.msra.mxu1 %v6825_v58 }
 0xaee   : > { %5644 = vmatprep.subr.bf16.mxu1 %v6833_v0 }
 0xaef   : > { %5614 = vmatpush3.bf16.msra.mxu0 %v6821_v57 }
 0xaf0   : > { %5648 = vmatprep.subr.bf16.mxu0 %v6708_v47  ;;  %v7938_v47 = vld [vmem:[#allocation24_spill] sm:$0xff] }
 0xaf1   : > { %5646 = vmatpush1.bf16.msra.mxu1 %v6838_v4 }
 0xaf2   : > { %5153 = vmatmul.mubr.f32.vlgmr.msra.gmra.mrb[10].mxu0 %v2726_v17  ;;  %5155 = vmatprep.subr.mxu1 %v7937_v6 }
 0xaf3   : > { %5650 = vmatpush1.bf16.msra.mxu0 %v6715_v51  ;;  %2932 = vmatprep.mubr.f32.mxu0 %v7937_v6  ;;  %v7939_v51 = vld [vmem:[#allocation25_spill] sm:$0xff] }
 0xaf4   : > { %5652 = vmatprep.subr.bf16.mxu0 %v6723_v56  ;;  %2862 = vmatmul.mubr.f32.vlgmr.msra.gmra.mrb[20].mxu1 %v2711_v46  ;;  %v7940_v56 = vld [vmem:[#allocation26_spill] sm:$0xff] }
 0xaf5   : > { %5157 = vmatprep.mubr.msk.f32.mxu1 %vm6249_vm2, %v7937_v6 }
 0xaf7   : > { %5654 = vmatpush1.bf16.msra.mxu0 %v6728_v59  ;;  %v7941_v59 = vld [vmem:[#allocation27_spill] sm:$0xff] }
 0xaf8   : > { %5656 = vmatprep.subr.bf16.mxu0 %v6756_v13  ;;  %v7942_v13 = vld [vmem:[#allocation29_spill] sm:$0xff] }
 0xafb   : > { %5658 = vmatpush1.bf16.msra.mxu0 %v6758_v14 }
 0xafc   : > { %5660 = vmatprep.subr.bf16.mxu0 %v6772_v22 }
 0xaff   : > { %5662 = vmatpush1.bf16.msra.mxu0 %v6774_v23 }
 0xb00   : > { %5664 = vmatprep.subr.bf16.mxu0 %v6788_v31 }
 0xb03   : > { %5666 = vmatpush1.bf16.msra.mxu0 %v6790_v32 }
 0xb04   : > { %5668 = vmatprep.subr.bf16.mxu0 %v6805_v44 }
 0xb07   : > { %5670 = vmatpush1.bf16.msra.mxu0 %v6811_v49 }
 0xb08   : > { %5672 = vmatprep.subr.bf16.mxu0 %v6816_v53  ;;  %v7943_v53 = vld [vmem:[#allocation28_spill] sm:$0xff] }
 0xb0b   : > { %5674 = vmatpush1.bf16.msra.mxu0 %v6825_v58 }
 0xb0c   : > { %5676 = vmatprep.subr.bf16.mxu0 %v6833_v0 }
 0xb0f   : > { %5678 = vmatpush1.bf16.msra.mxu0 %v6838_v4 }
 0xb10   : > { %5679 = vmatprep.subr.bf16.mxu0 %v7936_v15 }
 0xb12   : > { %2933 = vmatmul.mubr.f32.vlgmr.msra.gmra.mrb[12].mxu0 %v2726_v17 }
 0xb13   : > { %5681 = vmatpush3.bf16.msra.mxu0 %v7938_v47  ;;  %5211 = vmatprep.mubr.msk.f32.mxu0 %vm6249_vm2, %v7937_v6 }
 0xb14   : > { %5682 = vmatprep.subr.bf16.mxu0 %v7936_v15 }
 0xb17   : > { %5684 = vmatpush3.bf16.msra.mxu0 %v7939_v51 }
 0xb18   : > { %5685 = vmatprep.subr.bf16.mxu0 %v7936_v15 }
 0xb1b   : > { %5687 = vmatpush3.bf16.msra.mxu0 %v7940_v56 }
 0xb1c   : > { %5688 = vmatprep.subr.bf16.mxu0 %v7936_v15 }
 0xb1f   : > { %5690 = vmatpush3.bf16.msra.mxu0 %v7941_v59  ;;  %v7944_v59 = vld [vmem:[#allocation20_spill] sm:$0xff] }
 0xb20   : > { %5704 = vmatprep.subr.bf16.mxu0 %v7942_v13  ;;  %v7945_v13 = vld [vmem:[#allocation21_spill] sm:$0xff] }
 0xba5   : > { %v4744_v14 = vpop.f32.mrb[8].mxu0 }
 0xba6   : > { %v4745_v22 = vpop.f32.mrb[9].mxu0 }
 0xba7   : > { %v4746_v23 = vadd.f32 %v4745_v22, %v4744_v14  ;;  %v4779_v31 = vpop.f32.mrb[18].mxu1  ;;  %v7946_v14 = vld [vmem:[#allocation22_spill] sm:$0xff]  ;;  %v7947_v22 = vld [vmem:[#allocation23_spill] sm:$0xff] }
 0xba8   : > { %v4780_v32 = vpop.f32.mrb[19].mxu1 }
 0xba9   : > { %v4781_v44 = vadd.f32 %v4780_v32, %v4779_v31 }
 0xbab   : > { %v2690_v49 = vadd.f32 %v4781_v44, %v4746_v23  ;;  %v7948_v23 = vld [vmem:[#allocation30_spill] sm:$0xff] }
 0xbad   : > { %v2693_v57 = vadd.f32 %v2690_v49, %v7943_v53 }
 0xbaf   : > { %2694 = vst [vmem:[#allocation3] sm:$0xf] %v2693_v57  ;;  %v7949_v57 = vld [vmem:[#allocation32_spill] sm:$0xff] }
 0xbc5   : > { %v2793_v58 = vpop.f32.mrb[10].mxu0 }
 0xbc6   : > { %v5154_v0 = vpop.f32.mrb[11].mxu0  ;;  %v2939_v11 = vmul.f32 0.35355338, %v2793_v58  ;;  %v7950_v58 = vld [vmem:[#allocation34_spill] sm:$0xff] }
 0xbc7   : > { %v2863_v4 = vpop.f32.mrb[20].mxu1  ;;  %v7951_v0 = vld [vmem:[#allocation36_spill] sm:$0xff] }
 0xbc8   : > { %v2940_v52 = vmul.f32 0.35355338, %v2863_v4  ;;  %v7434_v33 = vpop.f32.mrb[21].mxu1  ;;  %v7953_v4 = vld [vmem:[#allocation40_spill] sm:$0xff] }
 0xbca   : > { %5156 = vmatpush3.xpose.msk.msra.mxu1 %vm1476_vm3, %v2940_v52 }
 0xbcb   : > { %5160 = vmatprep.subr.mxu1 %v7937_v6 }
 0xbcd   : > { %5158 = vmatmul.mubr.msk.f32.vlgmr.msra.gmra.mrb[22].mxu1 %vm1476_vm3, %v2939_v11 }
 0xbce   : > { %5162 = vmatprep.mubr.msk.f32.mxu1 %vm6249_vm2, %v7937_v6 }
 0xbe5   : > { %v2934_v55 = vpop.f32.mrb[12].mxu0 }
 0xbe6   : > { %v2941_v41 = vmul.f32 0.35355338, %v2934_v55  ;;  %v2936_v61 = vpop.f32.mrb[13].mxu0  ;;  %v7957_v55 = vld [vmem:[#allocation48_spill] sm:$0xff] }
 0xbe8   : > { %5161 = vmatpush3.xpose.msk.msra.mxu1 %vm1476_vm3, %v2941_v41 }
 0xbe9   : > { %5165 = vmatprep.subr.mxu1 %v7937_v6 }
 0xbeb   : > { %5163 = vmatmul.mubr.msk.f32.vlgmr.msra.gmra.mrb[24].mxu1 %vm1476_vm3, %v2939_v11 }
 0xbec   : > { %5166 = vmatpush3.msk.msra.mxu1 %vm1233_vm1, %v2936_v61  ;;  %5167 = vmatprep.mubr.msk.f32.mxu1 %vm6249_vm2, %v7937_v6 }
 0xbed   : > { %5170 = vmatprep.subr.mxu1 %v7937_v6 }
 0xca0   : > { %v3014_v10 = vpop.f32.mrb[22].mxu1 }
 0xca1   : > { %v5159_v25 = vpop.f32.mrb[23].mxu1  ;;  %v3091_v12 = vsel %vm1626_vm4, %v3014_v10, -inf }
 0xca2   : > { %3092 = vmax.xlane.f32.xlu1 %v3091_v12  ;;  %v7961_v25 = vld [vmem:[#allocation56_spill] sm:$0xff]  ;;  %v7962_v12 = vld [vmem:[#allocation58_spill] sm:$0xff] }
 0xcb3   : > { %3264 = vrot.lane.b32.xlu1 %v2940_v52, %s6251_s16  ;;  %v7954_v52 = vld [vmem:[#allocation42_spill] sm:$0xff] }
 0xcb7   : > { %3340 = vrot.lane.b32.xlu1 %v2941_v41, %s6251_s16  ;;  %v7958_v41 = vld [vmem:[#allocation50_spill] sm:$0xff] }
 0xcbe   : > { %v3087_v24 = vpop.f32.mrb[24].mxu1 }
 0xcbf   : > { %v5164_v7 = vpop.f32.mrb[25].mxu1  ;;  %v3094_v42 = vsel %vm1630_vm5, %v3087_v24, -inf }
 0xcc0   : > { %3095 = vmax.xlane.f32.xlu0 %v3094_v42  ;;  %v7964_v7 = vld [vmem:[#allocation62_spill] sm:$0xff] }
 0xcd6   : > { %3262 = vrot.lane.b32.xlu0 %v2939_v11, %s6251_s16  ;;  %v7956_v11 = vld [vmem:[#allocation46_spill] sm:$0xff] }
 0xd2f   : > { %v3093_v2 = vpop.xlane.xlu1 %3092 }
 0xd33   : > { %v3265_v21 = vpop.permute.xlu1 %3264 }
 0xd37   : > { %v3341_v29 = vpop.permute.xlu1 %3340 }
 0xd4d   : > { %v3096_v62 = vpop.xlane.xlu0 %3095 }
 0xd4e   : > { %v3097_v38 = vmax.f32 %v3093_v2, %v3096_v62 }
 0xd50   : > { %v3101_v34 = vsub.f32 %v3087_v24, %v3097_v38  ;;  %v3098_v5 = vsub.f32 %v3014_v10, %v3097_v38  ;;  %v7960_v10 = vld [vmem:[#allocation54_spill] sm:$0xff]  ;;  %v7963_v24 = vld [vmem:[#allocation60_spill] sm:$0xff] }
 0xd51   : > { %v3263_v3 = vpop.permute.xlu0 %3262 }
 0xd52   : > { %v3102_v20 = vmul.f32 1.442695, %v3101_v34  ;;  %v3099_v30 = vmul.f32 1.442695, %v3098_v5 }
 0xd54   : > { %6002 = vpow2.f32 %v3102_v20 }
 0xd55   : > { %6004 = vpow2.f32 %v3099_v30  ;;  %v7965_v30 = vld [vmem:[#allocation31_spill] sm:$0xff] }
 0xd5e   : > { %v6003_v16 = vpop.eup %6002 }
 0xd5f   : > { %5168 = vmatmul.mubr.msk.f32.vlgmr.msra.gmra.mrb[26].mxu1 %vm1649_vm6, %v6003_v16  ;;  %v6005_v35 = vpop.eup %6004  ;;  %v3107_v60 = vsel %vm1630_vm5, %v6003_v16, 0.0  ;;  %v7966_v16 = vld [vmem:[#allocation33_spill] sm:$0xff] }
 0xd60   : > { %5171 = vmatpush3.msra.mxu1 %v7434_v33  ;;  %5172 = vmatprep.mubr.msk.f32.mxu1 %vm6249_vm2, %v7937_v6  ;;  %v3104_v50 = vsel %vm1626_vm4, %v6005_v35, 0.0 }
 0xd61   : > { %5175 = vmatprep.subr.mxu1 %v7937_v6 }
 0xd67   : > { %5173 = vmatmul.mubr.msk.f32.vlgmr.msra.gmra.mrb[26].mxu1 %vm1726_vm7, %v6005_v35  ;;  %v7968_v35 = vld [vmem:[#allocation37_spill] sm:$0xff] }
 0xd68   : > { %5176 = vmatpush3.xpose.msk.msra.mxu1 %vm1476_vm3, %v3265_v21  ;;  %5177 = vmatprep.mubr.msk.f32.mxu1 %vm6249_vm2, %v7937_v6  ;;  %v7967_v21 = vld [vmem:[#allocation35_spill] sm:$0xff] }
 0xd69   : > { %5180 = vmatprep.subr.mxu1 %v7937_v6 }
 0xd6b   : > { %5178 = vmatmul.mubr.msk.f32.vlgmr.msra.gmra.mrb[28].mxu1 %vm1476_vm3, %v3263_v3 }
 0xd6c   : > { %5181 = vmatpush3.xpose.msk.msra.mxu1 %vm1476_vm3, %v3341_v29  ;;  %5182 = vmatprep.mubr.msk.f32.mxu1 %vm6249_vm2, %v7937_v6  ;;  %v7970_v29 = vld [vmem:[#allocation41_spill] sm:$0xff] }
 0xd6d   : > { %5185 = vmatprep.subr.mxu1 %v7937_v6 }
 0xd6f   : > { %5183 = vmatmul.mubr.msk.f32.vlgmr.msra.gmra.mrb[30].mxu1 %vm1476_vm3, %v3263_v3  ;;  %v7969_v3 = vld [vmem:[#allocation39_spill] sm:$0xff] }
 0xd70   : > { %5187 = vmatprep.mubr.msk.f32.mxu1 %vm6249_vm2, %v7937_v6 }
 0xe3a   : > { %v3257_v26 = vpop.f32.mrb[26].mxu1 }
 0xe3b   : > { %v5174_v19 = vpop.f32.mrb[27].mxu1 }
 0xe3c   : > { %v7972_v19 = vld [vmem:[#allocation45_spill] sm:$0xff] }
 0xe3e   : > { %v3336_v8 = vpop.f32.mrb[28].mxu1 }
 0xe3f   : > { %v5179_v48 = vpop.f32.mrb[29].mxu1  ;;  %v3414_v28 = vsel %vm1626_vm4, %v3336_v8, -inf }
 0xe40   : > { %3415 = vmax.xlane.f32.xlu1 %v3414_v28  ;;  %v7974_v48 = vld [vmem:[#allocation49_spill] sm:$0xff]  ;;  %v7975_v28 = vld [vmem:[#allocation51_spill] sm:$0xff] }
 0xe42   : > { %v3410_v45 = vpop.f32.mrb[30].mxu1 }
 0xe43   : > { %v5184_v63 = vpop.f32.mrb[31].mxu1  ;;  %v3417_v43 = vsel %vm1630_vm5, %v3410_v45, -inf }
 0xe44   : > { %3418 = vmax.xlane.f32.xlu0 %v3417_v43  ;;  %v7978_v63 = vld [vmem:[#allocation57_spill] sm:$0xff]  ;;  %v7979_v43 = vld [vmem:[#allocation59_spill] sm:$0xff] }
 0xe51   : > { %3513 = vrot.lane.b32.xlu1 %v7434_v33, %s6251_s16  ;;  %v7955_v33 = vld [vmem:[#allocation44_spill] sm:$0xff] }
 0xe5a   : > { %3435 = vrot.lane.b32.xlu0 %v2936_v61, %s6251_s16  ;;  %v7959_v61 = vld [vmem:[#allocation52_spill] sm:$0xff] }
 0xe75   : > { %3105 = vadd.xlane.f32.xlu1 %v3104_v50  ;;  %v7980_v50 = vld [vmem:[#allocation61_spill] sm:$0xff] }
 0xe79   : > { %3108 = vadd.xlane.f32.xlu0 %v3107_v60 }
 0xecd   : > { %v3416_v9 = vpop.xlane.xlu1 %3415 }
 0xed1   : > { %v3419_v18 = vpop.xlane.xlu0 %3418  ;;  %v3514_v51 = vpop.permute.xlu1 %3513 }
 0xed2   : > { %v3420_v36 = vmax.f32 %v3416_v9, %v3419_v18 }
 0xed4   : > { %v3421_v1 = vsub.f32 %v3336_v8, %v3420_v36  ;;  %v3424_v27 = vsub.f32 %v3410_v45, %v3420_v36  ;;  %v7973_v8 = vld [vmem:[#allocation47_spill] sm:$0xff] }
 0xed5   : > { %v3436_v54 = vpop.permute.xlu0 %3435  ;;  %v7977_v45 = vld [vmem:[#allocation55_spill] sm:$0xff] }
 0xed6   : > { %v3422_v39 = vmul.f32 1.442695, %v3421_v1  ;;  %v3425_v17 = vmul.f32 1.442695, %v3424_v27  ;;  %5186 = vmatpush3.msk.msra.mxu1 %vm1233_vm1, %v3436_v54  ;;  %v6036_v27 = vld [vmem:[#allocation3 + $0x4] sm:$0xf] }
 0xed7   : > { %5190 = vmatprep.subr.mxu1 %v7937_v6 }
 0xed8   : > { %6006 = vpow2.f32 %v3422_v39 }
 0xed9   : > { %6008 = vpow2.f32 %v3425_v17 }
 0xee2   : > { %v6007_v37 = vpop.eup %6006 }
 0xee3   : > { %v6009_v46 = vpop.eup %6008  ;;  %v3427_v47 = vsel %vm1626_vm4, %v6007_v37, 0.0 }
 0xee4   : > { %5188 = vmatmul.mubr.msk.f32.vlgmr.msra.gmra.mrb[32].mxu1 %vm1649_vm6, %v6009_v46  ;;  %v3430_v56 = vsel %vm1630_vm5, %v6009_v46, 0.0  ;;  %3428 = vadd.xlane.f32.xlu0 %v3427_v47 }
 0xee5   : > { %5191 = vmatpush3.msra.mxu1 %v3514_v51  ;;  %3431 = vadd.xlane.f32.xlu1 %v3430_v56 }
 0xee6   : > { %5192 = vmatprep.mubr.msk.f32.mxu1 %vm6249_vm2, %v7937_v6  ;;  %5691 = vmatprep.subr.bf16.mxu1 %v7936_v15 }
 0xeec   : > { %5193 = vmatmul.mubr.msk.f32.vlgmr.msra.gmra.mrb[32].mxu1 %vm1726_vm7, %v6007_v37 }
 0xeed   : > { %5693 = vmatpush3.bf16.msra.mxu1 %v7944_v59  ;;  %5230 = vmatprep.mubr.msk.f32.mxu1 %vm6249_vm2, %v7937_v6 }
 0xeee   : > { %5694 = vmatprep.subr.bf16.mxu1 %v7936_v15 }
 0xef1   : > { %5696 = vmatpush3.bf16.msra.mxu1 %v7945_v13 }
 0xef2   : > { %5697 = vmatprep.subr.bf16.mxu1 %v7936_v15 }
 0xef5   : > { %5699 = vmatpush3.bf16.msra.mxu1 %v7946_v14 }
 0xef6   : > { %5700 = vmatprep.subr.bf16.mxu1 %v7936_v15  ;;  %v7952_v15 = vld [vmem:[#allocation38_spill] sm:$0xff] }
 0xef9   : > { %5702 = vmatpush3.bf16.msra.mxu1 %v7947_v22 }
 0xefa   : > { %5736 = vmatprep.subr.bf16.mxu1 %v7948_v23  ;;  %v6037_v23 = vld [vmem:[%s6622_s24] ss:$0 sm:$0xff] }
 0xf02   : > { %v3106_v31 = vpop.xlane.xlu1 %3105 }
 0xf06   : > { %v3109_v32 = vpop.xlane.xlu0 %3108 }
 0xf07   : > { %v3110_v44 = vadd.f32 %v3109_v32, %v3106_v31  ;;  %v6038_v32 = vld [vmem:[%s6632_s23] ss:$0 sm:$0xff] }
 0xf09   : > { %6010 = vrcp.f32 %v3110_v44 }
 0xf13   : > { %v6011_v49 = vpop.eup %6010 }
 0xf14   : > { %v3261_v53 = vmul.f32 %v6011_v49, %v3257_v26  ;;  %v7971_v26 = vld [vmem:[#allocation43_spill] sm:$0xff] }
 0xf15   : > { %v7981_v49 = vld [vmem:[#allocation63_spill] sm:$0xff] }
 0xf16   : > { %5231 = vmatmul.mubr.msk.f32.vlgmr.msra.gmra.mrb[34].mxu1 %vm1476_vm3, %v3261_v53  ;;  %v7982_v53 = vld [vmem:[#allocation64_spill] sm:$0xff] }
 0xf17   : > { %5738 = vmatpush1.bf16.msra.mxu1 %v7949_v57  ;;  %3887 = vmatprep.mubr.f32.mxu1 %v7937_v6  ;;  %v7983_v57 = vld [vmem:[#allocation65_spill] sm:$0xff] }
 0xf18   : > { %5740 = vmatprep.subr.bf16.mxu1 %v7950_v58  ;;  %v7984_v58 = vld [vmem:[#allocation66_spill] sm:$0xff] }
 0xf1b   : > { %5742 = vmatpush1.bf16.msra.mxu1 %v7951_v0  ;;  %v7985_v0 = vld [vmem:[#allocation67_spill] sm:$0xff] }
 0xf1c   : > { %5744 = vmatprep.subr.bf16.mxu1 %v7952_v15  ;;  %v7986_v15 = vld [vmem:[#allocation68_spill] sm:$0xff] }
 0xf1f   : > { %5746 = vmatpush1.bf16.msra.mxu1 %v7953_v4  ;;  %v7987_v4 = vld [vmem:[#allocation69_spill] sm:$0xff] }
 0xf20   : > { %5748 = vmatprep.subr.bf16.mxu1 %v7954_v52  ;;  %v7988_v52 = vld [vmem:[#allocation70_spill] sm:$0xff] }
 0xf23   : > { %5750 = vmatpush1.bf16.msra.mxu1 %v7955_v33  ;;  %v7989_v33 = vld [vmem:[#allocation71_spill] sm:$0xff] }
 0xf24   : > { %5752 = vmatprep.subr.bf16.mxu1 %v7956_v11  ;;  %v7990_v11 = vld [vmem:[#allocation72_spill] sm:$0xff] }
 0xf27   : > { %5754 = vmatpush1.bf16.msra.mxu1 %v7957_v55  ;;  %v7991_v55 = vld [vmem:[#allocation73_spill] sm:$0xff] }
 0xf28   : > { %5756 = vmatprep.subr.bf16.mxu1 %v7958_v41  ;;  %v7992_v41 = vld [vmem:[#allocation74_spill] sm:$0xff] }
 0xf2b   : > { %5758 = vmatpush1.bf16.msra.mxu1 %v7959_v61  ;;  %v7993_v61 = vld [vmem:[#allocation75_spill] sm:$0xff] }
 0xf2c   : > { %5760 = vmatprep.subr.bf16.mxu1 %v7960_v10  ;;  %v7994_v10 = vld [vmem:[#allocation76_spill] sm:$0xff] }
 0xf2f   : > { %5762 = vmatpush1.bf16.msra.mxu1 %v7961_v25  ;;  %v7995_v25 = vld [vmem:[#allocation77_spill] sm:$0xff] }
 0xf30   : > { %5764 = vmatprep.subr.bf16.mxu1 %v7962_v12  ;;  %v7996_v12 = vld [vmem:[#allocation78_spill] sm:$0xff] }
 0xf33   : > { %5766 = vmatpush1.bf16.msra.mxu1 %v7963_v24  ;;  %v7997_v24 = vld [vmem:[#allocation79_spill] sm:$0xff] }
 0xf34   : > { %5800 = vmatprep.subr.bf16.mxu1 %v7964_v7  ;;  %v7998_v7 = vld [vmem:[#allocation80_spill] sm:$0xff] }
 0xf71   : > { %v3429_v2 = vpop.xlane.xlu0 %3428 }
 0xf72   : > { %v3432_v42 = vpop.xlane.xlu1 %3431 }
 0xf73   : > { %v3433_v62 = vadd.f32 %v3432_v42, %v3429_v2  ;;  %v7999_v42 = vld [vmem:[#allocation81_spill] sm:$0xff]  ;;  %v8000_v2 = vld [vmem:[#allocation82_spill] sm:$0xff] }
 0xf75   : > { %6012 = vrcp.f32 %v3433_v62  ;;  %v8001_v62 = vld [vmem:[#allocation83_spill] sm:$0xff] }
 0xf7f   : > { %v6013_v38 = vpop.eup %6012 }
 0xfbf   : > { %v3585_v34 = vpop.f32.mrb[32].mxu1 }
 0xfc0   : > { %v3589_v20 = vmul.f32 %v6013_v38, %v3585_v34  ;;  %v5194_v5 = vpop.f32.mrb[33].mxu1  ;;  %v8002_v38 = vld [vmem:[#allocation84_spill] sm:$0xff]  ;;  %v8003_v34 = vld [vmem:[#allocation85_spill] sm:$0xff] }
 0xfc1   : > { %v8005_v5 = vld [vmem:[#allocation87_spill] sm:$0xff] }
 0xfc2   : > { %5212 = vmatmul.mubr.msk.f32.vlgmr.msra.gmra.mrb[14].mxu0 %vm1476_vm3, %v3589_v20  ;;  %v8004_v20 = vld [vmem:[#allocation86_spill] sm:$0xff] }
 0xfc3   : > { %5706 = vmatpush1.bf16.msra.mxu0 %v7965_v30  ;;  %3816 = vmatprep.mubr.f32.mxu0 %v7937_v6  ;;  %v7976_v6 = vld [vmem:[#allocation53_spill] sm:$0xff]  ;;  %v8006_v30 = vld [vmem:[#allocation88_spill] sm:$0xff] }
 0xfc4   : > { %5708 = vmatprep.subr.bf16.mxu0 %v7966_v16  ;;  %v8007_v16 = vld [vmem:[#allocation89_spill] sm:$0xff] }
 0xfc7   : > { %5710 = vmatpush1.bf16.msra.mxu0 %v7967_v21  ;;  %v8008_v21 = vld [vmem:[#allocation90_spill] sm:$0xff] }
 0xfc8   : > { %5712 = vmatprep.subr.bf16.mxu0 %v7968_v35  ;;  %v8009_v35 = vld [vmem:[#allocation91_spill] sm:$0xff] }
 0xfcb   : > { %5714 = vmatpush1.bf16.msra.mxu0 %v7969_v3  ;;  %v8010_v3 = vld [vmem:[#allocation92_spill] sm:$0xff] }
 0xfcc   : > { %5716 = vmatprep.subr.bf16.mxu0 %v7970_v29 }
 0xfcf   : > { %5718 = vmatpush1.bf16.msra.mxu0 %v7971_v26 }
 0xfd0   : > { %5720 = vmatprep.subr.bf16.mxu0 %v7972_v19 }
 0xfd3   : > { %5722 = vmatpush1.bf16.msra.mxu0 %v7973_v8 }
 0xfd4   : > { %5724 = vmatprep.subr.bf16.mxu0 %v7974_v48 }
 0xfd7   : > { %5726 = vmatpush1.bf16.msra.mxu0 %v7975_v28 }
 0xfd8   : > { %5728 = vmatprep.subr.bf16.mxu0 %v7976_v6 }
 0xfdb   : > { %5730 = vmatpush1.bf16.msra.mxu0 %v7977_v45 }
 0xfdc   : > { %5732 = vmatprep.subr.bf16.mxu0 %v7978_v63 }
 0xfdf   : > { %5734 = vmatpush1.bf16.msra.mxu0 %v7979_v43 }
 0xfe0   : > { %5768 = vmatprep.subr.bf16.mxu0 %v7980_v50 }
 0xfe9   : > { %v3732_v60 = vpop.f32.mrb[34].mxu1 }
 0xfea   : > { %v5232_v9 = vpop.f32.mrb[35].mxu1 }
0x1095   : > { %v3659_v18 = vpop.f32.mrb[14].mxu0 }
0x1096   : > { %v3733_v36 = vadd.f32 %v3732_v60, %v3659_v18  ;;  %v5213_v1 = vpop.f32.mrb[15].mxu0 }
0x1098   : > { %v7533_v54 = vadd.f32 %v6036_v27, %v3733_v36 }
0x109a   : > { %v3737_v39 = vsel %vm1233_vm1, %v7533_v54, 0.0 }
0x109b   : > { %3738 = vadd.xlane.f32.xlu0 %v3737_v39 }
0x1128   : > { %v3739_v17 = vpop.xlane.xlu0 %3738 }
0x1129   : > { %v3740_v37 = vmul.f32 0.0078125, %v3739_v17 }
0x112b   : > { %v3741_v46 = vsub.f32 %v7533_v54, %v3740_v37 }
0x112d   : > { %v3742_v47 = vmul.f32 %v3741_v46, %v3741_v46 }
0x112f   : > { %v3743_v51 = vsel %vm1233_vm1, %v3742_v47, 0.0 }
0x1130   : > { %3744 = vadd.xlane.f32.xlu1 %v3743_v51 }
0x11bd   : > { %v3745_v56 = vpop.xlane.xlu1 %3744 }
0x11be   : > { %v3746_v59 = vmul.f32 0.0078125, %v3745_v56 }
0x11c0   : > { %v3747_v13 = vadd.f32 1e-05, %v3746_v59 }
0x11c2   : > { %6014 = vrsqrt.f32 %v3747_v13 }
0x11cc   : > { %v6015_v14 = vpop.eup %6014 }
0x11cd   : > { %v3749_v22 = vmul.f32 %v6015_v14, %v3741_v46 }
0x11cf   : > { %v3750_v31 = vmul.f32 %v6037_v23, %v3749_v22 }
0x11d1   : > { %v3751_v44 = vadd.f32 %v6038_v32, %v3750_v31 }
0x11d3   : > { %3817 = vmatmul.mubr.f32.vlgmr.msra.gmra.mrb[16].mxu0 %v3751_v44  ;;  %3888 = vmatmul.mubr.f32.vlgmr.msra.gmra.mrb[36].mxu1 %v3751_v44 }
0x11d4   : > { %5770 = vmatpush3.bf16.msra.mxu0 %v7981_v49  ;;  %5802 = vmatpush3.bf16.msra.mxu1 %v7982_v53 }
0x11d5   : > { %5772 = vmatprep.subr.bf16.mxu0 %v7983_v57  ;;  %5804 = vmatprep.subr.bf16.mxu1 %v7984_v58 }
0x11d8   : > { %5774 = vmatpush3.bf16.msra.mxu0 %v7985_v0  ;;  %5806 = vmatpush3.bf16.msra.mxu1 %v7986_v15 }
0x11d9   : > { %5776 = vmatprep.subr.bf16.mxu0 %v7987_v4  ;;  %5808 = vmatprep.subr.bf16.mxu1 %v7988_v52 }
0x11dc   : > { %5778 = vmatpush3.bf16.msra.mxu0 %v7989_v33  ;;  %5810 = vmatpush3.bf16.msra.mxu1 %v7990_v11 }
0x11dd   : > { %5780 = vmatprep.subr.bf16.mxu0 %v7991_v55  ;;  %5812 = vmatprep.subr.bf16.mxu1 %v7992_v41 }
0x11e0   : > { %5782 = vmatpush3.bf16.msra.mxu0 %v7993_v61  ;;  %5814 = vmatpush3.bf16.msra.mxu1 %v7994_v10 }
0x11e1   : > { %5784 = vmatprep.subr.bf16.mxu0 %v7995_v25  ;;  %5816 = vmatprep.subr.bf16.mxu1 %v7996_v12 }
0x11e4   : > { %5786 = vmatpush3.bf16.msra.mxu0 %v7997_v24  ;;  %5818 = vmatpush3.bf16.msra.mxu1 %v7998_v7 }
0x11e5   : > { %5788 = vmatprep.subr.bf16.mxu0 %v7999_v42  ;;  %5820 = vmatprep.subr.bf16.mxu1 %v8000_v2 }
0x11e8   : > { %5790 = vmatpush3.bf16.msra.mxu0 %v8001_v62  ;;  %5822 = vmatpush3.bf16.msra.mxu1 %v8002_v38 }
0x11e9   : > { %5792 = vmatprep.subr.bf16.mxu0 %v8003_v34  ;;  %5824 = vmatprep.subr.bf16.mxu1 %v8004_v20 }
0x11ec   : > { %5794 = vmatpush3.bf16.msra.mxu0 %v8005_v5  ;;  %5826 = vmatpush3.bf16.msra.mxu1 %v8006_v30 }
0x11ed   : > { %5796 = vmatprep.subr.bf16.mxu0 %v8007_v16  ;;  %5828 = vmatprep.subr.bf16.mxu1 %v8008_v21 }
0x11f0   : > { %5798 = vmatpush3.bf16.msra.mxu0 %v8009_v35  ;;  %5830 = vmatpush3.bf16.msra.mxu1 %v8010_v3 }
0x12a6   : > { %v7571_v29 = vpop.f32.mrb[16].mxu0  ;;  %v7573_v26 = vpop.f32.mrb[36].mxu1 }
0x12a7   : > { %v7576_v19 = vmul.f32 0.70710677, %v7571_v29  ;;  %v7579_v8 = vmul.f32 0.70710677, %v7573_v26  ;;  %v7581_v48 = vpop.f32.mrb[17].mxu0  ;;  %v7583_v28 = vpop.f32.mrb[37].mxu1 }
0x12a8   : > { %v7588_v63 = vmul.f32 0.70710677, %v7581_v48  ;;  %v7592_v9 = vmul.f32 0.70710677, %v7583_v28 }
0x12a9   : > { %v3910_v6 = vand.u32 2147483647, %v7576_v19  ;;  %v3912_v45 = vand.u32 2147483647, %v7579_v8  ;;  %vm3902_vm12 = vcmp.ge.f32.partialorder %v7576_v19, 0.0  ;;  %vm3904_vm13 = vcmp.ge.f32.partialorder %v7579_v8, 0.0 }
0x12aa   : > { %v3911_v60 = vand.u32 2147483647, %v7588_v63  ;;  %v3913_v39 = vand.u32 2147483647, %v7592_v9  ;;  %vm3903_vm14 = vcmp.ge.f32.partialorder %v7588_v63, 0.0  ;;  %v3908_v19 = vsel %vm3904_vm13, 1.0, %v6252_v40 }
0x12ab   : > { %v3914_v43 = vmul.f32 0.3275911, %v3910_v6  ;;  %v3916_v50 = vmul.f32 0.3275911, %v3912_v45  ;;  %v3966_v46 = vsub.f32 0.0, %v3910_v6  ;;  %v3968_v47 = vsub.f32 0.0, %v3912_v45 }
0x12ac   : > { %v3915_v1 = vmul.f32 0.3275911, %v3911_v60  ;;  %v3917_v17 = vmul.f32 0.3275911, %v3913_v39  ;;  %v3967_v59 = vsub.f32 0.0, %v3911_v60  ;;  %v3969_v32 = vsub.f32 0.0, %v3913_v39 }
0x12ad   : > { %v3918_v18 = vadd.f32 1.0, %v3914_v43  ;;  %v3920_v36 = vadd.f32 1.0, %v3916_v50  ;;  %v3970_v56 = vmul.f32 %v3966_v46, %v3910_v6  ;;  %v3972_v22 = vmul.f32 %v3968_v47, %v3912_v45 }
0x12ae   : > { %v3919_v27 = vadd.f32 1.0, %v3915_v1  ;;  %v3921_v37 = vadd.f32 1.0, %v3917_v17  ;;  %v3971_v57 = vmul.f32 %v3967_v59, %v3911_v60  ;;  %v3973_v55 = vmul.f32 %v3969_v32, %v3913_v39 }
0x12af   : > { %6016 = vrcp.f32 %v3918_v18  ;;  %v3974_v49 = vmul.f32 1.442695, %v3970_v56  ;;  %v3978_v0 = vmul.f32 1.442695, %v3972_v22  ;;  %v3906_v59 = vsel %vm3902_vm12, 1.0, %v6252_v40 }
0x12b0   : > { %6018 = vrcp.f32 %v3920_v36  ;;  %v3976_v61 = vmul.f32 1.442695, %v3971_v57  ;;  %v3980_v62 = vmul.f32 1.442695, %v3973_v55  ;;  %v3907_v32 = vsel %vm3903_vm14, 1.0, %v6252_v40 }
0x12b1   : > { %6020 = vrcp.f32 %v3919_v27  ;;  %vm3905_vm15 = vcmp.ge.f32.partialorder %v7592_v9, 0.0  ;;  %v3897_v55 = vmul.f32 0.5, %v7583_v28  ;;  %v3896_v9 = vmul.f32 0.5, %v7573_v26  ;;  %v4148_v26 = vld [vmem:[%s8011_s17] sm:$0xff] (!%p4614_p5)  ;;  %v4149_v28 = vld [vmem:[%s8011_s17 + $0x8] sm:$0xff] (!%p4614_p5) }
0x12b2   : > { %6022 = vrcp.f32 %v3921_v37  ;;  %v3909_v63 = vsel %vm3905_vm15, 1.0, %v6252_v40 }
0x12b3   : > { %6024 = vpow2.f32 %v3974_v49 }
0x12b4   : > { %6026 = vpow2.f32 %v3978_v0 }
0x12b5   : > { %6028 = vpow2.f32 %v3976_v61 }
0x12b6   : > { %6030 = vpow2.f32 %v3980_v62  ;;  %v6253_v62 = vmov (!%p4614_p5), 0.0|0.0  }
0x12b7   : > { %5831 = vmatprep.subr.bf16.mxu0 (!%p4614_p5), %v6253_v62  ;;  %5855 = vmatprep.subr.bf16.mxu1 (!%p4614_p5), %v6253_v62 }
0x12b9   : > { %v6017_v51 = vpop.eup %6016 }
0x12ba   : > { %v6019_v13 = vpop.eup %6018  ;;  %v3930_v14 = vmul.f32 1.0614054, %v6017_v51 }
0x12bb   : > { %v3932_v23 = vmul.f32 1.0614054, %v6019_v13  ;;  %v6021_v44 = vpop.eup %6020 }
0x12bc   : > { %v3934_v31 = vadd.f32 -1.4531521, %v3930_v14  ;;  %v3931_v15 = vmul.f32 1.0614054, %v6021_v44  ;;  %v6023_v52 = vpop.eup %6022 }
0x12bd   : > { %v3936_v53 = vadd.f32 -1.4531521, %v3932_v23  ;;  %v3933_v10 = vmul.f32 1.0614054, %v6023_v52  ;;  %v6025_v50 = vpop.eup %6024 }
0x12be   : > { %v3938_v58 = vmul.f32 %v6017_v51, %v3934_v31  ;;  %v3935_v11 = vadd.f32 -1.4531521, %v3931_v15  ;;  %v6027_v36 = vpop.eup %6026  ;;  %v3894_v15 = vmul.f32 0.5, %v7571_v29 }
0x12bf   : > { %v3940_v4 = vmul.f32 %v6019_v13, %v3936_v53  ;;  %v3937_v7 = vadd.f32 -1.4531521, %v3933_v10  ;;  %v6029_v47 = vpop.eup %6028 }
0x12c0   : > { %v3942_v33 = vadd.f32 1.4214138, %v3938_v58  ;;  %v3939_v12 = vmul.f32 %v6021_v44, %v3935_v11  ;;  %v6031_v23 = vpop.eup %6030  ;;  %v3895_v58 = vmul.f32 0.5, %v7581_v48 }
0x12c1   : > { %v3944_v41 = vadd.f32 1.4214138, %v3940_v4  ;;  %v3941_v34 = vmul.f32 %v6023_v52, %v3937_v7 }
0x12c2   : > { %v3946_v25 = vmul.f32 %v6017_v51, %v3942_v33  ;;  %v3943_v2 = vadd.f32 1.4214138, %v3939_v12 }
0x12c3   : > { %v3948_v24 = vmul.f32 %v6019_v13, %v3944_v41  ;;  %v3945_v16 = vadd.f32 1.4214138, %v3941_v34  ;;  %v6255_v34 = vmov (!%p4614_p5), 0.0  }
0x12c4   : > { %v3950_v42 = vadd.f32 -0.28449672, %v3946_v25  ;;  %v3947_v5 = vmul.f32 %v6021_v44, %v3943_v2  ;;  %v4150_v2 = vld [vmem:[%s8011_s17 + $0x10] sm:$0xff] (!%p4614_p5) }
0x12c5   : > { %v3952_v38 = vadd.f32 -0.28449672, %v3948_v24  ;;  %v3949_v6 = vmul.f32 %v6023_v52, %v3945_v16 }
0x12c6   : > { %v3954_v20 = vmul.f32 %v6017_v51, %v3950_v42  ;;  %v3951_v35 = vadd.f32 -0.28449672, %v3947_v5  ;;  %v4152_v5 = vld [vmem:[%s8011_s17 + $0x20] sm:$0xff] (!%p4614_p5) }
0x12c7   : > { %v3956_v30 = vmul.f32 %v6019_v13, %v3952_v38  ;;  %v3953_v18 = vadd.f32 -0.28449672, %v3949_v6  ;;  %v5832_v38 = vpack.c.bf16 (!%p4614_p5), %v4149_v28, %v4148_v26  ;;  %v4156_v6 = vld [vmem:[%s8011_s17 + $0x40] sm:$0xff] (!%p4614_p5) }
0x12c8   : > { %v3958_v21 = vadd.f32 0.2548296, %v3954_v20  ;;  %v3955_v43 = vmul.f32 %v6021_v44, %v3951_v35  ;;  %v4155_v35 = vld [vmem:[%s8011_s17 + $0x38] sm:$0xff] (!%p4614_p5) }
0x12c9   : > { %v3960_v3 = vadd.f32 0.2548296, %v3956_v30  ;;  %v3957_v17 = vmul.f32 %v6023_v52, %v3953_v18  ;;  %v4153_v30 = vld [vmem:[%s8011_s17 + $0x28] sm:$0xff] (!%p4614_p5) }
0x12ca   : > { %v3962_v45 = vmul.f32 %v6017_v51, %v3958_v21  ;;  %v3959_v27 = vadd.f32 0.2548296, %v3955_v43  ;;  %v5838_v16 = vpack.c.bf16 (!%p4614_p5), %v4153_v30, %v4152_v5  ;;  %v4154_v21 = vld [vmem:[%s8011_s17 + $0x30] sm:$0xff] (!%p4614_p5) }
0x12cb   : > { %v3964_v60 = vmul.f32 %v6019_v13, %v3960_v3  ;;  %v3961_v56 = vadd.f32 0.2548296, %v3957_v17  ;;  %v5841_v3 = vpack.c.bf16 (!%p4614_p5), %v4155_v35, %v4154_v21  ;;  %v4163_v17 = vld [vmem:[%s8011_s17 + $0x78] sm:$0xff] (!%p4614_p5) }
0x12cc   : > { %v3982_v1 = vmul.f32 %v6025_v50, %v3962_v45  ;;  %v3963_v46 = vmul.f32 %v6021_v44, %v3959_v27  ;;  %v4157_v45 = vld [vmem:[%s8011_s17 + $0x48] sm:$0xff] (!%p4614_p5)  ;;  %v4158_v50 = vld [vmem:[%s8011_s17 + $0x50] sm:$0xff] (!%p4614_p5) }
0x12cd   : > { %v3984_v39 = vmul.f32 %v6027_v36, %v3964_v60  ;;  %v3965_v22 = vmul.f32 %v6023_v52, %v3961_v56  ;;  %v5844_v43 = vpack.c.bf16 (!%p4614_p5), %v4157_v45, %v4156_v6  ;;  %v4159_v60 = vld [vmem:[%s8011_s17 + $0x58] sm:$0xff] (!%p4614_p5)  ;;  %v4160_v36 = vld [vmem:[%s8011_s17 + $0x60] sm:$0xff] (!%p4614_p5) }
0x12ce   : > { %v3986_v37 = vsub.f32 1.0, %v3982_v1  ;;  %v3983_v13 = vmul.f32 %v6029_v47, %v3963_v46  ;;  %v5847_v18 = vpack.c.bf16 (!%p4614_p5), %v4159_v60, %v4158_v50  ;;  %v4161_v1 = vld [vmem:[%s8011_s17 + $0x68] sm:$0xff] (!%p4614_p5)  ;;  %v4167_v46 = vld [vmem:[#allocation3] sm:$0xf] (!%p4614_p5)  ;;  %v4615_v56 = vld [vmem:[%s8012_s27] ss:$0 sm:$0xff] (!%p4614_p5) }
0x12cf   : > { %v3988_v51 = vsub.f32 1.0, %v3984_v39  ;;  %v3985_v44 = vmul.f32 %v6031_v23, %v3965_v22  ;;  %v5850_v27 = vpack.c.bf16 (!%p4614_p5), %v4161_v1, %v4160_v36  ;;  %v4162_v39 = vld [vmem:[%s8011_s17 + $0x70] sm:$0xff] (!%p4614_p5) }
0x12d0   : > { %v3990_v14 = vmul.f32 %v3986_v37, %v3906_v59  ;;  %v3987_v31 = vsub.f32 1.0, %v3983_v13  ;;  %v5853_v37 = vpack.c.bf16 (!%p4614_p5), %v4163_v17, %v4162_v39 }
0x12d1   : > { %v3992_v49 = vmul.f32 %v3988_v51, %v3908_v19  ;;  %v3989_v57 = vsub.f32 1.0, %v3985_v44 }
0x12d2   : > { %v3991_v8 = vmul.f32 %v3987_v31, %v3907_v32  ;;  %v3994_v53 = vadd.f32 1.0, %v3990_v14 }
0x12d3   : > { %v3993_v4 = vmul.f32 %v3989_v57, %v3909_v63  ;;  %v3996_v52 = vadd.f32 1.0, %v3992_v49 }
0x12d4   : > { %v3995_v0 = vadd.f32 1.0, %v3991_v8  ;;  %v3998_v11 = vmul.f32 %v3994_v53, %v3894_v15 }
0x12d5   : > { %v3997_v41 = vadd.f32 1.0, %v3993_v4  ;;  %v4000_v10 = vmul.f32 %v3996_v52, %v3896_v9 }
0x12d6   : > { %v3999_v33 = vmul.f32 %v3995_v0, %v3895_v58 }
0x12d7   : > { %v4001_v61 = vmul.f32 %v3997_v41, %v3897_v55 }
0x12d8   : > { %4066 = vmatprep.mubr.f32.mxu0 %v3999_v33 }
0x12d9   : > { %4067 = vmatmul.mubr.f32.vlgmr.msra.gmra.mrb[18].mxu0 %v3998_v11  ;;  %4136 = vmatprep.mubr.f32.mxu1 %v4001_v61  ;;  %v4616_v61 = vld [vmem:[%s8013_s6] ss:$0 sm:$0xff] (!%p4614_p5) }
0x12da   : > { %4137 = vmatmul.mubr.f32.vlgmr.msra.gmra.mrb[38].mxu1 %v4000_v10  ;;  %5265 = vmatprep.mubr.msk.f32.mxu0 (!%p4614_p5), %vm6254_vm0, %v6255_v34 }
0x12db   : > { %5300 = vmatprep.mubr.msk.f32.mxu1 (!%p4614_p5), %vm6254_vm0, %v6255_v34  ;;  %5833 = vmatpush3.bf16.msra.mxu0 (!%p4614_p5), %v5832_v38 }
0x12dc   : > { %5857 = vmatpush3.bf16.msra.mxu1 (!%p4614_p5), %v5832_v38  ;;  %5834 = vmatprep.subr.bf16.mxu0 (!%p4614_p5), %v6253_v62 }
0x12dd   : > { %5858 = vmatprep.subr.bf16.mxu1 (!%p4614_p5), %v6253_v62 }
0x13ac   : > { %v4865_v48 = vpop.f32.mrb[18].mxu0 }
0x13ad   : > { %v4866_v25 = vpop.f32.mrb[19].mxu0  ;;  %v4900_v12 = vpop.f32.mrb[38].mxu1 }
0x13ae   : > { %v4867_v40 = vadd.f32 %v4866_v25, %v4865_v48  ;;  %v4901_v29 = vpop.f32.mrb[39].mxu1  ;;  %v4617_v48 = vld [vmem:[%s8014_s25] ss:$0 sm:$0xff] (!%p4614_p5) }
0x13af   : > { %v4902_v24 = vadd.f32 %v4901_v29, %v4900_v12  ;;  %4147 = sbr.rel (%p4614_p5) target bundleno = 5605 (0x15e5), region = 120 }
0x13b1   : > { %v4139_v7 = vadd.f32 %v4902_v24, %v4867_v40 }
0x13b3   : > { %v4142_v42 = vadd.f32 %v4139_v7, %v7533_v54  ;;  %v4151_v54 = vld [vmem:[%s8011_s17 + $0x18] sm:$0xff] (!%p4614_p5) }
0x13b4   : > { %v5835_v20 = vpack.c.bf16 (!%p4614_p5), %v4151_v54, %v4150_v2 }
0x13b5   : > { %4143 = vst [vmem:[#allocation3 + $0x4] sm:$0xf] %v4142_v42 }
0x13b6   : > { %5836 = vmatpush3.bf16.msra.mxu0 %v5835_v20  ;;  %5860 = vmatpush3.bf16.msra.mxu1 %v5835_v20 }
0x13b7   : > { %5837 = vmatprep.subr.bf16.mxu0 %v6253_v62  ;;  %5861 = vmatprep.subr.bf16.mxu1 %v6253_v62 }
0x13ba   : > { %5839 = vmatpush3.bf16.msra.mxu0 %v5838_v16  ;;  %5863 = vmatpush3.bf16.msra.mxu1 %v5838_v16 }
0x13bb   : > { %5840 = vmatprep.subr.bf16.mxu0 %v6253_v62  ;;  %5864 = vmatprep.subr.bf16.mxu1 %v6253_v62 }
0x13bc   : > { %v4272_v47 = vld [vmem:[#allocation3 + $0x4] sm:$0xf] }
0x13be   : > { %5842 = vmatpush3.bf16.msra.mxu0 %v5841_v3  ;;  %5866 = vmatpush3.bf16.msra.mxu1 %v5841_v3 }
0x13bf   : > { %5843 = vmatprep.subr.bf16.mxu0 %v6253_v62  ;;  %5867 = vmatprep.subr.bf16.mxu1 %v6253_v62 }
0x13c2   : > { %5845 = vmatpush3.bf16.msra.mxu0 %v5844_v43  ;;  %5869 = vmatpush3.bf16.msra.mxu1 %v5844_v43 }
0x13c3   : > { %5846 = vmatprep.subr.bf16.mxu0 %v6253_v62  ;;  %5870 = vmatprep.subr.bf16.mxu1 %v6253_v62 }
0x13c6   : > { %5848 = vmatpush3.bf16.msra.mxu0 %v5847_v18  ;;  %5872 = vmatpush3.bf16.msra.mxu1 %v5847_v18 }
0x13c7   : > { %5849 = vmatprep.subr.bf16.mxu0 %v6253_v62  ;;  %5873 = vmatprep.subr.bf16.mxu1 %v6253_v62 }
0x13ca   : > { %5851 = vmatpush3.bf16.msra.mxu0 %v5850_v27  ;;  %5875 = vmatpush3.bf16.msra.mxu1 %v5850_v27 }
0x13cb   : > { %5852 = vmatprep.subr.bf16.mxu0 %v6253_v62  ;;  %5876 = vmatprep.subr.bf16.mxu1 %v6253_v62 }
0x13ce   : > { %5854 = vmatpush3.bf16.msra.mxu0 %v5853_v37  ;;  %5878 = vmatpush3.bf16.msra.mxu1 %v5853_v37 }
0x13d1   : > { %5266 = vmatmul.mubr.f32.vlgmr.msra.gmra.mrb[0].mxu0 %v4167_v46  ;;  %5301 = vmatmul.mubr.f32.vlgmr.msra.gmra.mrb[0].mxu1 %v4272_v47 }
0x14a4   : > { %v4240_v59 = vpop.f32.mrb[0].mxu0  ;;  %v4339_v51 = vpop.f32.mrb[0].mxu1 }
0x14a5   : > { %v4241_v13 = vadd.f32 %v4615_v56, %v4240_v59  ;;  %v5267_v14 = vpop.f32.mrb[1].mxu0  ;;  %v4340_v22 = vadd.f32 %v4615_v56, %v4339_v51  ;;  %v5302_v23 = vpop.f32.mrb[1].mxu1 }
0x14a7   : > { %v4244_v31 = vsel %vm1233_vm1, %v4241_v13, 0.0  ;;  %v4343_v19 = vsel %vm1233_vm1, %v4340_v22, 0.0 }
0x14a8   : > { %4245 = vadd.xlane.f32.xlu0 %v4244_v31 }
0x14ac   : > { %4344 = vadd.xlane.f32.xlu0 %v4343_v19 }
0x1535   : > { %v4246_v32 = vpop.xlane.xlu0 %4245 }
0x1536   : > { %v4247_v44 = vmul.f32 0.0078125, %v4246_v32 }
0x1538   : > { %v4248_v49 = vsub.f32 %v4241_v13, %v4247_v44 }
0x1539   : > { %v4345_v8 = vpop.xlane.xlu0 %4344 }
0x153a   : > { %v4346_v53 = vmul.f32 0.0078125, %v4345_v8  ;;  %v4249_v57 = vmul.f32 %v4248_v49, %v4248_v49 }
0x153c   : > { %v4347_v58 = vsub.f32 %v4340_v22, %v4346_v53  ;;  %v4250_v0 = vsel %vm1233_vm1, %v4249_v57, 0.0 }
0x153d   : > { %4251 = vadd.xlane.f32.xlu1 %v4250_v0 }
0x153e   : > { %v4348_v63 = vmul.f32 %v4347_v58, %v4347_v58 }
0x1540   : > { %v4349_v15 = vsel %vm1233_vm1, %v4348_v63, 0.0 }
0x1541   : > { %4350 = vadd.xlane.f32.xlu1 %v4349_v15 }
0x15ca   : > { %v4252_v4 = vpop.xlane.xlu1 %4251 }
0x15cb   : > { %v4253_v52 = vmul.f32 0.0078125, %v4252_v4 }
0x15cd   : > { %v4254_v33 = vadd.f32 1e-05, %v4253_v52 }
0x15ce   : > { %v4351_v11 = vpop.xlane.xlu1 %4350 }
0x15cf   : > { %6039 = vrsqrt.f32 %v4254_v33  ;;  %v4352_v55 = vmul.f32 0.0078125, %v4351_v11 }
0x15d1   : > { %v4353_v41 = vadd.f32 1e-05, %v4352_v55 }
0x15d3   : > { %6041 = vrsqrt.f32 %v4353_v41 }
0x15d9   : > { %v6040_v9 = vpop.eup %6039 }
0x15da   : > { %v4256_v10 = vmul.f32 %v6040_v9, %v4248_v49 }
0x15dc   : > { %v4263_v25 = vmul.f32 %v4616_v61, %v4256_v10 }
0x15dd   : > { %v6042_v40 = vpop.eup %6041 }
0x15de   : > { %v4270_v12 = vadd.f32 %v4617_v48, %v4263_v25  ;;  %v4355_v29 = vmul.f32 %v6042_v40, %v4347_v58 }
0x15e0   : > { %4271 = vst [vmem:[#allocation12] sm:$0xf] %v4270_v12  ;;  %v4356_v24 = vmul.f32 %v4616_v61, %v4355_v29 }
0x15e2   : > { %v4357_v7 = vadd.f32 %v4617_v48, %v4356_v24 }
0x15e4   : > { %4359 = vst [vmem:[#allocation12 + $0x4] sm:$0xf] %v4357_v7 }
0x15e5 PF: > { %p5913_p6 = scmp.eq.s32.totalorder %s6377_s1, 3  ;;  %s6256_s12 = smov [#allocation12]  }
0x15e6   : > { %s4366_s13 = sshll.u32 %s6256_s12, 4  ;;  %s4367_s13 = int_to_ptr.vmem [resolvable:$true] %s4366_s13 }
0x15e7   : > { %s6163_s19 = scalar_lea.vmem %s4367_s13, 128  ;;  %p6170_p1 = scmp.lt.s32.totalorder %s4367_s13, %s4367_s13 }
0x15e8   : > { %p6164_p10 = scmp.ne.s32.totalorder %s4367_s13, %s6163_s19  ;;  %p6171_p11 = scmp.lt.s32.totalorder %s6163_s19, %s6163_s19 }
0x15ea   : > { %p6165_p4 = pnand %p6164_p10, %p5913_p6  ;;  %p6172_p2 = por %p6171_p11, %p6170_p1 }
0x15ec   : > { %p6166_p13 = pneg %p6165_p4 }
0x15ee   : > { %p6173_p9 = pnand %p6172_p2, %p6166_p13 }
0x15f0   : > { %6176 = shalt.err (!%p6173_p9)
}
0x15f1   : > { %s8015_s2 = sld [smem:[#allocation108_spill]] }
0x15f7   : > { %s6177_s0 = scalar_lea.hbm %s8015_s2, 128 }
0x15f8   : > { %p6178_p0 = scmp.ne.s32.totalorder %s8015_s2, %s6177_s0  ;;  %p6183_p8 = scmp.lt.u32.totalorder %s6177_s0, %s8015_s2 }
0x15fa   : > { %p6179_p12 = pnand %p6178_p0, %p5913_p6 }
0x15fc   : > { %p6180_p7 = pneg %p6179_p12 }
0x15fe   : > { %p6185_p3 = pnand %p6183_p8, %p6180_p7 }
0x1600   : > { %6188 = shalt.err (!%p6185_p3)
}
0x1601   : > { %s6257_s28 = smov 4  }
0x1602   : > { %5896 = dma.vmem_to_hbm [thread:$0]  (%p5913_p6), %s4367_s13, 128, %s8015_s2, [#allocation6], %s6251_s16, %s6251_s16, %s6257_s28  }
0x1603   : > { %6218 = dma.done.wait (%p5913_p6), [#allocation6], 128  }
0x1604   : > { %6220 = vsyncadd (%p5913_p6), [#allocation6], 4294967168 }
0x1605 PF: > { %s8016_s21 = sld [smem:[#allocation18_spill]]  ;;  %s8017_s27 = sld [smem:[#allocation17_spill]] }
0x1606   : > { %s8018_s20 = sld [smem:[#allocation19_spill]]  ;;  %s8019_s0 = smov %s6227_s30 }
0x160b   : > { %p36_p5 = scmp.ge.s32.totalorder %s8016_s21, 6   ;;  %s8020_s30 = smov %s8017_s27 }
0x160d   :  { %38 = sbr.rel (!%p36_p5) target bundleno = 25 (0x19), region = 204 }
0x1614   :  { %4382 = vsyncpa [#allocation5], 1 }
0x1615   :  { %4384 = vsyncpa [#allocation5 + $0x1], 1 }
0x1616   :  { %4385 = vsyncpa [#allocation8], 1 }
0x1617   :  { %4387 = vsyncpa [#allocation8 + $0x1], 1 }
0x1618   :  { %4388 = vsyncpa [#allocation11], 1 }
0x1619   :  { %4390 = vsyncpa [#allocation11 + $0x1], 1 }
0x161a   :  { %4391 = vsyncpa [#allocation6], 1 }
0x161b   :  { %4393 = vsyncpa [#allocation6 + $0x1], 1 }

</bundles_post_ra>
